<compile_context>
chip_gen: v6e
topology: v6e:2x2x1
jax: 0.10.0
libtpu: 0.0.40
codegen_flags: <defaults>
</compile_context>

<pallas_src>
import functools
import math

import jax
import jax.numpy as jnp
from jax.experimental import pallas as pl
from jax.experimental.pallas import tpu as pltpu


# ------------------------------ tiling helpers -------------------------------

def _tile(dim, target, align, prefer=None):
    """Largest divisor of `dim` that is <= target and a multiple of `prefer`
    (falling back to `align`); else the full dim."""
    for a in [x for x in (prefer, align) if x]:
        t = (min(target, dim) // a) * a
        while t >= a:
            if dim % t == 0:
                return t
            t -= a
    return dim


def _bytes(shape, dtype):
    return math.prod(shape) * jnp.dtype(dtype).itemsize


def _vmem_capacity():
    try:
        return int(pltpu.get_tpu_info().vmem_capacity_bytes)
    except Exception:
        return 128 << 20   # conservative v5e/v6e default


def _cparams(semantics, *block_defs):
    # double-buffered blocks + margin for in-kernel temporaries, clamped to a
    # fraction of the actual per-core VMEM (64 MiB on v7x, 128 MiB v5e/v6e).
    need = 2 * sum(_bytes(s, d) for s, d in block_defs) + (4 << 20)
    cap = int(_vmem_capacity() * 3 // 4)
    limit = int(min(max(need, 16 << 20), cap))
    return pltpu.CompilerParams(dimension_semantics=semantics,
                                vmem_limit_bytes=limit)


# ----------------------------- Pallas kernels --------------------------------

def _ln_matmul_kernel(x_ref, g_ref, b_ref, w_ref, bias_ref, o_ref, xn_ref, *, gelu):
    # y = LN(x) @ W + b (optionally GPT-2 "gelu_new").  LN is computed once per
    # row-block (j == 0) into a bf16 VMEM scratch and reused for every N tile.
    j = pl.program_id(1)

    @pl.when(j == 0)
    def _():
        x = x_ref[...]                                        # (tm, D) f32
        mu = jnp.mean(x, axis=-1, keepdims=True)
        var = jnp.mean(jnp.square(x - mu), axis=-1, keepdims=True)
        xn = (x - mu) * jax.lax.rsqrt(var + 1e-5) * g_ref[...] + b_ref[...]
        xn_ref[...] = xn.astype(xn_ref.dtype)

    h = jnp.dot(xn_ref[...], w_ref[...],
                preferred_element_type=jnp.float32) + bias_ref[...]
    if gelu:
        c = 0.7978845608028654  # sqrt(2/pi)
        h = 0.5 * h * (1.0 + jnp.tanh(c * (h + 0.044715 * h * h * h)))
    o_ref[...] = h.astype(o_ref.dtype)


def _matmul_residual_kernel(a_ref, w_ref, bias_ref, res_ref, o_ref):
    # y = res + a @ W + b, K-tiled; accumulate directly into the resident f32
    # output block (no separate accumulator scratch).
    k = pl.program_id(2)

    @pl.when(k == 0)
    def _():
        o_ref[...] = res_ref[...] + bias_ref[...]

    o_ref[...] += jnp.dot(a_ref[...], w_ref[...],
                          preferred_element_type=jnp.float32)


def _attention_kernel(q_ref, k_ref, v_ref, o_ref, *, scale):
    # One (batch, head) per grid step; blocks are (1, S, hd) slices of the fused
    # QKV slab selected by the index_maps (slicing happens in the DMA).
    q = q_ref[0] * jnp.bfloat16(scale)            # fold 1/sqrt(hd) into Q
    k = k_ref[0]
    v = v_ref[0]
    s = jax.lax.dot_general(q, k, (((1,), (1,)), ((), ())),
                            preferred_element_type=jnp.float32)   # (S, S) f32
    S = q.shape[0]
    row = jax.lax.broadcasted_iota(jnp.int32, (S, S), 0)
    col = jax.lax.broadcasted_iota(jnp.int32, (S, S), 1)
    s = jnp.where(col <= row, s, jnp.float32(-1e30))
    s = s - jnp.max(s, axis=-1, keepdims=True)
    p = jnp.exp(s)
    p = p * pl.reciprocal(jnp.sum(p, axis=-1, keepdims=True), approx=True)
    o_ref[0] = jnp.dot(p.astype(v.dtype), v,
                       preferred_element_type=jnp.float32).astype(o_ref.dtype)
    # TODO(synk): for long sequences (S >= 512) convert to flash-style KV-tiled
    # online softmax so the (S, S) score tile never materializes (v7x VMEM).


def _lmhead_kernel(x_ref, g_ref, b_ref, wte_ref, o_ref,
                   xn_ref, best_val, best_idx, *, tv):
    # Fused ln_f (hoisted out of the vocab loop) + tied lm_head + streaming
    # argmax over vocab tiles.
    v = pl.program_id(1)

    @pl.when(v == 0)
    def _():
        x = x_ref[...]                                        # (tm, D) f32
        mu = jnp.mean(x, axis=-1, keepdims=True)
        var = jnp.mean(jnp.square(x - mu), axis=-1, keepdims=True)
        xn_ref[...] = ((x - mu) * jax.lax.rsqrt(var + 1e-5) * g_ref[...]
                       + b_ref[...]).astype(xn_ref.dtype)

    # logits tile = xn @ wte_tile^T via contracting dims (MXU transposed-RHS
    # path; no explicit XLU transpose of the (tv, D) tile).
    logits = jax.lax.dot_general(xn_ref[...], wte_ref[...],
                                 (((1,), (1,)), ((), ())),
                                 preferred_element_type=jnp.float32)  # (tm, tv)
    tile_max = jnp.max(logits, axis=-1, keepdims=True)
    col = jax.lax.broadcasted_iota(jnp.int32, logits.shape, 1)
    # first index achieving the tile max, offset into the global vocab.
    tile_idx = jnp.min(jnp.where(logits == tile_max, col, tv),
                       axis=-1, keepdims=True) + v * tv

    @pl.when(v == 0)
    def _():
        best_val[...] = tile_max
        best_idx[...] = tile_idx

    @pl.when(v > 0)
    def _():
        better = tile_max > best_val[...]   # strict > keeps the first global max
        best_val[...] = jnp.where(better, tile_max, best_val[...])
        best_idx[...] = jnp.where(better, tile_idx, best_idx[...])

    @pl.when(v == pl.num_programs(1) - 1)
    def _():
        o_ref[...] = best_idx[...]
    # TODO(synk): lane-dense (1, tm) argmax output layout skipped (needs a
    # sublane->lane relayout); cost is tiny for an M-element int32 output.


# --------------------------- pallas_call wrappers -----------------------------

def ln_matmul_bias(x, g, b, w, bias, *, gelu=False, out_dtype=jnp.bfloat16):
    M, D = x.shape
    N = w.shape[1]
    tm = _tile(M, 512, 8)
    tn = _tile(N, 768, 128, prefer=256)
    return pl.pallas_call(
        functools.partial(_ln_matmul_kernel, gelu=gelu),
        out_shape=jax.ShapeDtypeStruct((M, N), out_dtype),
        grid=(M // tm, N // tn),
        in_specs=[
            pl.BlockSpec((tm, D), lambda i, j: (i, 0)),
            pl.BlockSpec((1, D), lambda i, j: (0, 0)),
            pl.BlockSpec((1, D), lambda i, j: (0, 0)),
            pl.BlockSpec((D, tn), lambda i, j: (0, j)),
            pl.BlockSpec((1, tn), lambda i, j: (0, j)),
        ],
        out_specs=pl.BlockSpec((tm, tn), lambda i, j: (i, j)),
        scratch_shapes=[pltpu.VMEM((tm, D), jnp.bfloat16)],
        compiler_params=_cparams(
            ("parallel", "arbitrary"),
            ((tm, D), jnp.float32), ((D, tn), jnp.bfloat16),
            ((1, tn), jnp.float32), ((tm, tn), out_dtype),
            ((tm, D), jnp.bfloat16)),
    )(x, g, b, w, bias)


def matmul_bias_residual(a, w, bias, res):
    # y = res + a @ W + b ;  a is bf16 (attention / GELU output), res/out f32.
    M, K = a.shape
    N = w.shape[1]
    tm = _tile(M, 512, 8)
    tn = _tile(N, 512, 128, prefer=256)
    tk = _tile(K, 512, 128, prefer=256)
    return pl.pallas_call(
        _matmul_residual_kernel,
        out_shape=jax.ShapeDtypeStruct((M, N), jnp.float32),
        grid=(M // tm, N // tn, K // tk),
        in_specs=[
            pl.BlockSpec((tm, tk), lambda i, j, k: (i, k)),
            pl.BlockSpec((tk, tn), lambda i, j, k: (k, j)),
            pl.BlockSpec((1, tn), lambda i, j, k: (0, j)),
            pl.BlockSpec((tm, tn), lambda i, j, k: (i, j)),
        ],
        out_specs=pl.BlockSpec((tm, tn), lambda i, j, k: (i, j)),
        compiler_params=_cparams(
            ("parallel", "parallel", "arbitrary"),
            ((tm, tk), a.dtype), ((tk, tn), jnp.bfloat16),
            ((1, tn), jnp.float32), ((tm, tn), jnp.float32),
            ((tm, tn), jnp.float32)),
    )(a, w, bias, res)


def attention(qkv, *, n_head, out_dtype=jnp.bfloat16):
    # qkv: (B, S, 3*D) bf16, HF layout [Q | K | V] with heads contiguous inside.
    B, S, three_d = qkv.shape
    D = three_d // 3
    hd = D // n_head
    kernel = functools.partial(_attention_kernel, scale=1.0 / math.sqrt(hd))
    return pl.pallas_call(
        kernel,
        out_shape=jax.ShapeDtypeStruct((B, S, D), out_dtype),
        grid=(B, n_head),
        in_specs=[
            pl.BlockSpec((1, S, hd), lambda b, h: (b, 0, h)),
            pl.BlockSpec((1, S, hd), lambda b, h: (b, 0, n_head + h)),
            pl.BlockSpec((1, S, hd), lambda b, h: (b, 0, 2 * n_head + h)),
        ],
        out_specs=pl.BlockSpec((1, S, hd), lambda b, h: (b, 0, h)),
        compiler_params=_cparams(
            ("parallel", "parallel"),
            ((1, S, hd), qkv.dtype), ((1, S, hd), qkv.dtype),
            ((1, S, hd), qkv.dtype), ((1, S, hd), out_dtype),
            ((S, S), jnp.float32)),          # in-kernel score temporaries
    )(qkv, qkv, qkv)


def lmhead_argmax(x, g, b, wte):
    M, D = x.shape
    V = wte.shape[0]
    tm = _tile(M, 1024, 8)
    tv = _tile(V, 1024, 128, prefer=256)
    # TODO(synk): vocab sizes with no 128-aligned divisor (e.g. 50257) should be
    # padded to a multiple of 128 before calling this head.
    return pl.pallas_call(
        functools.partial(_lmhead_kernel, tv=tv),
        out_shape=jax.ShapeDtypeStruct((M, 1), jnp.int32),
        grid=(M // tm, V // tv),
        in_specs=[
            pl.BlockSpec((tm, D), lambda i, v: (i, 0)),
            pl.BlockSpec((1, D), lambda i, v: (0, 0)),
            pl.BlockSpec((1, D), lambda i, v: (0, 0)),
            pl.BlockSpec((tv, D), lambda i, v: (v, 0)),
        ],
        out_specs=pl.BlockSpec((tm, 1), lambda i, v: (i, 0)),
        scratch_shapes=[pltpu.VMEM((tm, D), jnp.bfloat16),
                        pltpu.VMEM((tm, 1), jnp.float32),
                        pltpu.VMEM((tm, 1), jnp.int32)],
        compiler_params=_cparams(
            ("parallel", "arbitrary"),
            ((tm, D), jnp.float32), ((tv, D), jnp.bfloat16),
            ((tm, D), jnp.bfloat16), ((tm, tv), jnp.float32),
            ((tm, 1), jnp.int32)),
    )(x, g, b, wte)


# ------------------------------ model (glue) ----------------------------------

def init_params(key, *, vocab, n_positions, n_embd, n_layer):
    D = n_embd
    keys = jax.random.split(key, 2 + 4 * n_layer)
    params = {
        # wte stored in bf16: used both for embedding lookup and the tied lm head.
        "wte": (0.02 * jax.random.normal(keys[0], (vocab, D), jnp.float32)
                ).astype(jnp.bfloat16),
        "wpe": 0.01 * jax.random.normal(keys[1], (n_positions, D), jnp.float32),
        "ln_f_g": jnp.ones((1, D), jnp.float32),
        "ln_f_b": jnp.zeros((1, D), jnp.float32),
        "blocks": [],
    }
    for l in range(n_layer):
        k0, k1, k2, k3 = keys[2 + 4 * l: 6 + 4 * l]
        params["blocks"].append({
            "ln1_g": jnp.ones((1, D), jnp.float32),
            "ln1_b": jnp.zeros((1, D), jnp.float32),
            "c_attn_w": (0.02 * jax.random.normal(k0, (D, 3 * D), jnp.float32)
                         ).astype(jnp.bfloat16),
            "c_attn_b": jnp.zeros((1, 3 * D), jnp.float32),
            "c_proj_w": (0.02 * jax.random.normal(k1, (D, D), jnp.float32)
                         ).astype(jnp.bfloat16),
            "c_proj_b": jnp.zeros((1, D), jnp.float32),
            "ln2_g": jnp.ones((1, D), jnp.float32),
            "ln2_b": jnp.zeros((1, D), jnp.float32),
            "c_fc_w": (0.02 * jax.random.normal(k2, (D, 4 * D), jnp.float32)
                       ).astype(jnp.bfloat16),
            "c_fc_b": jnp.zeros((1, 4 * D), jnp.float32),
            "mlp_proj_w": (0.02 * jax.random.normal(k3, (4 * D, D), jnp.float32)
                           ).astype(jnp.bfloat16),
            "mlp_proj_b": jnp.zeros((1, D), jnp.float32),
        })
    return params


def gpt2_forward(params, input_ids, *, n_head):
    B, S = input_ids.shape
    D = params["wpe"].shape[1]
    M = B * S

    # Embedding gather stays in JAX (no clean Pallas gather needed at this size);
    # the residual stream x stays f32.
    x = (params["wte"][input_ids].astype(jnp.float32)
         + params["wpe"][:S][None, :, :]).reshape(M, D)

    for blk in params["blocks"]:
        # --- attention sub-block: LN fused into QKV matmul (bf16 out),
        #     residual+bias fused into the c_proj matmul ---
        qkv = ln_matmul_bias(x, blk["ln1_g"], blk["ln1_b"],
                             blk["c_attn_w"], blk["c_attn_b"])        # (M, 3D) bf16
        attn = attention(qkv.reshape(B, S, 3 * D), n_head=n_head)     # (B, S, D) bf16
        x = matmul_bias_residual(attn.reshape(M, D),
                                 blk["c_proj_w"], blk["c_proj_b"], x)
        # --- MLP sub-block: LN+GELU fused into c_fc (bf16 out),
        #     residual+bias fused into the mlp_proj matmul ---
        hmlp = ln_matmul_bias(x, blk["ln2_g"], blk["ln2_b"],
                              blk["c_fc_w"], blk["c_fc_b"], gelu=True)  # (M, 4D) bf16
        x = matmul_bias_residual(hmlp, blk["mlp_proj_w"], blk["mlp_proj_b"], x)

    # final LN + tied lm_head + argmax, vocab-streamed
    out = lmhead_argmax(x, params["ln_f_g"], params["ln_f_b"], params["wte"])
    return out.reshape(B, S)


# ---------------------------------- main ---------------------------------------

if __name__ == "__main__":
    # Small but lane-friendly config: head_dim = 128 keeps the per-head QKV
    # blocks 128-lane aligned.
    VOCAB, N_POS, N_EMBD, N_HEAD, N_LAYER = 512, 16, 256, 2, 2
    B, S = 2, 8

    key = jax.random.PRNGKey(0)
    kp, kx = jax.random.split(key)
    params = init_params(kp, vocab=VOCAB, n_positions=N_POS,
                         n_embd=N_EMBD, n_layer=N_LAYER)
    input_ids = jax.random.randint(kx, (B, S), 0, VOCAB, dtype=jnp.int32)

    fwd = jax.jit(functools.partial(gpt2_forward, n_head=N_HEAD))
    out = fwd(params, input_ids)
    jax.block_until_ready(out)
    assert out.shape == (B, S) and jnp.issubdtype(out.dtype, jnp.integer)
    assert bool(jnp.all((out >= 0) & (out < VOCAB)))
    print("KERNEL_OK")
</pallas_src>

<mosaic_0001>
module attributes {stable_mosaic.version = 11 : i64} {
  func.func @_attention_kernel(%arg0: i32, %arg1: i32, %arg2: memref<1x8x128xbf16, #tpu.memory_space<vmem>>, %arg3: memref<1x8x128xbf16, #tpu.memory_space<vmem>>, %arg4: memref<1x8x128xbf16, #tpu.memory_space<vmem>>, %arg5: memref<1x8x128xbf16, #tpu.memory_space<vmem>>) attributes {dimension_semantics = [#tpu.dimension_semantics<parallel>, #tpu.dimension_semantics<parallel>], iteration_bounds = array<i64: 2, 2>, scalar_prefetch = 0 : i64, scratch_operands = 0 : i64, tpu.core_type = #tpu.core_type<tc>, window_params = [{transform_indices = @transform_0, window_bounds = array<i64: 1, 8, 128>}, {transform_indices = @transform_1, window_bounds = array<i64: 1, 8, 128>}, {transform_indices = @transform_2, window_bounds = array<i64: 1, 8, 128>}, {transform_indices = @transform_3, window_bounds = array<i64: 1, 8, 128>}]} {
    %c0 = arith.constant 0 : index
    %c0_0 = arith.constant 0 : index
    %c0_1 = arith.constant 0 : index
    %0 = vector.load %arg2[%c0, %c0_0, %c0_1] : memref<1x8x128xbf16, #tpu.memory_space<vmem>>, vector<1x8x128xbf16>
    %1 = vector.shape_cast %0 : vector<1x8x128xbf16> to vector<8x128xbf16>
    %cst = arith.constant 8.837890e-02 : bf16
    %2 = vector.broadcast %cst : bf16 to vector<8x128xbf16>
    %3 = arith.mulf %1, %2 : vector<8x128xbf16>
    %c0_2 = arith.constant 0 : index
    %c0_3 = arith.constant 0 : index
    %c0_4 = arith.constant 0 : index
    %4 = vector.load %arg3[%c0_2, %c0_3, %c0_4] : memref<1x8x128xbf16, #tpu.memory_space<vmem>>, vector<1x8x128xbf16>
    %5 = vector.shape_cast %4 : vector<1x8x128xbf16> to vector<8x128xbf16>
    %c0_5 = arith.constant 0 : index
    %c0_6 = arith.constant 0 : index
    %c0_7 = arith.constant 0 : index
    %6 = vector.load %arg4[%c0_5, %c0_6, %c0_7] : memref<1x8x128xbf16, #tpu.memory_space<vmem>>, vector<1x8x128xbf16>
    %7 = vector.shape_cast %6 : vector<1x8x128xbf16> to vector<8x128xbf16>
    %cst_8 = arith.constant dense<0.000000e+00> : vector<8x8xf32>
    %8 = tpu.matmul %3, %5, %cst_8 {dimension_numbers = #tpu.dot_dimension_numbers<[1], [1], [0], [0], [0, 0, 1, 0], [], []>} : vector<8x128xbf16>, vector<8x128xbf16>, vector<8x8xf32> -> vector<8x8xf32>
    %9 = tpu.iota {dimensions = array<i32: 0>} : vector<8x8xi32>
    %10 = tpu.iota {dimensions = array<i32: 1>} : vector<8x8xi32>
    %11 = arith.cmpi sle, %10, %9 : vector<8x8xi32>
    %cst_9 = arith.constant -1.000000e+30 : f32
    %12 = vector.broadcast %cst_9 : f32 to vector<8x8xf32>
    %13 = arith.select %11, %8, %12 : vector<8x8xi1>, vector<8x8xf32>
    %cst_10 = arith.constant dense<0xFF800000> : vector<8xf32>
    %14 = vector.multi_reduction <maximumf>, %13, %cst_10 [1] : vector<8x8xf32> to vector<8xf32>
    %15 = vector.shape_cast %14 : vector<8xf32> to vector<8x1xf32>
    %16 = vector.broadcast %15 : vector<8x1xf32> to vector<8x8xf32>
    %17 = arith.subf %13, %16 : vector<8x8xf32>
    %18 = math.exp %17 : vector<8x8xf32>
    %cst_11 = arith.constant dense<0.000000e+00> : vector<8xf32>
    %19 = vector.multi_reduction <add>, %18, %cst_11 [1] : vector<8x8xf32> to vector<8xf32>
    %20 = vector.shape_cast %19 : vector<8xf32> to vector<8x1xf32>
    %21 = tpu.reciprocal %20 {approx = true} : vector<8x1xf32> -> vector<8x1xf32>
    %22 = vector.broadcast %21 : vector<8x1xf32> to vector<8x8xf32>
    %23 = arith.mulf %18, %22 : vector<8x8xf32>
    %24 = arith.truncf %23 : vector<8x8xf32> to vector<8x8xbf16>
    %cst_12 = arith.constant dense<0.000000e+00> : vector<8x128xf32>
    %25 = tpu.matmul %24, %7, %cst_12 {dimension_numbers = #tpu.dot_dimension_numbers<[1], [0], [0], [1], [0, 0, 1, 1], [], []>} : vector<8x8xbf16>, vector<8x128xbf16>, vector<8x128xf32> -> vector<8x128xf32>
    %26 = arith.truncf %25 : vector<8x128xf32> to vector<8x128xbf16>
    %c0_13 = arith.constant 0 : index
    %c0_14 = arith.constant 0 : index
    %c0_15 = arith.constant 0 : index
    %27 = vector.load %arg5[%c0_13, %c0_14, %c0_15] : memref<1x8x128xbf16, #tpu.memory_space<vmem>>, vector<1x8x128xbf16>
    %28 = vector.shape_cast %27 : vector<1x8x128xbf16> to vector<8x128xbf16>
    %29 = vector.shape_cast %26 : vector<8x128xbf16> to vector<1x8x128xbf16>
    tpu.vector_store %arg5[%c0_13, %c0_14, %c0_15], %29 {strides = array<i32>} : memref<1x8x128xbf16, #tpu.memory_space<vmem>>, vector<1x8x128xbf16>,
    return
  }
  func.func @transform_0(%arg0: i32, %arg1: i32) -> (i32, i32, i32) {
    %c0_i32 = arith.constant 0 : i32
    %c0_i32_0 = arith.constant 0 : i32
    return %arg0, %c0_i32, %arg1 : i32, i32, i32
  }
  func.func @transform_1(%arg0: i32, %arg1: i32) -> (i32, i32, i32) {
    %c2_i32 = arith.constant 2 : i32
    %0 = arith.addi %c2_i32, %arg1 : i32
    %c0_i32 = arith.constant 0 : i32
    %c0_i32_0 = arith.constant 0 : i32
    return %arg0, %c0_i32, %0 : i32, i32, i32
  }
  func.func @transform_2(%arg0: i32, %arg1: i32) -> (i32, i32, i32) {
    %c4_i32 = arith.constant 4 : i32
    %0 = arith.addi %c4_i32, %arg1 : i32
    %c0_i32 = arith.constant 0 : i32
    %c0_i32_0 = arith.constant 0 : i32
    return %arg0, %c0_i32, %0 : i32, i32, i32
  }
  func.func @transform_3(%arg0: i32, %arg1: i32) -> (i32, i32, i32) {
    %c0_i32 = arith.constant 0 : i32
    %c0_i32_0 = arith.constant 0 : i32
    return %arg0, %c0_i32, %arg1 : i32, i32, i32
  }
}

module attributes {stable_mosaic.version = 11 : i64} {
  func.func @_matmul_residual_kernel(%arg0: i32, %arg1: i32, %arg2: i32, %arg3: memref<16x256xbf16, #tpu.memory_space<vmem>>, %arg4: memref<256x256xbf16, #tpu.memory_space<vmem>>, %arg5: memref<1x256xf32, #tpu.memory_space<vmem>>, %arg6: memref<16x256xf32, #tpu.memory_space<vmem>>, %arg7: memref<16x256xf32, #tpu.memory_space<vmem>>) attributes {dimension_semantics = [#tpu.dimension_semantics<parallel>, #tpu.dimension_semantics<parallel>, #tpu.dimension_semantics<arbitrary>], iteration_bounds = array<i64: 1, 1, 1>, scalar_prefetch = 0 : i64, scratch_operands = 0 : i64, tpu.core_type = #tpu.core_type<tc>, window_params = [{transform_indices = @transform_0, window_bounds = array<i64: 16, 256>}, {transform_indices = @transform_1, window_bounds = array<i64: 256, 256>}, {transform_indices = @transform_2, window_bounds = array<i64: 1, 256>}, {transform_indices = @transform_3, window_bounds = array<i64: 16, 256>}, {transform_indices = @transform_4, window_bounds = array<i64: 16, 256>}]} {
    %c0_i32 = arith.constant 0 : i32
    %0 = arith.cmpi eq, %arg2, %c0_i32 : i32
    %1 = arith.extui %0 : i1 to i32
    %c0_i32_0 = arith.constant 0 : i32
    %2 = arith.cmpi ne, %1, %c0_i32_0 : i32
    scf.if %2 {
      %c0_8 = arith.constant 0 : index
      %c0_9 = arith.constant 0 : index
      %9 = vector.load %arg6[%c0_8, %c0_9] : memref<16x256xf32, #tpu.memory_space<vmem>>, vector<16x256xf32>
      %c0_10 = arith.constant 0 : index
      %c0_11 = arith.constant 0 : index
      %10 = vector.load %arg5[%c0_10, %c0_11] : memref<1x256xf32, #tpu.memory_space<vmem>>, vector<1x256xf32>
      %11 = vector.broadcast %10 : vector<1x256xf32> to vector<16x256xf32>
      %12 = arith.addf %9, %11 : vector<16x256xf32>
      %c0_12 = arith.constant 0 : index
      %c0_13 = arith.constant 0 : index
      %13 = vector.load %arg7[%c0_12, %c0_13] : memref<16x256xf32, #tpu.memory_space<vmem>>, vector<16x256xf32>
      tpu.vector_store %arg7[%c0_12, %c0_13], %12 {strides = array<i32>} : memref<16x256xf32, #tpu.memory_space<vmem>>, vector<16x256xf32>,
    } else {
    }
    %c0 = arith.constant 0 : index
    %c0_1 = arith.constant 0 : index
    %3 = vector.load %arg7[%c0, %c0_1] : memref<16x256xf32, #tpu.memory_space<vmem>>, vector<16x256xf32>
    %c0_2 = arith.constant 0 : index
    %c0_3 = arith.constant 0 : index
    %4 = vector.load %arg3[%c0_2, %c0_3] : memref<16x256xbf16, #tpu.memory_space<vmem>>, vector<16x256xbf16>
    %c0_4 = arith.constant 0 : index
    %c0_5 = arith.constant 0 : index
    %5 = vector.load %arg4[%c0_4, %c0_5] : memref<256x256xbf16, #tpu.memory_space<vmem>>, vector<256x256xbf16>
    %cst = arith.constant dense<0.000000e+00> : vector<16x256xf32>
    %6 = tpu.matmul %4, %5, %cst {dimension_numbers = #tpu.dot_dimension_numbers<[1], [0], [0], [1], [0, 0, 1, 1], [], []>} : vector<16x256xbf16>, vector<256x256xbf16>, vector<16x256xf32> -> vector<16x256xf32>
    %7 = arith.addf %3, %6 : vector<16x256xf32>
    %c0_6 = arith.constant 0 : index
    %c0_7 = arith.constant 0 : index
    %8 = vector.load %arg7[%c0_6, %c0_7] : memref<16x256xf32, #tpu.memory_space<vmem>>, vector<16x256xf32>
    tpu.vector_store %arg7[%c0_6, %c0_7], %7 {strides = array<i32>} : memref<16x256xf32, #tpu.memory_space<vmem>>, vector<16x256xf32>,
    return
  }
  func.func @transform_0(%arg0: i32, %arg1: i32, %arg2: i32) -> (i32, i32) {
    %c0_i32 = arith.constant 0 : i32
    return %arg0, %arg2 : i32, i32
  }
  func.func @transform_1(%arg0: i32, %arg1: i32, %arg2: i32) -> (i32, i32) {
    %c0_i32 = arith.constant 0 : i32
    return %arg2, %arg1 : i32, i32
  }
  func.func @transform_2(%arg0: i32, %arg1: i32, %arg2: i32) -> (i32, i32) {
    %c0_i32 = arith.constant 0 : i32
    %c0_i32_0 = arith.constant 0 : i32
    return %c0_i32, %arg1 : i32, i32
  }
  func.func @transform_3(%arg0: i32, %arg1: i32, %arg2: i32) -> (i32, i32) {
    %c0_i32 = arith.constant 0 : i32
    return %arg0, %arg1 : i32, i32
  }
  func.func @transform_4(%arg0: i32, %arg1: i32, %arg2: i32) -> (i32, i32) {
    %c0_i32 = arith.constant 0 : i32
    return %arg0, %arg1 : i32, i32
  }
}

module attributes {stable_mosaic.version = 11 : i64} {
  func.func @_ln_matmul_kernel(%arg0: i32, %arg1: i32, %arg2: memref<16x256xf32, #tpu.memory_space<vmem>>, %arg3: memref<1x256xf32, #tpu.memory_space<vmem>>, %arg4: memref<1x256xf32, #tpu.memory_space<vmem>>, %arg5: memref<256x768xbf16, #tpu.memory_space<vmem>>, %arg6: memref<1x768xf32, #tpu.memory_space<vmem>>, %arg7: memref<16x768xbf16, #tpu.memory_space<vmem>>, %arg8: memref<16x256xbf16, #tpu.memory_space<vmem>>) attributes {dimension_semantics = [#tpu.dimension_semantics<parallel>, #tpu.dimension_semantics<arbitrary>], iteration_bounds = array<i64: 1, 1>, scalar_prefetch = 0 : i64, scratch_operands = 1 : i64, tpu.core_type = #tpu.core_type<tc>, window_params = [{transform_indices = @transform_0, window_bounds = array<i64: 16, 256>}, {pipeline_mode = #tpu.pipeline_mode<synchronous>, transform_indices = @transform_1, window_bounds = array<i64: 1, 256>}, {pipeline_mode = #tpu.pipeline_mode<synchronous>, transform_indices = @transform_2, window_bounds = array<i64: 1, 256>}, {transform_indices = @transform_3, window_bounds = array<i64: 256, 768>}, {transform_indices = @transform_4, window_bounds = array<i64: 1, 768>}, {transform_indices = @transform_5, window_bounds = array<i64: 16, 768>}]} {
    %c0_i32 = arith.constant 0 : i32
    %0 = arith.cmpi eq, %arg1, %c0_i32 : i32
    %1 = arith.extui %0 : i1 to i32
    %c0_i32_0 = arith.constant 0 : i32
    %2 = arith.cmpi ne, %1, %c0_i32_0 : i32
    scf.if %2 {
      %c0_8 = arith.constant 0 : index
      %c0_9 = arith.constant 0 : index
      %11 = vector.load %arg2[%c0_8, %c0_9] : memref<16x256xf32, #tpu.memory_space<vmem>>, vector<16x256xf32>
      %cst_10 = arith.constant dense<0.000000e+00> : vector<16xf32>
      %12 = vector.multi_reduction <add>, %11, %cst_10 [1] : vector<16x256xf32> to vector<16xf32>
      %13 = vector.shape_cast %12 : vector<16xf32> to vector<16x1xf32>
      %cst_11 = arith.constant 2.560000e+02 : f32
      %14 = vector.broadcast %cst_11 : f32 to vector<16x1xf32>
      %15 = arith.divf %13, %14 : vector<16x1xf32>
      %16 = vector.broadcast %15 : vector<16x1xf32> to vector<16x256xf32>
      %17 = arith.subf %11, %16 : vector<16x256xf32>
      %18 = arith.mulf %17, %17 : vector<16x256xf32>
      %cst_12 = arith.constant dense<0.000000e+00> : vector<16xf32>
      %19 = vector.multi_reduction <add>, %18, %cst_12 [1] : vector<16x256xf32> to vector<16xf32>
      %20 = vector.shape_cast %19 : vector<16xf32> to vector<16x1xf32>
      %cst_13 = arith.constant 2.560000e+02 : f32
      %21 = vector.broadcast %cst_13 : f32 to vector<16x1xf32>
      %22 = arith.divf %20, %21 : vector<16x1xf32>
      %23 = vector.broadcast %15 : vector<16x1xf32> to vector<16x256xf32>
      %24 = arith.subf %11, %23 : vector<16x256xf32>
      %cst_14 = arith.constant 9.99999974E-6 : f32
      %25 = vector.broadcast %cst_14 : f32 to vector<16x1xf32>
      %26 = arith.addf %22, %25 : vector<16x1xf32>
      %27 = math.rsqrt %26 : vector<16x1xf32>
      %28 = vector.broadcast %27 : vector<16x1xf32> to vector<16x256xf32>
      %29 = arith.mulf %24, %28 : vector<16x256xf32>
      %c0_15 = arith.constant 0 : index
      %c0_16 = arith.constant 0 : index
      %30 = vector.load %arg3[%c0_15, %c0_16] : memref<1x256xf32, #tpu.memory_space<vmem>>, vector<1x256xf32>
      %31 = vector.broadcast %30 : vector<1x256xf32> to vector<16x256xf32>
      %32 = arith.mulf %29, %31 : vector<16x256xf32>
      %c0_17 = arith.constant 0 : index
      %c0_18 = arith.constant 0 : index
      %33 = vector.load %arg4[%c0_17, %c0_18] : memref<1x256xf32, #tpu.memory_space<vmem>>, vector<1x256xf32>
      %34 = vector.broadcast %33 : vector<1x256xf32> to vector<16x256xf32>
      %35 = arith.addf %32, %34 : vector<16x256xf32>
      %36 = arith.truncf %35 : vector<16x256xf32> to vector<16x256xbf16>
      %c0_19 = arith.constant 0 : index
      %c0_20 = arith.constant 0 : index
      %37 = vector.load %arg8[%c0_19, %c0_20] : memref<16x256xbf16, #tpu.memory_space<vmem>>, vector<16x256xbf16>
      tpu.vector_store %arg8[%c0_19, %c0_20], %36 {strides = array<i32>} : memref<16x256xbf16, #tpu.memory_space<vmem>>, vector<16x256xbf16>,
    } else {
    }
    %c0 = arith.constant 0 : index
    %c0_1 = arith.constant 0 : index
    %3 = vector.load %arg8[%c0, %c0_1] : memref<16x256xbf16, #tpu.memory_space<vmem>>, vector<16x256xbf16>
    %c0_2 = arith.constant 0 : index
    %c0_3 = arith.constant 0 : index
    %4 = vector.load %arg5[%c0_2, %c0_3] : memref<256x768xbf16, #tpu.memory_space<vmem>>, vector<256x768xbf16>
    %cst = arith.constant dense<0.000000e+00> : vector<16x768xf32>
    %5 = tpu.matmul %3, %4, %cst {dimension_numbers = #tpu.dot_dimension_numbers<[1], [0], [0], [1], [0, 0, 1, 1], [], []>} : vector<16x256xbf16>, vector<256x768xbf16>, vector<16x768xf32> -> vector<16x768xf32>
    %c0_4 = arith.constant 0 : index
    %c0_5 = arith.constant 0 : index
    %6 = vector.load %arg6[%c0_4, %c0_5] : memref<1x768xf32, #tpu.memory_space<vmem>>, vector<1x768xf32>
    %7 = vector.broadcast %6 : vector<1x768xf32> to vector<16x768xf32>
    %8 = arith.addf %5, %7 : vector<16x768xf32>
    %9 = arith.truncf %8 : vector<16x768xf32> to vector<16x768xbf16>
    %c0_6 = arith.constant 0 : index
    %c0_7 = arith.constant 0 : index
    %10 = vector.load %arg7[%c0_6, %c0_7] : memref<16x768xbf16, #tpu.memory_space<vmem>>, vector<16x768xbf16>
    tpu.vector_store %arg7[%c0_6, %c0_7], %9 {strides = array<i32>} : memref<16x768xbf16, #tpu.memory_space<vmem>>, vector<16x768xbf16>,
    return
  }
  func.func @transform_0(%arg0: i32, %arg1: i32) -> (i32, i32) {
    %c0_i32 = arith.constant 0 : i32
    %c0_i32_0 = arith.constant 0 : i32
    return %arg0, %c0_i32 : i32, i32
  }
  func.func @transform_1(%arg0: i32, %arg1: i32) -> (i32, i32) {
    %c0_i32 = arith.constant 0 : i32
    %c0_i32_0 = arith.constant 0 : i32
    %c0_i32_1 = arith.constant 0 : i32
    return %c0_i32, %c0_i32_0 : i32, i32
  }
  func.func @transform_2(%arg0: i32, %arg1: i32) -> (i32, i32) {
    %c0_i32 = arith.constant 0 : i32
    %c0_i32_0 = arith.constant 0 : i32
    %c0_i32_1 = arith.constant 0 : i32
    return %c0_i32, %c0_i32_0 : i32, i32
  }
  func.func @transform_3(%arg0: i32, %arg1: i32) -> (i32, i32) {
    %c0_i32 = arith.constant 0 : i32
    %c0_i32_0 = arith.constant 0 : i32
    return %c0_i32, %arg1 : i32, i32
  }
  func.func @transform_4(%arg0: i32, %arg1: i32) -> (i32, i32) {
    %c0_i32 = arith.constant 0 : i32
    %c0_i32_0 = arith.constant 0 : i32
    return %c0_i32, %arg1 : i32, i32
  }
  func.func @transform_5(%arg0: i32, %arg1: i32) -> (i32, i32) {
    %c0_i32 = arith.constant 0 : i32
    return %arg0, %arg1 : i32, i32
  }
}

module attributes {stable_mosaic.version = 11 : i64} {
  func.func @_ln_matmul_kernel(%arg0: i32, %arg1: i32, %arg2: memref<16x256xf32, #tpu.memory_space<vmem>>, %arg3: memref<1x256xf32, #tpu.memory_space<vmem>>, %arg4: memref<1x256xf32, #tpu.memory_space<vmem>>, %arg5: memref<256x512xbf16, #tpu.memory_space<vmem>>, %arg6: memref<1x512xf32, #tpu.memory_space<vmem>>, %arg7: memref<16x512xbf16, #tpu.memory_space<vmem>>, %arg8: memref<16x256xbf16, #tpu.memory_space<vmem>>) attributes {dimension_semantics = [#tpu.dimension_semantics<parallel>, #tpu.dimension_semantics<arbitrary>], iteration_bounds = array<i64: 1, 2>, scalar_prefetch = 0 : i64, scratch_operands = 1 : i64, tpu.core_type = #tpu.core_type<tc>, window_params = [{transform_indices = @transform_0, window_bounds = array<i64: 16, 256>}, {pipeline_mode = #tpu.pipeline_mode<synchronous>, transform_indices = @transform_1, window_bounds = array<i64: 1, 256>}, {pipeline_mode = #tpu.pipeline_mode<synchronous>, transform_indices = @transform_2, window_bounds = array<i64: 1, 256>}, {transform_indices = @transform_3, window_bounds = array<i64: 256, 512>}, {transform_indices = @transform_4, window_bounds = array<i64: 1, 512>}, {transform_indices = @transform_5, window_bounds = array<i64: 16, 512>}]} {
    %c0_i32 = arith.constant 0 : i32
    %0 = arith.cmpi eq, %arg1, %c0_i32 : i32
    %1 = arith.extui %0 : i1 to i32
    %c0_i32_0 = arith.constant 0 : i32
    %2 = arith.cmpi ne, %1, %c0_i32_0 : i32
    scf.if %2 {
      %c0_12 = arith.constant 0 : index
      %c0_13 = arith.constant 0 : index
      %24 = vector.load %arg2[%c0_12, %c0_13] : memref<16x256xf32, #tpu.memory_space<vmem>>, vector<16x256xf32>
      %cst_14 = arith.constant dense<0.000000e+00> : vector<16xf32>
      %25 = vector.multi_reduction <add>, %24, %cst_14 [1] : vector<16x256xf32> to vector<16xf32>
      %26 = vector.shape_cast %25 : vector<16xf32> to vector<16x1xf32>
      %cst_15 = arith.constant 2.560000e+02 : f32
      %27 = vector.broadcast %cst_15 : f32 to vector<16x1xf32>
      %28 = arith.divf %26, %27 : vector<16x1xf32>
      %29 = vector.broadcast %28 : vector<16x1xf32> to vector<16x256xf32>
      %30 = arith.subf %24, %29 : vector<16x256xf32>
      %31 = arith.mulf %30, %30 : vector<16x256xf32>
      %cst_16 = arith.constant dense<0.000000e+00> : vector<16xf32>
      %32 = vector.multi_reduction <add>, %31, %cst_16 [1] : vector<16x256xf32> to vector<16xf32>
      %33 = vector.shape_cast %32 : vector<16xf32> to vector<16x1xf32>
      %cst_17 = arith.constant 2.560000e+02 : f32
      %34 = vector.broadcast %cst_17 : f32 to vector<16x1xf32>
      %35 = arith.divf %33, %34 : vector<16x1xf32>
      %36 = vector.broadcast %28 : vector<16x1xf32> to vector<16x256xf32>
      %37 = arith.subf %24, %36 : vector<16x256xf32>
      %cst_18 = arith.constant 9.99999974E-6 : f32
      %38 = vector.broadcast %cst_18 : f32 to vector<16x1xf32>
      %39 = arith.addf %35, %38 : vector<16x1xf32>
      %40 = math.rsqrt %39 : vector<16x1xf32>
      %41 = vector.broadcast %40 : vector<16x1xf32> to vector<16x256xf32>
      %42 = arith.mulf %37, %41 : vector<16x256xf32>
      %c0_19 = arith.constant 0 : index
      %c0_20 = arith.constant 0 : index
      %43 = vector.load %arg3[%c0_19, %c0_20] : memref<1x256xf32, #tpu.memory_space<vmem>>, vector<1x256xf32>
      %44 = vector.broadcast %43 : vector<1x256xf32> to vector<16x256xf32>
      %45 = arith.mulf %42, %44 : vector<16x256xf32>
      %c0_21 = arith.constant 0 : index
      %c0_22 = arith.constant 0 : index
      %46 = vector.load %arg4[%c0_21, %c0_22] : memref<1x256xf32, #tpu.memory_space<vmem>>, vector<1x256xf32>
      %47 = vector.broadcast %46 : vector<1x256xf32> to vector<16x256xf32>
      %48 = arith.addf %45, %47 : vector<16x256xf32>
      %49 = arith.truncf %48 : vector<16x256xf32> to vector<16x256xbf16>
      %c0_23 = arith.constant 0 : index
      %c0_24 = arith.constant 0 : index
      %50 = vector.load %arg8[%c0_23, %c0_24] : memref<16x256xbf16, #tpu.memory_space<vmem>>, vector<16x256xbf16>
      tpu.vector_store %arg8[%c0_23, %c0_24], %49 {strides = array<i32>} : memref<16x256xbf16, #tpu.memory_space<vmem>>, vector<16x256xbf16>,
    } else {
    }
    %c0 = arith.constant 0 : index
    %c0_1 = arith.constant 0 : index
    %3 = vector.load %arg8[%c0, %c0_1] : memref<16x256xbf16, #tpu.memory_space<vmem>>, vector<16x256xbf16>
    %c0_2 = arith.constant 0 : index
    %c0_3 = arith.constant 0 : index
    %4 = vector.load %arg5[%c0_2, %c0_3] : memref<256x512xbf16, #tpu.memory_space<vmem>>, vector<256x512xbf16>
    %cst = arith.constant dense<0.000000e+00> : vector<16x512xf32>
    %5 = tpu.matmul %3, %4, %cst {dimension_numbers = #tpu.dot_dimension_numbers<[1], [0], [0], [1], [0, 0, 1, 1], [], []>} : vector<16x256xbf16>, vector<256x512xbf16>, vector<16x512xf32> -> vector<16x512xf32>
    %c0_4 = arith.constant 0 : index
    %c0_5 = arith.constant 0 : index
    %6 = vector.load %arg6[%c0_4, %c0_5] : memref<1x512xf32, #tpu.memory_space<vmem>>, vector<1x512xf32>
    %7 = vector.broadcast %6 : vector<1x512xf32> to vector<16x512xf32>
    %8 = arith.addf %5, %7 : vector<16x512xf32>
    %cst_6 = arith.constant 5.000000e-01 : f32
    %9 = vector.broadcast %cst_6 : f32 to vector<16x512xf32>
    %10 = arith.mulf %9, %8 : vector<16x512xf32>
    %cst_7 = arith.constant 4.471500e-02 : f32
    %11 = vector.broadcast %cst_7 : f32 to vector<16x512xf32>
    %12 = arith.mulf %11, %8 : vector<16x512xf32>
    %13 = arith.mulf %12, %8 : vector<16x512xf32>
    %14 = arith.mulf %13, %8 : vector<16x512xf32>
    %15 = arith.addf %8, %14 : vector<16x512xf32>
    %cst_8 = arith.constant 0.797884583 : f32
    %16 = vector.broadcast %cst_8 : f32 to vector<16x512xf32>
    %17 = arith.mulf %16, %15 : vector<16x512xf32>
    %18 = math.tanh %17 : vector<16x512xf32>
    %cst_9 = arith.constant 1.000000e+00 : f32
    %19 = vector.broadcast %cst_9 : f32 to vector<16x512xf32>
    %20 = arith.addf %19, %18 : vector<16x512xf32>
    %21 = arith.mulf %10, %20 : vector<16x512xf32>
    %22 = arith.truncf %21 : vector<16x512xf32> to vector<16x512xbf16>
    %c0_10 = arith.constant 0 : index
    %c0_11 = arith.constant 0 : index
    %23 = vector.load %arg7[%c0_10, %c0_11] : memref<16x512xbf16, #tpu.memory_space<vmem>>, vector<16x512xbf16>
    tpu.vector_store %arg7[%c0_10, %c0_11], %22 {strides = array<i32>} : memref<16x512xbf16, #tpu.memory_space<vmem>>, vector<16x512xbf16>,
    return
  }
  func.func @transform_0(%arg0: i32, %arg1: i32) -> (i32, i32) {
    %c0_i32 = arith.constant 0 : i32
    %c0_i32_0 = arith.constant 0 : i32
    return %arg0, %c0_i32 : i32, i32
  }
  func.func @transform_1(%arg0: i32, %arg1: i32) -> (i32, i32) {
    %c0_i32 = arith.constant 0 : i32
    %c0_i32_0 = arith.constant 0 : i32
    %c0_i32_1 = arith.constant 0 : i32
    return %c0_i32, %c0_i32_0 : i32, i32
  }
  func.func @transform_2(%arg0: i32, %arg1: i32) -> (i32, i32) {
    %c0_i32 = arith.constant 0 : i32
    %c0_i32_0 = arith.constant 0 : i32
    %c0_i32_1 = arith.constant 0 : i32
    return %c0_i32, %c0_i32_0 : i32, i32
  }
  func.func @transform_3(%arg0: i32, %arg1: i32) -> (i32, i32) {
    %c0_i32 = arith.constant 0 : i32
    %c0_i32_0 = arith.constant 0 : i32
    return %c0_i32, %arg1 : i32, i32
  }
  func.func @transform_4(%arg0: i32, %arg1: i32) -> (i32, i32) {
    %c0_i32 = arith.constant 0 : i32
    %c0_i32_0 = arith.constant 0 : i32
    return %c0_i32, %arg1 : i32, i32
  }
  func.func @transform_5(%arg0: i32, %arg1: i32) -> (i32, i32) {
    %c0_i32 = arith.constant 0 : i32
    return %arg0, %arg1 : i32, i32
  }
}

module attributes {stable_mosaic.version = 11 : i64} {
  func.func @_ln_matmul_kernel(%arg0: i32, %arg1: i32, %arg2: memref<16x256xf32, #tpu.memory_space<vmem>>, %arg3: memref<1x256xf32, #tpu.memory_space<vmem>>, %arg4: memref<1x256xf32, #tpu.memory_space<vmem>>, %arg5: memref<256x768xbf16, #tpu.memory_space<vmem>>, %arg6: memref<1x768xf32, #tpu.memory_space<vmem>>, %arg7: memref<16x768xbf16, #tpu.memory_space<vmem>>, %arg8: memref<16x256xbf16, #tpu.memory_space<vmem>>) attributes {dimension_semantics = [#tpu.dimension_semantics<parallel>, #tpu.dimension_semantics<arbitrary>], iteration_bounds = array<i64: 1, 1>, scalar_prefetch = 0 : i64, scratch_operands = 1 : i64, tpu.core_type = #tpu.core_type<tc>, window_params = [{transform_indices = @transform_0, window_bounds = array<i64: 16, 256>}, {pipeline_mode = #tpu.pipeline_mode<synchronous>, transform_indices = @transform_1, window_bounds = array<i64: 1, 256>}, {pipeline_mode = #tpu.pipeline_mode<synchronous>, transform_indices = @transform_2, window_bounds = array<i64: 1, 256>}, {transform_indices = @transform_3, window_bounds = array<i64: 256, 768>}, {transform_indices = @transform_4, window_bounds = array<i64: 1, 768>}, {transform_indices = @transform_5, window_bounds = array<i64: 16, 768>}]} {
    %c0_i32 = arith.constant 0 : i32
    %0 = arith.cmpi eq, %arg1, %c0_i32 : i32
    %1 = arith.extui %0 : i1 to i32
    %c0_i32_0 = arith.constant 0 : i32
    %2 = arith.cmpi ne, %1, %c0_i32_0 : i32
    scf.if %2 {
      %c0_8 = arith.constant 0 : index
      %c0_9 = arith.constant 0 : index
      %11 = vector.load %arg2[%c0_8, %c0_9] : memref<16x256xf32, #tpu.memory_space<vmem>>, vector<16x256xf32>
      %cst_10 = arith.constant dense<0.000000e+00> : vector<16xf32>
      %12 = vector.multi_reduction <add>, %11, %cst_10 [1] : vector<16x256xf32> to vector<16xf32>
      %13 = vector.shape_cast %12 : vector<16xf32> to vector<16x1xf32>
      %cst_11 = arith.constant 2.560000e+02 : f32
      %14 = vector.broadcast %cst_11 : f32 to vector<16x1xf32>
      %15 = arith.divf %13, %14 : vector<16x1xf32>
      %16 = vector.broadcast %15 : vector<16x1xf32> to vector<16x256xf32>
      %17 = arith.subf %11, %16 : vector<16x256xf32>
      %18 = arith.mulf %17, %17 : vector<16x256xf32>
      %cst_12 = arith.constant dense<0.000000e+00> : vector<16xf32>
      %19 = vector.multi_reduction <add>, %18, %cst_12 [1] : vector<16x256xf32> to vector<16xf32>
      %20 = vector.shape_cast %19 : vector<16xf32> to vector<16x1xf32>
      %cst_13 = arith.constant 2.560000e+02 : f32
      %21 = vector.broadcast %cst_13 : f32 to vector<16x1xf32>
      %22 = arith.divf %20, %21 : vector<16x1xf32>
      %23 = vector.broadcast %15 : vector<16x1xf32> to vector<16x256xf32>
      %24 = arith.subf %11, %23 : vector<16x256xf32>
      %cst_14 = arith.constant 9.99999974E-6 : f32
      %25 = vector.broadcast %cst_14 : f32 to vector<16x1xf32>
      %26 = arith.addf %22, %25 : vector<16x1xf32>
      %27 = math.rsqrt %26 : vector<16x1xf32>
      %28 = vector.broadcast %27 : vector<16x1xf32> to vector<16x256xf32>
      %29 = arith.mulf %24, %28 : vector<16x256xf32>
      %c0_15 = arith.constant 0 : index
      %c0_16 = arith.constant 0 : index
      %30 = vector.load %arg3[%c0_15, %c0_16] : memref<1x256xf32, #tpu.memory_space<vmem>>, vector<1x256xf32>
      %31 = vector.broadcast %30 : vector<1x256xf32> to vector<16x256xf32>
      %32 = arith.mulf %29, %31 : vector<16x256xf32>
      %c0_17 = arith.constant 0 : index
      %c0_18 = arith.constant 0 : index
      %33 = vector.load %arg4[%c0_17, %c0_18] : memref<1x256xf32, #tpu.memory_space<vmem>>, vector<1x256xf32>
      %34 = vector.broadcast %33 : vector<1x256xf32> to vector<16x256xf32>
      %35 = arith.addf %32, %34 : vector<16x256xf32>
      %36 = arith.truncf %35 : vector<16x256xf32> to vector<16x256xbf16>
      %c0_19 = arith.constant 0 : index
      %c0_20 = arith.constant 0 : index
      %37 = vector.load %arg8[%c0_19, %c0_20] : memref<16x256xbf16, #tpu.memory_space<vmem>>, vector<16x256xbf16>
      tpu.vector_store %arg8[%c0_19, %c0_20], %36 {strides = array<i32>} : memref<16x256xbf16, #tpu.memory_space<vmem>>, vector<16x256xbf16>,
    } else {
    }
    %c0 = arith.constant 0 : index
    %c0_1 = arith.constant 0 : index
    %3 = vector.load %arg8[%c0, %c0_1] : memref<16x256xbf16, #tpu.memory_space<vmem>>, vector<16x256xbf16>
    %c0_2 = arith.constant 0 : index
    %c0_3 = arith.constant 0 : index
    %4 = vector.load %arg5[%c0_2, %c0_3] : memref<256x768xbf16, #tpu.memory_space<vmem>>, vector<256x768xbf16>
    %cst = arith.constant dense<0.000000e+00> : vector<16x768xf32>
    %5 = tpu.matmul %3, %4, %cst {dimension_numbers = #tpu.dot_dimension_numbers<[1], [0], [0], [1], [0, 0, 1, 1], [], []>} : vector<16x256xbf16>, vector<256x768xbf16>, vector<16x768xf32> -> vector<16x768xf32>
    %c0_4 = arith.constant 0 : index
    %c0_5 = arith.constant 0 : index
    %6 = vector.load %arg6[%c0_4, %c0_5] : memref<1x768xf32, #tpu.memory_space<vmem>>, vector<1x768xf32>
    %7 = vector.broadcast %6 : vector<1x768xf32> to vector<16x768xf32>
    %8 = arith.addf %5, %7 : vector<16x768xf32>
    %9 = arith.truncf %8 : vector<16x768xf32> to vector<16x768xbf16>
    %c0_6 = arith.constant 0 : index
    %c0_7 = arith.constant 0 : index
    %10 = vector.load %arg7[%c0_6, %c0_7] : memref<16x768xbf16, #tpu.memory_space<vmem>>, vector<16x768xbf16>
    tpu.vector_store %arg7[%c0_6, %c0_7], %9 {strides = array<i32>} : memref<16x768xbf16, #tpu.memory_space<vmem>>, vector<16x768xbf16>,
    return
  }
  func.func @transform_0(%arg0: i32, %arg1: i32) -> (i32, i32) {
    %c0_i32 = arith.constant 0 : i32
    %c0_i32_0 = arith.constant 0 : i32
    return %arg0, %c0_i32 : i32, i32
  }
  func.func @transform_1(%arg0: i32, %arg1: i32) -> (i32, i32) {
    %c0_i32 = arith.constant 0 : i32
    %c0_i32_0 = arith.constant 0 : i32
    %c0_i32_1 = arith.constant 0 : i32
    return %c0_i32, %c0_i32_0 : i32, i32
  }
  func.func @transform_2(%arg0: i32, %arg1: i32) -> (i32, i32) {
    %c0_i32 = arith.constant 0 : i32
    %c0_i32_0 = arith.constant 0 : i32
    %c0_i32_1 = arith.constant 0 : i32
    return %c0_i32, %c0_i32_0 : i32, i32
  }
  func.func @transform_3(%arg0: i32, %arg1: i32) -> (i32, i32) {
    %c0_i32 = arith.constant 0 : i32
    %c0_i32_0 = arith.constant 0 : i32
    return %c0_i32, %arg1 : i32, i32
  }
  func.func @transform_4(%arg0: i32, %arg1: i32) -> (i32, i32) {
    %c0_i32 = arith.constant 0 : i32
    %c0_i32_0 = arith.constant 0 : i32
    return %c0_i32, %arg1 : i32, i32
  }
  func.func @transform_5(%arg0: i32, %arg1: i32) -> (i32, i32) {
    %c0_i32 = arith.constant 0 : i32
    return %arg0, %arg1 : i32, i32
  }
}

module attributes {stable_mosaic.version = 11 : i64} {
  func.func @_matmul_residual_kernel(%arg0: i32, %arg1: i32, %arg2: i32, %arg3: memref<16x512xbf16, #tpu.memory_space<vmem>>, %arg4: memref<512x256xbf16, #tpu.memory_space<vmem>>, %arg5: memref<1x256xf32, #tpu.memory_space<vmem>>, %arg6: memref<16x256xf32, #tpu.memory_space<vmem>>, %arg7: memref<16x256xf32, #tpu.memory_space<vmem>>) attributes {dimension_semantics = [#tpu.dimension_semantics<parallel>, #tpu.dimension_semantics<parallel>, #tpu.dimension_semantics<arbitrary>], iteration_bounds = array<i64: 1, 1, 2>, scalar_prefetch = 0 : i64, scratch_operands = 0 : i64, tpu.core_type = #tpu.core_type<tc>, window_params = [{transform_indices = @transform_0, window_bounds = array<i64: 16, 512>}, {transform_indices = @transform_1, window_bounds = array<i64: 512, 256>}, {transform_indices = @transform_2, window_bounds = array<i64: 1, 256>}, {transform_indices = @transform_3, window_bounds = array<i64: 16, 256>}, {transform_indices = @transform_4, window_bounds = array<i64: 16, 256>}]} {
    %c0_i32 = arith.constant 0 : i32
    %0 = arith.cmpi eq, %arg2, %c0_i32 : i32
    %1 = arith.extui %0 : i1 to i32
    %c0_i32_0 = arith.constant 0 : i32
    %2 = arith.cmpi ne, %1, %c0_i32_0 : i32
    scf.if %2 {
      %c0_8 = arith.constant 0 : index
      %c0_9 = arith.constant 0 : index
      %9 = vector.load %arg6[%c0_8, %c0_9] : memref<16x256xf32, #tpu.memory_space<vmem>>, vector<16x256xf32>
      %c0_10 = arith.constant 0 : index
      %c0_11 = arith.constant 0 : index
      %10 = vector.load %arg5[%c0_10, %c0_11] : memref<1x256xf32, #tpu.memory_space<vmem>>, vector<1x256xf32>
      %11 = vector.broadcast %10 : vector<1x256xf32> to vector<16x256xf32>
      %12 = arith.addf %9, %11 : vector<16x256xf32>
      %c0_12 = arith.constant 0 : index
      %c0_13 = arith.constant 0 : index
      %13 = vector.load %arg7[%c0_12, %c0_13] : memref<16x256xf32, #tpu.memory_space<vmem>>, vector<16x256xf32>
      tpu.vector_store %arg7[%c0_12, %c0_13], %12 {strides = array<i32>} : memref<16x256xf32, #tpu.memory_space<vmem>>, vector<16x256xf32>,
    } else {
    }
    %c0 = arith.constant 0 : index
    %c0_1 = arith.constant 0 : index
    %3 = vector.load %arg7[%c0, %c0_1] : memref<16x256xf32, #tpu.memory_space<vmem>>, vector<16x256xf32>
    %c0_2 = arith.constant 0 : index
    %c0_3 = arith.constant 0 : index
    %4 = vector.load %arg3[%c0_2, %c0_3] : memref<16x512xbf16, #tpu.memory_space<vmem>>, vector<16x512xbf16>
    %c0_4 = arith.constant 0 : index
    %c0_5 = arith.constant 0 : index
    %5 = vector.load %arg4[%c0_4, %c0_5] : memref<512x256xbf16, #tpu.memory_space<vmem>>, vector<512x256xbf16>
    %cst = arith.constant dense<0.000000e+00> : vector<16x256xf32>
    %6 = tpu.matmul %4, %5, %cst {dimension_numbers = #tpu.dot_dimension_numbers<[1], [0], [0], [1], [0, 0, 1, 1], [], []>} : vector<16x512xbf16>, vector<512x256xbf16>, vector<16x256xf32> -> vector<16x256xf32>
    %7 = arith.addf %3, %6 : vector<16x256xf32>
    %c0_6 = arith.constant 0 : index
    %c0_7 = arith.constant 0 : index
    %8 = vector.load %arg7[%c0_6, %c0_7] : memref<16x256xf32, #tpu.memory_space<vmem>>, vector<16x256xf32>
    tpu.vector_store %arg7[%c0_6, %c0_7], %7 {strides = array<i32>} : memref<16x256xf32, #tpu.memory_space<vmem>>, vector<16x256xf32>,
    return
  }
  func.func @transform_0(%arg0: i32, %arg1: i32, %arg2: i32) -> (i32, i32) {
    %c0_i32 = arith.constant 0 : i32
    return %arg0, %arg2 : i32, i32
  }
  func.func @transform_1(%arg0: i32, %arg1: i32, %arg2: i32) -> (i32, i32) {
    %c0_i32 = arith.constant 0 : i32
    return %arg2, %arg1 : i32, i32
  }
  func.func @transform_2(%arg0: i32, %arg1: i32, %arg2: i32) -> (i32, i32) {
    %c0_i32 = arith.constant 0 : i32
    %c0_i32_0 = arith.constant 0 : i32
    return %c0_i32, %arg1 : i32, i32
  }
  func.func @transform_3(%arg0: i32, %arg1: i32, %arg2: i32) -> (i32, i32) {
    %c0_i32 = arith.constant 0 : i32
    return %arg0, %arg1 : i32, i32
  }
  func.func @transform_4(%arg0: i32, %arg1: i32, %arg2: i32) -> (i32, i32) {
    %c0_i32 = arith.constant 0 : i32
    return %arg0, %arg1 : i32, i32
  }
}

module attributes {stable_mosaic.version = 11 : i64} {
  func.func @_matmul_residual_kernel(%arg0: i32, %arg1: i32, %arg2: i32, %arg3: memref<16x256xbf16, #tpu.memory_space<vmem>>, %arg4: memref<256x256xbf16, #tpu.memory_space<vmem>>, %arg5: memref<1x256xf32, #tpu.memory_space<vmem>>, %arg6: memref<16x256xf32, #tpu.memory_space<vmem>>, %arg7: memref<16x256xf32, #tpu.memory_space<vmem>>) attributes {dimension_semantics = [#tpu.dimension_semantics<parallel>, #tpu.dimension_semantics<parallel>, #tpu.dimension_semantics<arbitrary>], iteration_bounds = array<i64: 1, 1, 1>, scalar_prefetch = 0 : i64, scratch_operands = 0 : i64, tpu.core_type = #tpu.core_type<tc>, window_params = [{transform_indices = @transform_0, window_bounds = array<i64: 16, 256>}, {transform_indices = @transform_1, window_bounds = array<i64: 256, 256>}, {transform_indices = @transform_2, window_bounds = array<i64: 1, 256>}, {transform_indices = @transform_3, window_bounds = array<i64: 16, 256>}, {transform_indices = @transform_4, window_bounds = array<i64: 16, 256>}]} {
    %c0_i32 = arith.constant 0 : i32
    %0 = arith.cmpi eq, %arg2, %c0_i32 : i32
    %1 = arith.extui %0 : i1 to i32
    %c0_i32_0 = arith.constant 0 : i32
    %2 = arith.cmpi ne, %1, %c0_i32_0 : i32
    scf.if %2 {
      %c0_8 = arith.constant 0 : index
      %c0_9 = arith.constant 0 : index
      %9 = vector.load %arg6[%c0_8, %c0_9] : memref<16x256xf32, #tpu.memory_space<vmem>>, vector<16x256xf32>
      %c0_10 = arith.constant 0 : index
      %c0_11 = arith.constant 0 : index
      %10 = vector.load %arg5[%c0_10, %c0_11] : memref<1x256xf32, #tpu.memory_space<vmem>>, vector<1x256xf32>
      %11 = vector.broadcast %10 : vector<1x256xf32> to vector<16x256xf32>
      %12 = arith.addf %9, %11 : vector<16x256xf32>
      %c0_12 = arith.constant 0 : index
      %c0_13 = arith.constant 0 : index
      %13 = vector.load %arg7[%c0_12, %c0_13] : memref<16x256xf32, #tpu.memory_space<vmem>>, vector<16x256xf32>
      tpu.vector_store %arg7[%c0_12, %c0_13], %12 {strides = array<i32>} : memref<16x256xf32, #tpu.memory_space<vmem>>, vector<16x256xf32>,
    } else {
    }
    %c0 = arith.constant 0 : index
    %c0_1 = arith.constant 0 : index
    %3 = vector.load %arg7[%c0, %c0_1] : memref<16x256xf32, #tpu.memory_space<vmem>>, vector<16x256xf32>
    %c0_2 = arith.constant 0 : index
    %c0_3 = arith.constant 0 : index
    %4 = vector.load %arg3[%c0_2, %c0_3] : memref<16x256xbf16, #tpu.memory_space<vmem>>, vector<16x256xbf16>
    %c0_4 = arith.constant 0 : index
    %c0_5 = arith.constant 0 : index
    %5 = vector.load %arg4[%c0_4, %c0_5] : memref<256x256xbf16, #tpu.memory_space<vmem>>, vector<256x256xbf16>
    %cst = arith.constant dense<0.000000e+00> : vector<16x256xf32>
    %6 = tpu.matmul %4, %5, %cst {dimension_numbers = #tpu.dot_dimension_numbers<[1], [0], [0], [1], [0, 0, 1, 1], [], []>} : vector<16x256xbf16>, vector<256x256xbf16>, vector<16x256xf32> -> vector<16x256xf32>
    %7 = arith.addf %3, %6 : vector<16x256xf32>
    %c0_6 = arith.constant 0 : index
    %c0_7 = arith.constant 0 : index
    %8 = vector.load %arg7[%c0_6, %c0_7] : memref<16x256xf32, #tpu.memory_space<vmem>>, vector<16x256xf32>
    tpu.vector_store %arg7[%c0_6, %c0_7], %7 {strides = array<i32>} : memref<16x256xf32, #tpu.memory_space<vmem>>, vector<16x256xf32>,
    return
  }
  func.func @transform_0(%arg0: i32, %arg1: i32, %arg2: i32) -> (i32, i32) {
    %c0_i32 = arith.constant 0 : i32
    return %arg0, %arg2 : i32, i32
  }
  func.func @transform_1(%arg0: i32, %arg1: i32, %arg2: i32) -> (i32, i32) {
    %c0_i32 = arith.constant 0 : i32
    return %arg2, %arg1 : i32, i32
  }
  func.func @transform_2(%arg0: i32, %arg1: i32, %arg2: i32) -> (i32, i32) {
    %c0_i32 = arith.constant 0 : i32
    %c0_i32_0 = arith.constant 0 : i32
    return %c0_i32, %arg1 : i32, i32
  }
  func.func @transform_3(%arg0: i32, %arg1: i32, %arg2: i32) -> (i32, i32) {
    %c0_i32 = arith.constant 0 : i32
    return %arg0, %arg1 : i32, i32
  }
  func.func @transform_4(%arg0: i32, %arg1: i32, %arg2: i32) -> (i32, i32) {
    %c0_i32 = arith.constant 0 : i32
    return %arg0, %arg1 : i32, i32
  }
}

module attributes {stable_mosaic.version = 11 : i64} {
  func.func @_lmhead_kernel(%arg0: i32, %arg1: i32, %arg2: memref<16x256xf32, #tpu.memory_space<vmem>>, %arg3: memref<1x256xf32, #tpu.memory_space<vmem>>, %arg4: memref<1x256xf32, #tpu.memory_space<vmem>>, %arg5: memref<512x256xbf16, #tpu.memory_space<vmem>>, %arg6: memref<16x1xi32, #tpu.memory_space<vmem>>, %arg7: memref<16x256xbf16, #tpu.memory_space<vmem>>, %arg8: memref<16x1xf32, #tpu.memory_space<vmem>>, %arg9: memref<16x1xi32, #tpu.memory_space<vmem>>) attributes {dimension_semantics = [#tpu.dimension_semantics<parallel>, #tpu.dimension_semantics<arbitrary>], iteration_bounds = array<i64: 1, 1>, scalar_prefetch = 0 : i64, scratch_operands = 3 : i64, tpu.core_type = #tpu.core_type<tc>, window_params = [{transform_indices = @transform_0, window_bounds = array<i64: 16, 256>}, {pipeline_mode = #tpu.pipeline_mode<synchronous>, transform_indices = @transform_1, window_bounds = array<i64: 1, 256>}, {pipeline_mode = #tpu.pipeline_mode<synchronous>, transform_indices = @transform_2, window_bounds = array<i64: 1, 256>}, {transform_indices = @transform_3, window_bounds = array<i64: 512, 256>}, {transform_indices = @transform_4, window_bounds = array<i64: 16, 1>}]} {
    %c0_i32 = arith.constant 0 : i32
    %0 = arith.cmpi eq, %arg1, %c0_i32 : i32
    %1 = arith.extui %0 : i1 to i32
    %c0_i32_0 = arith.constant 0 : i32
    %2 = arith.cmpi ne, %1, %c0_i32_0 : i32
    scf.if %2 {
      %c0_13 = arith.constant 0 : index
      %c0_14 = arith.constant 0 : index
      %27 = vector.load %arg2[%c0_13, %c0_14] : memref<16x256xf32, #tpu.memory_space<vmem>>, vector<16x256xf32>
      %cst_15 = arith.constant dense<0.000000e+00> : vector<16xf32>
      %28 = vector.multi_reduction <add>, %27, %cst_15 [1] : vector<16x256xf32> to vector<16xf32>
      %29 = vector.shape_cast %28 : vector<16xf32> to vector<16x1xf32>
      %cst_16 = arith.constant 2.560000e+02 : f32
      %30 = vector.broadcast %cst_16 : f32 to vector<16x1xf32>
      %31 = arith.divf %29, %30 : vector<16x1xf32>
      %32 = vector.broadcast %31 : vector<16x1xf32> to vector<16x256xf32>
      %33 = arith.subf %27, %32 : vector<16x256xf32>
      %34 = arith.mulf %33, %33 : vector<16x256xf32>
      %cst_17 = arith.constant dense<0.000000e+00> : vector<16xf32>
      %35 = vector.multi_reduction <add>, %34, %cst_17 [1] : vector<16x256xf32> to vector<16xf32>
      %36 = vector.shape_cast %35 : vector<16xf32> to vector<16x1xf32>
      %cst_18 = arith.constant 2.560000e+02 : f32
      %37 = vector.broadcast %cst_18 : f32 to vector<16x1xf32>
      %38 = arith.divf %36, %37 : vector<16x1xf32>
      %39 = vector.broadcast %31 : vector<16x1xf32> to vector<16x256xf32>
      %40 = arith.subf %27, %39 : vector<16x256xf32>
      %cst_19 = arith.constant 9.99999974E-6 : f32
      %41 = vector.broadcast %cst_19 : f32 to vector<16x1xf32>
      %42 = arith.addf %38, %41 : vector<16x1xf32>
      %43 = math.rsqrt %42 : vector<16x1xf32>
      %44 = vector.broadcast %43 : vector<16x1xf32> to vector<16x256xf32>
      %45 = arith.mulf %40, %44 : vector<16x256xf32>
      %c0_20 = arith.constant 0 : index
      %c0_21 = arith.constant 0 : index
      %46 = vector.load %arg3[%c0_20, %c0_21] : memref<1x256xf32, #tpu.memory_space<vmem>>, vector<1x256xf32>
      %47 = vector.broadcast %46 : vector<1x256xf32> to vector<16x256xf32>
      %48 = arith.mulf %45, %47 : vector<16x256xf32>
      %c0_22 = arith.constant 0 : index
      %c0_23 = arith.constant 0 : index
      %49 = vector.load %arg4[%c0_22, %c0_23] : memref<1x256xf32, #tpu.memory_space<vmem>>, vector<1x256xf32>
      %50 = vector.broadcast %49 : vector<1x256xf32> to vector<16x256xf32>
      %51 = arith.addf %48, %50 : vector<16x256xf32>
      %52 = arith.truncf %51 : vector<16x256xf32> to vector<16x256xbf16>
      %c0_24 = arith.constant 0 : index
      %c0_25 = arith.constant 0 : index
      %53 = vector.load %arg7[%c0_24, %c0_25] : memref<16x256xbf16, #tpu.memory_space<vmem>>, vector<16x256xbf16>
      tpu.vector_store %arg7[%c0_24, %c0_25], %52 {strides = array<i32>} : memref<16x256xbf16, #tpu.memory_space<vmem>>, vector<16x256xbf16>,
    } else {
    }
    %c0 = arith.constant 0 : index
    %c0_1 = arith.constant 0 : index
    %3 = vector.load %arg7[%c0, %c0_1] : memref<16x256xbf16, #tpu.memory_space<vmem>>, vector<16x256xbf16>
    %c0_2 = arith.constant 0 : index
    %c0_3 = arith.constant 0 : index
    %4 = vector.load %arg5[%c0_2, %c0_3] : memref<512x256xbf16, #tpu.memory_space<vmem>>, vector<512x256xbf16>
    %cst = arith.constant dense<0.000000e+00> : vector<16x512xf32>
    %5 = tpu.matmul %3, %4, %cst {dimension_numbers = #tpu.dot_dimension_numbers<[1], [1], [0], [0], [0, 0, 1, 0], [], []>} : vector<16x256xbf16>, vector<512x256xbf16>, vector<16x512xf32> -> vector<16x512xf32>
    %cst_4 = arith.constant dense<0xFF800000> : vector<16xf32>
    %6 = vector.multi_reduction <maximumf>, %5, %cst_4 [1] : vector<16x512xf32> to vector<16xf32>
    %7 = vector.shape_cast %6 : vector<16xf32> to vector<16x1xf32>
    %8 = tpu.iota {dimensions = array<i32: 1>} : vector<16x512xi32>
    %9 = vector.broadcast %7 : vector<16x1xf32> to vector<16x512xf32>
    %10 = arith.cmpf oeq, %5, %9 : vector<16x512xf32>
    %c512_i32 = arith.constant 512 : i32
    %11 = vector.broadcast %c512_i32 : i32 to vector<16x512xi32>
    %12 = arith.select %10, %8, %11 : vector<16x512xi1>, vector<16x512xi32>
    %cst_5 = arith.constant dense<2147483647> : vector<16xi32>
    %13 = vector.multi_reduction <minsi>, %12, %cst_5 [1] : vector<16x512xi32> to vector<16xi32>
    %14 = vector.shape_cast %13 : vector<16xi32> to vector<16x1xi32>
    %c512_i32_6 = arith.constant 512 : i32
    %15 = arith.muli %arg1, %c512_i32_6 : i32
    %16 = vector.broadcast %15 : i32 to vector<16x1xi32>
    %17 = arith.addi %14, %16 : vector<16x1xi32>
    %c0_i32_7 = arith.constant 0 : i32
    %18 = arith.cmpi eq, %arg1, %c0_i32_7 : i32
    %19 = arith.extui %18 : i1 to i32
    %c0_i32_8 = arith.constant 0 : i32
    %20 = arith.cmpi ne, %19, %c0_i32_8 : i32
    scf.if %20 {
      %c0_13 = arith.constant 0 : index
      %c0_14 = arith.constant 0 : index
      %27 = vector.load %arg8[%c0_13, %c0_14] : memref<16x1xf32, #tpu.memory_space<vmem>>, vector<16x1xf32>
      tpu.vector_store %arg8[%c0_13, %c0_14], %7 {strides = array<i32>} : memref<16x1xf32, #tpu.memory_space<vmem>>, vector<16x1xf32>,
      %c0_15 = arith.constant 0 : index
      %c0_16 = arith.constant 0 : index
      %28 = vector.load %arg9[%c0_15, %c0_16] : memref<16x1xi32, #tpu.memory_space<vmem>>, vector<16x1xi32>
      tpu.vector_store %arg9[%c0_15, %c0_16], %17 {strides = array<i32>} : memref<16x1xi32, #tpu.memory_space<vmem>>, vector<16x1xi32>,
    } else {
    }
    %c0_i32_9 = arith.constant 0 : i32
    %21 = arith.cmpi sgt, %arg1, %c0_i32_9 : i32
    %22 = arith.extui %21 : i1 to i32
    %c0_i32_10 = arith.constant 0 : i32
    %23 = arith.cmpi ne, %22, %c0_i32_10 : i32
    scf.if %23 {
      %c0_13 = arith.constant 0 : index
      %c0_14 = arith.constant 0 : index
      %27 = vector.load %arg8[%c0_13, %c0_14] : memref<16x1xf32, #tpu.memory_space<vmem>>, vector<16x1xf32>
      %28 = arith.cmpf ogt, %7, %27 : vector<16x1xf32>
      %c0_15 = arith.constant 0 : index
      %c0_16 = arith.constant 0 : index
      %29 = vector.load %arg8[%c0_15, %c0_16] : memref<16x1xf32, #tpu.memory_space<vmem>>, vector<16x1xf32>
      %30 = arith.select %28, %7, %29 : vector<16x1xi1>, vector<16x1xf32>
      %c0_17 = arith.constant 0 : index
      %c0_18 = arith.constant 0 : index
      %31 = vector.load %arg8[%c0_17, %c0_18] : memref<16x1xf32, #tpu.memory_space<vmem>>, vector<16x1xf32>
      tpu.vector_store %arg8[%c0_17, %c0_18], %30 {strides = array<i32>} : memref<16x1xf32, #tpu.memory_space<vmem>>, vector<16x1xf32>,
      %c0_19 = arith.constant 0 : index
      %c0_20 = arith.constant 0 : index
      %32 = vector.load %arg9[%c0_19, %c0_20] : memref<16x1xi32, #tpu.memory_space<vmem>>, vector<16x1xi32>
      %33 = arith.select %28, %17, %32 : vector<16x1xi1>, vector<16x1xi32>
      %c0_21 = arith.constant 0 : index
      %c0_22 = arith.constant 0 : index
      %34 = vector.load %arg9[%c0_21, %c0_22] : memref<16x1xi32, #tpu.memory_space<vmem>>, vector<16x1xi32>
      tpu.vector_store %arg9[%c0_21, %c0_22], %33 {strides = array<i32>} : memref<16x1xi32, #tpu.memory_space<vmem>>, vector<16x1xi32>,
    } else {
    }
    %c0_i32_11 = arith.constant 0 : i32
    %24 = arith.cmpi eq, %arg1, %c0_i32_11 : i32
    %25 = arith.extui %24 : i1 to i32
    %c0_i32_12 = arith.constant 0 : i32
    %26 = arith.cmpi ne, %25, %c0_i32_12 : i32
    scf.if %26 {
      %c0_13 = arith.constant 0 : index
      %c0_14 = arith.constant 0 : index
      %27 = vector.load %arg9[%c0_13, %c0_14] : memref<16x1xi32, #tpu.memory_space<vmem>>, vector<16x1xi32>
      %c0_15 = arith.constant 0 : index
      %c0_16 = arith.constant 0 : index
      %28 = vector.load %arg6[%c0_15, %c0_16] : memref<16x1xi32, #tpu.memory_space<vmem>>, vector<16x1xi32>
      tpu.vector_store %arg6[%c0_15, %c0_16], %27 {strides = array<i32>} : memref<16x1xi32, #tpu.memory_space<vmem>>, vector<16x1xi32>,
    } else {
    }
    return
  }
  func.func @transform_0(%arg0: i32, %arg1: i32) -> (i32, i32) {
    %c0_i32 = arith.constant 0 : i32
    %c0_i32_0 = arith.constant 0 : i32
    return %arg0, %c0_i32 : i32, i32
  }
  func.func @transform_1(%arg0: i32, %arg1: i32) -> (i32, i32) {
    %c0_i32 = arith.constant 0 : i32
    %c0_i32_0 = arith.constant 0 : i32
    %c0_i32_1 = arith.constant 0 : i32
    return %c0_i32, %c0_i32_0 : i32, i32
  }
  func.func @transform_2(%arg0: i32, %arg1: i32) -> (i32, i32) {
    %c0_i32 = arith.constant 0 : i32
    %c0_i32_0 = arith.constant 0 : i32
    %c0_i32_1 = arith.constant 0 : i32
    return %c0_i32, %c0_i32_0 : i32, i32
  }
  func.func @transform_3(%arg0: i32, %arg1: i32) -> (i32, i32) {
    %c0_i32 = arith.constant 0 : i32
    %c0_i32_0 = arith.constant 0 : i32
    return %arg1, %c0_i32 : i32, i32
  }
  func.func @transform_4(%arg0: i32, %arg1: i32) -> (i32, i32) {
    %c0_i32 = arith.constant 0 : i32
    %c0_i32_0 = arith.constant 0 : i32
    return %arg0, %c0_i32 : i32, i32
  }
}

</mosaic_0001>

<bundles_post_ra>
// kernel: gpt2_forward.12
= control target key start
LH: loop header
LB: loop body
LE: loop exit
PB: predicated region body
PF: predicated region fallthrough
CT: control target
= control target key end

     0   :  { %s652_s12 = smov 0   ;;  %s654_s13 = smov 0   ;;  %s729_s0 = inlined_call_operand.vmem [shape: bf16[2,8,768], index: 0, kind: input, shape index: {}, may-alias: {0,1,2}]   ;;  %s730_s1 = inlined_call_operand.vmem [shape: bf16[2,8,768], index: 1, kind: input, shape index: {}, may-alias: {0,1,2}]   ;;  %s731_s2 = inlined_call_operand.vmem [shape: bf16[2,8,768], index: 2, kind: input, shape index: {}, may-alias: {0,1,2}]   ;;  %s732_s3 = inlined_call_operand.vmem [shape: bf16[2,8,256], index: 3, kind: output, shape index: {}]  }
   0x1   :  { %s656_s14 = smov 0   ;;  %s658_s15 = smov 0  }
   0x2   :  { %s660_s16 = smov 0  }
   0x3 LB: > { %s22_s17 = sadd.s32 1, %s620_s14  ;;  %s25_s18 = sadd.s32 1, %s624_s15  ;;  %s628_s16 = sphi %s660_s16, %s13_s16   ;;  %s624_s15 = sphi %s658_s15, %s736_s15   ;;  %s620_s14 = sphi %s656_s14, %s735_s14   ;;  %s616_s13 = sphi %s654_s13, %s734_s13   ;;  %s612_s12 = sphi %s652_s12, %s733_s12  }
   0x4   : > { %p23_p0 = scmp.ge.s32.totalorder %s22_s17, 2  ;;  %p518_p1 = scmp.ge.s32.totalorder %s628_s16, 1 }
   0x5   : > { %p194_p2 = scmp.lt.s32.totalorder %s628_s16, 5 }
   0x6   : > { %s738_s17 = smov (%p23_p0, %s22_s17), 0  ;;  %s740_s18 = smov (!%p23_p0, %s25_s18), %s624_s15 }
   0x7   : > { %p195_p3 = pnand %p518_p1, %p194_p2  ;;  %p27_p4 = scmp.ge.s32.totalorder %s740_s18, 2 }
   0x8   : > { %p242_p5 = scmp.lt.s32.totalorder (!%p195_p3), %s616_s13, 1  ;;  %s250_s19 = sadd.s32 (!%p195_p3), 2, %s612_s12 }
   0x9   : > { %s742_s18 = smov (%p27_p4, %s740_s18), 0  ;;  %198 = sbr.rel (%p195_p3) target bundleno = 735 (0x2df), region = 32 }
   0xa   : > { %p253_p6 = scmp.lt.s32.totalorder (!%p195_p3), %s250_s19, 5  ;;  %p244_p7 = scmp.lt.s32.totalorder (!%p195_p3), %s612_s12, 5 }
   0xb   : > { %s260_s5 = sadd.s32 (!%p195_p3), 4, %s612_s12  ;;  %p272_p9 = scmp.lt.s32.totalorder (!%p195_p3), %s612_s12, 1 }
   0xc   : > { %p263_p8 = scmp.lt.s32.totalorder (!%p195_p3), %s260_s5, 5 }
   0xe   : > { %v630_v0 = vmov 0.0   ;;  %vm631_vm0 = vmmov 0   ;;  %s744_s13 = smov (!%p242_p5, %s616_s13), 1  ;;  %s746_s19 = smov (!%p253_p6, %s250_s19), 5  ;;  %v324_v4 = vlaneseq  ;;  %vm330_vm2 = vcmask 64512  }
   0xf   : > { %531 = vmatprep.subr.bf16.mxu0 %v630_v0  ;;  %533 = vmatprep.mubr.msk.bf16.mxu0 %vm631_vm0, %v630_v0  ;;  %s689_s20 = smul.u32 6, %s744_s13  ;;  %s748_s5 = smov (!%p263_p8, %s260_s5), 5  ;;  %vm346_vm3 = vcmask 1043456  }
  0x10   : > { %537 = vmatprep.subr.bf16.mxu1 %v630_v0  ;;  %539 = vmatprep.mubr.msk.bf16.mxu1 %vm631_vm0, %v630_v0  ;;  %s245_s21 = scalar_select %p244_p7, %s612_s12, 5  ;;  %v325_v5 = vshrl.u32 %v324_v4, 7  ;;  %v327_v6 = vand.u32 127, %v324_v4 }
  0x11   : > { %s256_s22 = sadd.s32 %s689_s20, %s746_s19  ;;  %s266_s6 = sadd.s32 %s689_s20, %s748_s5 }
  0x12   : > { %s520_s23 = sshll.u32 %s256_s22, 2  ;;  %s247_s24 = sadd.s32 %s689_s20, %s245_s21  ;;  %vm328_vm1 = vcmp.le.s32.totalorder %v327_v6, %v325_v5 }
  0x13   : > { %s258_s27 = scalar_lea.vmem %s730_s1, %s520_s23  ;;  %s519_s28 = sshll.u32 %s247_s24, 2 }
  0x14   : > { %v282_v1 = vld [vmem:[%s258_s27] sm:$0xf]  ;;  %s249_s4 = scalar_lea.vmem %s729_s0, %s519_s28  ;;  %s521_s7 = sshll.u32 %s266_s6, 2 }
  0x15   : > { %532 = vmatpush3.bf16.xpose.msra.mxu0 %v282_v1  ;;  %v280_v2 = vld [vmem:[%s249_s4] sm:$0xf]  ;;  %s268_s10 = scalar_lea.vmem %s731_s2, %s521_s7  ;;  %s750_s12 = smov (!%p272_p9, %s612_s12), 1 }
  0x16   : > { %v281_v3 = vmul.bf16 1035287989, %v280_v2  ;;  %v283_v18 = vld [vmem:[%s268_s10] sm:$0xf]  ;;  %s522_s11 = sshll.u32 %s744_s13, 1 }
  0x17   : > { %v348_v19 = vsel %vm346_vm3, %v283_v18, 0  ;;  %s275_s19 = sadd.s32 %s522_s11, %s750_s12 }
  0x18   : > { %538 = vmatpush3.bf16.msra.mxu1 %v348_v19  ;;  %s523_s20 = sshll.u32 %s275_s19, 2 }
  0x19   : > { %s277_s23 = scalar_lea.vmem %s732_s3, %s523_s20 }
  0x1c   : > { %534 = vmatmul.mubr.bf16.vlgmr.msra.gmra.mxu0 %v281_v3 }
  0xdc   : > { %v318_v7 = vpop.f32.mrf.mxu0 }
  0xdd   : > { %v329_v8 = vsel %vm328_vm1, %v318_v7, -1e+30 }
  0xde   : > { %v535_v9 = vpop.f32.mrf.mxu0  ;;  %v331_v10 = vsel %vm330_vm2, %v329_v8, -inf }
  0xdf   : > { %332 = vmax.xlane.f32.xlu0 %v331_v10 }
  0xe0   : > { %v321_v11 = vpop.f32.mrf.mxu0 }
  0xe2   : > { %v536_v12 = vpop.f32.mrf.mxu0 }
 0x168   : > { %v333_v13 = vpop.xlane.xlu0 %332 }
 0x169   : > { %v334_v14 = vsub.f32 %v329_v8, %v333_v13 }
 0x16b   : > { %v335_v15 = vmul.f32 1.442695, %v334_v14 }
 0x16d   : > { %586 = vpow2.f32 %v335_v15 }
 0x17a   : > { %v587_v16 = vpop.eup %586 }
 0x17b   : > { %v337_v17 = vsel %vm330_vm2, %v587_v16, 0.0 }
 0x17c   : > { %338 = vadd.xlane.f32.xlu0 %v337_v17 }
 0x205   : > { %v339_v20 = vpop.xlane.xlu0 %338 }
 0x206   : > { %588 = vrcp.f32 %v339_v20 }
 0x213   : > { %v589_v21 = vpop.eup %588 }
 0x214   : > { %v341_v22 = vmul.f32 %v589_v21, %v587_v16 }
 0x216   : > { %v342_v23 = vpack.c.bf16 %v341_v22, %v341_v22 }
 0x218   : > { %540 = vmatmul.mubr.msk.bf16.vlgmr.msra.gmra.mxu1 %vm330_vm2, %v342_v23 }
 0x2d8   : > { %v384_v24 = vpop.f32.mrf.mxu1 }
 0x2d9   : > { %v390_v25 = vpack.c.bf16 %v384_v24, %v384_v24 }
 0x2da   : > { %v541_v26 = vpop.f32.mrf.mxu1 }
 0x2db   : > { %391 = vst [vmem:[%s277_s23] sm:$0xf] %v390_v25 }
 0x2dc   : > { %v387_v27 = vpop.f32.mrf.mxu1 }
 0x2de   : > { %v542_v28 = vpop.f32.mrf.mxu1 }
 0x2df PF: > { %s13_s16 = sadd.s32 1, %s628_s16   ;;  %s733_s12 = smov %s620_s14 }
 0x2e0   : > { %p10_p10 = scmp.ge.s32.totalorder %s13_s16, 6   ;;  %s734_s13 = smov %s624_s15 }
 0x2e1   : > { %s735_s14 = smov %s738_s17  ;;  %s736_s15 = smov %s742_s18 }
 0x2e2   :  { %12 = sbr.rel (!%p10_p10) target bundleno = 3 (0x3), region = 68 }

// kernel: gpt2_forward.13
= control target key start
LH: loop header
LB: loop body
LE: loop exit
PB: predicated region body
PF: predicated region fallthrough
CT: control target
= control target key end

     0   :  { %9 = vsyncpa [#allocation3], 0  ;;  %s429_s15 = smov [#allocation2]   ;;  %s584_s0 = inlined_call_operand.vmem [shape: bf16[16,256], index: 0, kind: input, shape index: {}]   ;;  %s585_s1 = inlined_call_operand.vmem [shape: bf16[256,256], index: 1, kind: input, shape index: {}]   ;;  %s586_s2 = inlined_call_operand.hbm [shape: f32[1,256], index: 2, kind: input, shape index: {}]   ;;  %s587_s3 = inlined_call_operand.vmem [shape: f32[16,256], index: 3, kind: input, shape index: {}]   ;;  %s588_s4 = inlined_call_operand.vmem [shape: f32[16,256], index: 4, kind: output, shape index: {}]  }
   0x1   :  { %s20_s16 = sshll.u32 %s429_s15, 4  ;;  %s21_s16 = int_to_ptr.vmem [resolvable:$true] %s20_s16 }
   0x2   :  { %s415_s17 = scalar_lea.vmem %s21_s16, 32  ;;  %p420_p1 = scmp.lt.s32.totalorder %s21_s16, %s21_s16 }
   0x3   :  { %p416_p0 = scmp.ne.s32.totalorder %s21_s16, %s415_s17  ;;  %p421_p2 = scmp.lt.s32.totalorder %s415_s17, %s415_s17 }
   0x5   :  { %p422_p3 = por %p421_p2, %p420_p1 }
   0x7   :  { %p423_p4 = pnand %p422_p3, %p416_p0 }
   0x9   :  { %426 = shalt.err (!%p423_p4)
}
   0xa   :  { %23 = dma.hbm_to_vmem [thread:$0]  %s586_s2, 32, %s21_s16, [#allocation3]  }
   0xb   :  { %427 = dma.done.wait [#allocation3], 32  }
   0xc   :  { %428 = vsyncadd [#allocation3], 4294967264  ;;  %v356_v0 = vld [vmem:[%s585_s1 + $0x74] ss:$8 sps:$4 sm:$0xff]   ;;  %v358_v1 = vld [vmem:[%s585_s1 + $0x70] ss:$8 sps:$4 sm:$0xff]   ;;  %v39_v34 = vlaneseq }
   0xd   :  { %265 = vmatprep.subr.bf16.mxu0 %v356_v0  ;;  %v359_v2 = vld [vmem:[%s585_s1 + $0x64] ss:$8 sps:$4 sm:$0xff]   ;;  %v361_v3 = vld [vmem:[%s585_s1 + $0x60] ss:$8 sps:$4 sm:$0xff]   ;;  %v362_v4 = vld [vmem:[%s585_s1 + $0x54] ss:$8 sps:$4 sm:$0xff]  }
   0xe   :  { %266 = vmatpush1.bf16.msra.mxu0 %v358_v1  ;;  %v364_v5 = vld [vmem:[%s585_s1 + $0x50] ss:$8 sps:$4 sm:$0xff]   ;;  %v365_v6 = vld [vmem:[%s585_s1 + $0x44] ss:$8 sps:$4 sm:$0xff]   ;;  %v367_v7 = vld [vmem:[%s585_s1 + $0x40] ss:$8 sps:$4 sm:$0xff]  }
   0xf   :  { %267 = vmatprep.subr.bf16.mxu0 %v359_v2  ;;  %v368_v8 = vld [vmem:[%s585_s1 + $0x34] ss:$8 sps:$4 sm:$0xff]   ;;  %v370_v9 = vld [vmem:[%s585_s1 + $0x30] ss:$8 sps:$4 sm:$0xff]   ;;  %v371_v10 = vld [vmem:[%s585_s1 + $0x24] ss:$8 sps:$4 sm:$0xff]  }
  0x10   :  { %v373_v11 = vld [vmem:[%s585_s1 + $0x20] ss:$8 sps:$4 sm:$0xff]   ;;  %v374_v12 = vld [vmem:[%s585_s1 + $0x14] ss:$8 sps:$4 sm:$0xff]   ;;  %v406_v13 = vld [vmem:[%s584_s0 + $0x4] ss:$8 sps:$4 sm:$0xff]  }
  0x11   :  { %v376_v14 = vld [vmem:[%s585_s1 + $0x10] ss:$8 sps:$4 sm:$0xff]   ;;  %v377_v15 = vld [vmem:[%s585_s1 + $0x4] ss:$8 sps:$4 sm:$0xff]   ;;  %297 = vmatprep.mubr.bf16.mxu0 %v406_v13  ;;  %v379_v16 = vld [vmem:[%s585_s1] ss:$8 sps:$4 sm:$0xff]  }
  0x12   :  { %268 = vmatpush1.bf16.msra.mxu0 %v361_v3  ;;  %v380_v17 = vld [vmem:[%s585_s1 + $0xf4] ss:$8 sps:$4 sm:$0xff]   ;;  %v382_v18 = vld [vmem:[%s585_s1 + $0xf0] ss:$8 sps:$4 sm:$0xff]   ;;  %v383_v19 = vld [vmem:[%s585_s1 + $0xe4] ss:$8 sps:$4 sm:$0xff]  }
  0x13   :  { %269 = vmatprep.subr.bf16.mxu0 %v362_v4  ;;  %v385_v20 = vld [vmem:[%s585_s1 + $0xe0] ss:$8 sps:$4 sm:$0xff]   ;;  %v386_v21 = vld [vmem:[%s585_s1 + $0xd4] ss:$8 sps:$4 sm:$0xff]   ;;  %v388_v22 = vld [vmem:[%s585_s1 + $0xd0] ss:$8 sps:$4 sm:$0xff]  }
  0x14   :  { %v389_v23 = vld [vmem:[%s585_s1 + $0xc4] ss:$8 sps:$4 sm:$0xff]   ;;  %v391_v24 = vld [vmem:[%s585_s1 + $0xc0] ss:$8 sps:$4 sm:$0xff]   ;;  %v392_v25 = vld [vmem:[%s585_s1 + $0xb4] ss:$8 sps:$4 sm:$0xff]  }
  0x15   :  { %v394_v26 = vld [vmem:[%s585_s1 + $0xb0] ss:$8 sps:$4 sm:$0xff]   ;;  %v395_v27 = vld [vmem:[%s585_s1 + $0xa4] ss:$8 sps:$4 sm:$0xff]   ;;  %v397_v28 = vld [vmem:[%s585_s1 + $0xa0] ss:$8 sps:$4 sm:$0xff]  }
  0x16   :  { %270 = vmatpush1.bf16.msra.mxu0 %v364_v5  ;;  %v398_v29 = vld [vmem:[%s585_s1 + $0x94] ss:$8 sps:$4 sm:$0xff]   ;;  %v400_v30 = vld [vmem:[%s585_s1 + $0x90] ss:$8 sps:$4 sm:$0xff]   ;;  %v401_v31 = vld [vmem:[%s585_s1 + $0x84] ss:$8 sps:$4 sm:$0xff]  }
  0x17   :  { %271 = vmatprep.subr.bf16.mxu0 %v365_v6  ;;  %v403_v32 = vld [vmem:[%s585_s1 + $0x80] ss:$8 sps:$4 sm:$0xff]   ;;  %v40_v35 = vshrl.u32 %v39_v34, 7  ;;  %v35_v44 = vld [vmem:[%s587_s3 + $0x10] sm:$0xff]  ;;  %v36_v47 = vld [vmem:[%s587_s3 + $0x18] sm:$0xff] }
  0x18   :  { %v404_v33 = vld [vmem:[%s584_s0] ss:$8 sps:$4 sm:$0xff]  }
  0x19   :  { %v41_v36 = vsub.s32 0, %v40_v35  ;;  %v37_v37 = vld [vmem:[#allocation2] sm:$0x3]  ;;  %v45_v38 = vsub.s32 1, %v40_v35  ;;  %v34_v42 = vld [vmem:[%s587_s3 + $0x8] sm:$0xff] }
  0x1a   :  { %272 = vmatpush1.bf16.msra.mxu0 %v367_v7  ;;  %v33_v40 = vld [vmem:[%s587_s3] sm:$0xff] }
  0x1b   :  { %273 = vmatprep.subr.bf16.mxu0 %v368_v8  ;;  %v42_v39 = vrot.slane %v37_v37, %v41_v36  ;;  %v46_v41 = vrot.slane %v37_v37, %v45_v38 }
  0x1d   :  { %v49_v43 = vadd.f32 %v42_v39, %v33_v40  ;;  %v50_v45 = vadd.f32 %v46_v41, %v34_v42  ;;  %v51_v49 = vadd.f32 %v42_v39, %v35_v44  ;;  %v52_v52 = vadd.f32 %v46_v41, %v36_v47 }
  0x1e   :  { %274 = vmatpush1.bf16.msra.mxu0 %v370_v9 }
  0x1f   :  { %275 = vmatprep.subr.bf16.mxu0 %v371_v10 }
  0x22   :  { %276 = vmatpush1.bf16.msra.mxu0 %v373_v11 }
  0x23   :  { %277 = vmatprep.subr.bf16.mxu0 %v374_v12 }
  0x26   :  { %278 = vmatpush1.bf16.msra.mxu0 %v376_v14 }
  0x27   :  { %279 = vmatprep.subr.bf16.mxu0 %v377_v15 }
  0x2a   :  { %280 = vmatpush1.bf16.msra.mxu0 %v379_v16 }
  0x2b   :  { %281 = vmatprep.subr.bf16.mxu0 %v380_v17 }
  0x2e   :  { %282 = vmatpush2.bf16.msra.mxu0 %v382_v18 }
  0x2f   :  { %283 = vmatprep.subr.bf16.mxu0 %v383_v19 }
  0x32   :  { %284 = vmatpush2.bf16.msra.mxu0 %v385_v20 }
  0x33   :  { %285 = vmatprep.subr.bf16.mxu0 %v386_v21 }
  0x36   :  { %286 = vmatpush2.bf16.msra.mxu0 %v388_v22 }
  0x37   :  { %287 = vmatprep.subr.bf16.mxu0 %v389_v23 }
  0x3a   :  { %288 = vmatpush2.bf16.msra.mxu0 %v391_v24 }
  0x3b   :  { %289 = vmatprep.subr.bf16.mxu0 %v392_v25 }
  0x3e   :  { %290 = vmatpush2.bf16.msra.mxu0 %v394_v26 }
  0x3f   :  { %291 = vmatprep.subr.bf16.mxu0 %v395_v27 }
  0x42   :  { %292 = vmatpush2.bf16.msra.mxu0 %v397_v28 }
  0x43   :  { %293 = vmatprep.subr.bf16.mxu0 %v398_v29 }
  0x46   :  { %294 = vmatpush2.bf16.msra.mxu0 %v400_v30 }
  0x47   :  { %295 = vmatprep.subr.bf16.mxu0 %v401_v31 }
  0x4a   :  { %296 = vmatpush2.bf16.msra.mxu0 %v403_v32 }
  0x4d   :  { %298 = vmatmul.mubr.bf16.vlgmr.msra.gmra.mxu0 %v404_v33 }
 0x10d   :  { %v299_v46 = vpop.f32.mrf.mxu0 }
 0x10e   :  { %v308_v48 = vadd.f32 %v299_v46, %v49_v43 }
 0x10f   :  { %v301_v50 = vpop.f32.mrf.mxu0 }
 0x110   :  { %312 = vst [vmem:[%s588_s4] sm:$0xff] %v308_v48  ;;  %v309_v51 = vadd.f32 %v301_v50, %v50_v45 }
 0x111   :  { %v303_v53 = vpop.f32.mrf.mxu0 }
 0x112   :  { %313 = vst [vmem:[%s588_s4 + $0x8] sm:$0xff] %v309_v51  ;;  %v310_v54 = vadd.f32 %v303_v53, %v51_v49 }
 0x113   :  { %v305_v55 = vpop.f32.mrf.mxu0 }
 0x114   :  { %314 = vst [vmem:[%s588_s4 + $0x10] sm:$0xff] %v310_v54  ;;  %v311_v56 = vadd.f32 %v305_v55, %v52_v52 }
 0x116   :  { %315 = vst [vmem:[%s588_s4 + $0x18] sm:$0xff] %v311_v56 }
 0x117   :  { %320 = vsyncpa [#allocation3], 1 }

// kernel: gpt2_forward.11
= control target key start
LH: loop header
LB: loop body
LE: loop exit
PB: predicated region body
PF: predicated region fallthrough
CT: control target
= control target key end

     0   :  { %10 = vsyncpa [#allocation4], 0  ;;  %s1447_s0 = inlined_call_operand.vmem [shape: f32[16,256], index: 0, kind: input, shape index: {}]   ;;  %s1448_s1 = inlined_call_operand.hbm [shape: f32[1,256], index: 1, kind: input, shape index: {}]   ;;  %s1449_s2 = inlined_call_operand.hbm [shape: f32[1,256], index: 2, kind: input, shape index: {}]   ;;  %s1450_s3 = inlined_call_operand.hbm [shape: bf16[256,768], index: 3, kind: input, shape index: {}]   ;;  %s1451_s4 = inlined_call_operand.hbm [shape: f32[1,768], index: 4, kind: input, shape index: {}]   ;;  %s1452_s5 = inlined_call_operand.vmem [shape: bf16[16,768], index: 5, kind: output, shape index: {}]  }
   0x1   :  { %11 = vsyncpa [#allocation6], 0 }
   0x2   :  { %12 = vsyncpa [#allocation9], 0  ;;  %s1310_s18 = smov [#allocation5]   ;;  %s1311_s20 = smov [#allocation3]  }
   0x3   :  { %s31_s19 = sshll.u32 %s1310_s18, 4  ;;  %s21_s21 = sshll.u32 %s1311_s20, 4  ;;  %s32_s19 = int_to_ptr.vmem [resolvable:$true] %s31_s19  ;;  %s22_s21 = int_to_ptr.vmem [resolvable:$true] %s21_s21 }
   0x4   :  { %s1232_s22 = scalar_lea.vmem %s32_s19, 32  ;;  %p1237_p1 = scmp.lt.s32.totalorder %s32_s19, %s32_s19 }
   0x5   :  { %p1233_p0 = scmp.ne.s32.totalorder %s32_s19, %s1232_s22  ;;  %p1238_p2 = scmp.lt.s32.totalorder %s1232_s22, %s1232_s22 }
   0x7   :  { %p1239_p3 = por %p1238_p2, %p1237_p1 }
   0x9   :  { %p1240_p4 = pnand %p1239_p3, %p1233_p0 }
   0xb   :  { %1243 = shalt.err (!%p1240_p4)
}
   0xc   :  { %34 = dma.hbm_to_vmem [thread:$0]  %s1449_s2, 32, %s32_s19, [#allocation6]  }
   0xd   :  { %s1252_s25 = scalar_lea.vmem %s22_s21, 32  ;;  %p1257_p6 = scmp.lt.s32.totalorder %s22_s21, %s22_s21 }
   0xe   :  { %p1253_p5 = scmp.ne.s32.totalorder %s22_s21, %s1252_s25  ;;  %p1258_p7 = scmp.lt.s32.totalorder %s1252_s25, %s1252_s25 }
  0x10   :  { %p1259_p8 = por %p1258_p7, %p1257_p6 }
  0x12   :  { %p1260_p9 = pnand %p1259_p8, %p1253_p5 }
  0x14   :  { %1263 = shalt.err (!%p1260_p9)
}
  0x15   :  { %24 = dma.hbm_to_vmem [thread:$0]  %s1448_s1, 32, %s22_s21, [#allocation4]  }
  0x16   :  { %s1312_s28 = smov [#allocation7]  }
  0x17   :  { %s40_s29 = sshll.u32 %s1312_s28, 4  ;;  %s41_s29 = int_to_ptr.vmem [resolvable:$true] %s40_s29 }
  0x18   :  { %s1272_s30 = scalar_lea.vmem %s41_s29, 12288  ;;  %p1277_p11 = scmp.lt.s32.totalorder %s41_s29, %s41_s29 }
  0x19   :  { %p1273_p10 = scmp.ne.s32.totalorder %s41_s29, %s1272_s30  ;;  %p1278_p12 = scmp.lt.s32.totalorder %s1272_s30, %s1272_s30 }
  0x1b   :  { %p1279_p13 = por %p1278_p12, %p1277_p11 }
  0x1d   :  { %p1280_p0 = pnand %p1279_p13, %p1273_p10 }
  0x1f   :  { %1283 = shalt.err (!%p1280_p0)
}
  0x20   :  { %s1313_s2 = smov 384   ;;  %s1314_s6 = smov 24  }
  0x21   :  { %46 = dma.hbm_to_vmem [thread:$0]  %s1450_s3, 12288, %s41_s29, [#allocation6], %s1313_s2, %s1313_s2, %s1314_s6  }
  0x22   :  { %s1315_s9 = smov [#allocation8]  }
  0x23   :  { %s53_s10 = sshll.u32 %s1315_s9, 4  ;;  %s54_s10 = int_to_ptr.vmem [resolvable:$true] %s53_s10 }
  0x24   :  { %s1292_s1 = scalar_lea.vmem %s54_s10, 96  ;;  %p1297_p2 = scmp.lt.s32.totalorder %s54_s10, %s54_s10 }
  0x25   :  { %p1293_p1 = scmp.ne.s32.totalorder %s54_s10, %s1292_s1  ;;  %p1298_p3 = scmp.lt.s32.totalorder %s1292_s1, %s1292_s1 }
  0x27   :  { %p1299_p4 = por %p1298_p3, %p1297_p2 }
  0x29   :  { %p1300_p5 = pnand %p1299_p4, %p1293_p1 }
  0x2b   :  { %1303 = shalt.err (!%p1300_p5)
}
  0x2c   :  { %56 = dma.hbm_to_vmem [thread:$0]  %s1451_s4, 96, %s54_s10, [#allocation9]  }
  0x2d   :  { %1304 = dma.done.wait [#allocation4], 32  }
  0x2e   :  { %1305 = vsyncadd [#allocation4], 4294967264 }
  0x2f   :  { %1306 = dma.done.wait [#allocation6], 12320  }
  0x30   :  { %1307 = vsyncadd [#allocation6], 4294954976 }
  0x31   :  { %1308 = dma.done.wait [#allocation9], 96  }
  0x32   :  { %1309 = vsyncadd [#allocation9], 4294967200  ;;  %v1361_v0 = vld [vmem:[%s1447_s0] sm:$0xff]  ;;  %v1366_v1 = vld [vmem:[%s1447_s0 + $0x8] sm:$0xff] }
  0x33   :  { %v1371_v2 = vld [vmem:[%s1447_s0 + $0x10] sm:$0xff]  ;;  %v77_v3 = vadd.f32 %v1366_v1, %v1361_v0  ;;  %v1378_v4 = vld [vmem:[%s1447_s0 + $0x18] sm:$0xff]  ;;  %v1082_v10 = vld [vmem:[#allocation7 + $0x124] ss:$24 sps:$4 sm:$0xff]  }
  0x34   :  { %v80_v5 = vadd.f32 %v1378_v4, %v1371_v2  ;;  %v1076_v6 = vld [vmem:[#allocation7 + $0x154] ss:$24 sps:$4 sm:$0xff]   ;;  %v1078_v7 = vld [vmem:[#allocation7 + $0x150] ss:$24 sps:$4 sm:$0xff]   ;;  %v1084_v12 = vld [vmem:[#allocation7 + $0x120] ss:$24 sps:$4 sm:$0xff]  }
  0x35   :  { %78 = vadd.xlane.f32.xlu0 %v77_v3  ;;  %v1079_v8 = vld [vmem:[#allocation7 + $0x15c] ss:$24 sps:$4 sm:$0xff]   ;;  %v1081_v9 = vld [vmem:[#allocation7 + $0x158] ss:$24 sps:$4 sm:$0xff]   ;;  %776 = vmatprep.subr.bf16.mxu0 %v1076_v6  ;;  %v1085_v11 = vld [vmem:[#allocation7 + $0x12c] ss:$24 sps:$4 sm:$0xff]  }
  0x36   :  { %819 = vmatprep.subr.bf16.mxu1 %v1079_v8  ;;  %777 = vmatpush1.bf16.msra.mxu0 %v1078_v7  ;;  %v1087_v13 = vld [vmem:[#allocation7 + $0x128] ss:$24 sps:$4 sm:$0xff]   ;;  %v1088_v14 = vld [vmem:[#allocation7 + $0xf4] ss:$24 sps:$4 sm:$0xff]   ;;  %v1093_v17 = vld [vmem:[#allocation7 + $0xf8] ss:$24 sps:$4 sm:$0xff]  }
  0x37   :  { %820 = vmatpush1.bf16.msra.mxu1 %v1081_v9  ;;  %778 = vmatprep.subr.bf16.mxu0 %v1082_v10  ;;  %v1091_v15 = vld [vmem:[#allocation7 + $0xfc] ss:$24 sps:$4 sm:$0xff]   ;;  %v1090_v16 = vld [vmem:[#allocation7 + $0xf0] ss:$24 sps:$4 sm:$0xff]   ;;  %v1097_v19 = vld [vmem:[#allocation7 + $0xcc] ss:$24 sps:$4 sm:$0xff]  }
  0x38   :  { %821 = vmatprep.subr.bf16.mxu1 %v1085_v11  ;;  %v1094_v18 = vld [vmem:[#allocation7 + $0xc4] ss:$24 sps:$4 sm:$0xff]   ;;  %v1096_v20 = vld [vmem:[#allocation7 + $0xc0] ss:$24 sps:$4 sm:$0xff]   ;;  %v1100_v22 = vld [vmem:[#allocation7 + $0x94] ss:$24 sps:$4 sm:$0xff]  }
  0x39   :  { %81 = vadd.xlane.f32.xlu0 %v80_v5  ;;  %v1099_v21 = vld [vmem:[#allocation7 + $0xc8] ss:$24 sps:$4 sm:$0xff]   ;;  %v1103_v23 = vld [vmem:[#allocation7 + $0x9c] ss:$24 sps:$4 sm:$0xff]   ;;  %v1105_v25 = vld [vmem:[#allocation7 + $0x98] ss:$24 sps:$4 sm:$0xff]  }
  0x3a   :  { %779 = vmatpush1.bf16.msra.mxu0 %v1084_v12  ;;  %v1102_v24 = vld [vmem:[#allocation7 + $0x90] ss:$24 sps:$4 sm:$0xff]   ;;  %v1106_v26 = vld [vmem:[#allocation7 + $0x64] ss:$24 sps:$4 sm:$0xff]   ;;  %v1108_v28 = vld [vmem:[#allocation7 + $0x60] ss:$24 sps:$4 sm:$0xff]  }
  0x3b   :  { %822 = vmatpush1.bf16.msra.mxu1 %v1087_v13  ;;  %780 = vmatprep.subr.bf16.mxu0 %v1088_v14  ;;  %v1109_v27 = vld [vmem:[#allocation7 + $0x6c] ss:$24 sps:$4 sm:$0xff]   ;;  %v1111_v29 = vld [vmem:[#allocation7 + $0x68] ss:$24 sps:$4 sm:$0xff]   ;;  %v1115_v31 = vld [vmem:[#allocation7 + $0x3c] ss:$24 sps:$4 sm:$0xff]  }
  0x3c   :  { %823 = vmatprep.subr.bf16.mxu1 %v1091_v15  ;;  %v1112_v30 = vld [vmem:[#allocation7 + $0x34] ss:$24 sps:$4 sm:$0xff]   ;;  %v1114_v32 = vld [vmem:[#allocation7 + $0x30] ss:$24 sps:$4 sm:$0xff]   ;;  %v1118_v34 = vld [vmem:[#allocation7 + $0x4] ss:$24 sps:$4 sm:$0xff]  }
  0x3d   :  { %v1117_v33 = vld [vmem:[#allocation7 + $0x38] ss:$24 sps:$4 sm:$0xff]   ;;  %v1121_v35 = vld [vmem:[#allocation7 + $0xc] ss:$24 sps:$4 sm:$0xff]   ;;  %v1123_v37 = vld [vmem:[#allocation7 + $0x8] ss:$24 sps:$4 sm:$0xff]  }
  0x3e   :  { %781 = vmatpush1.bf16.msra.mxu0 %v1090_v16  ;;  %v1120_v36 = vld [vmem:[#allocation7] ss:$24 sps:$4 sm:$0xff]   ;;  %v1124_v38 = vld [vmem:[#allocation7 + $0x2d4] ss:$24 sps:$4 sm:$0xff]   ;;  %v1126_v40 = vld [vmem:[#allocation7 + $0x2d0] ss:$24 sps:$4 sm:$0xff]  }
  0x3f   :  { %824 = vmatpush1.bf16.msra.mxu1 %v1093_v17  ;;  %782 = vmatprep.subr.bf16.mxu0 %v1094_v18  ;;  %v1127_v39 = vld [vmem:[#allocation7 + $0x2dc] ss:$24 sps:$4 sm:$0xff]   ;;  %v1129_v55 = vld [vmem:[#allocation7 + $0x2d8] ss:$24 sps:$4 sm:$0xff]   ;;  %v1133_v58 = vld [vmem:[#allocation7 + $0x2ac] ss:$24 sps:$4 sm:$0xff]  }
  0x40   :  { %825 = vmatprep.subr.bf16.mxu1 %v1097_v19  ;;  %v1130_v56 = vld [vmem:[#allocation7 + $0x2a4] ss:$24 sps:$4 sm:$0xff]   ;;  %v1132_v57 = vld [vmem:[#allocation7 + $0x2a0] ss:$24 sps:$4 sm:$0xff]   ;;  %v1136_v60 = vld [vmem:[#allocation7 + $0x274] ss:$24 sps:$4 sm:$0xff]  }
  0x41   :  { %v1135_v59 = vld [vmem:[#allocation7 + $0x2a8] ss:$24 sps:$4 sm:$0xff]   ;;  %v1139_v62 = vld [vmem:[#allocation7 + $0x27c] ss:$24 sps:$4 sm:$0xff]   ;;  %v1141_v63 = vld [vmem:[#allocation7 + $0x278] ss:$24 sps:$4 sm:$0xff]  }
  0x42   :  { %783 = vmatpush1.bf16.msra.mxu0 %v1096_v20  ;;  %v1138_v61 = vld [vmem:[#allocation7 + $0x270] ss:$24 sps:$4 sm:$0xff]   ;;  %v1151_v5 = vld [vmem:[#allocation7 + $0x21c] ss:$24 sps:$4 sm:$0xff]   ;;  %v1157_v9 = vld [vmem:[#allocation7 + $0x1ec] ss:$24 sps:$4 sm:$0xff]  }
  0x43   :  { %826 = vmatpush1.bf16.msra.mxu1 %v1099_v21  ;;  %784 = vmatprep.subr.bf16.mxu0 %v1100_v22  ;;  %v1147_v3 = vld [vmem:[#allocation7 + $0x248] ss:$24 sps:$4 sm:$0xff]   ;;  %v1153_v7 = vld [vmem:[#allocation7 + $0x218] ss:$24 sps:$4 sm:$0xff]   ;;  %v1154_v8 = vld [vmem:[#allocation7 + $0x1e4] ss:$24 sps:$4 sm:$0xff]  }
  0x44   :  { %827 = vmatprep.subr.bf16.mxu1 %v1103_v23  ;;  %v1150_v6 = vld [vmem:[#allocation7 + $0x210] ss:$24 sps:$4 sm:$0xff]   ;;  %v1156_v10 = vld [vmem:[#allocation7 + $0x1e0] ss:$24 sps:$4 sm:$0xff]   ;;  %v1160_v12 = vld [vmem:[#allocation7 + $0x1b4] ss:$24 sps:$4 sm:$0xff]  }
  0x45   :  { %v1159_v11 = vld [vmem:[#allocation7 + $0x1e8] ss:$24 sps:$4 sm:$0xff]   ;;  %v1163_v13 = vld [vmem:[#allocation7 + $0x1bc] ss:$24 sps:$4 sm:$0xff]   ;;  %v1165_v15 = vld [vmem:[#allocation7 + $0x1b8] ss:$24 sps:$4 sm:$0xff]  }
  0x46   :  { %785 = vmatpush1.bf16.msra.mxu0 %v1102_v24  ;;  %v1162_v14 = vld [vmem:[#allocation7 + $0x1b0] ss:$24 sps:$4 sm:$0xff]   ;;  %v1166_v16 = vld [vmem:[#allocation7 + $0x184] ss:$24 sps:$4 sm:$0xff]   ;;  %v1168_v18 = vld [vmem:[#allocation7 + $0x180] ss:$24 sps:$4 sm:$0xff]  }
  0x47   :  { %828 = vmatpush1.bf16.msra.mxu1 %v1105_v25  ;;  %786 = vmatprep.subr.bf16.mxu0 %v1106_v26  ;;  %v1169_v17 = vld [vmem:[#allocation7 + $0x18c] ss:$24 sps:$4 sm:$0xff]   ;;  %v1171_v19 = vld [vmem:[#allocation7 + $0x188] ss:$24 sps:$4 sm:$0xff]  }
  0x48   :  { %829 = vmatprep.subr.bf16.mxu1 %v1109_v27  ;;  %v1174_v20 = vld [vmem:[#allocation7 + $0x164] ss:$24 sps:$4 sm:$0xff]   ;;  %v112_v27 = vlaneseq }
  0x4a   :  { %787 = vmatpush1.bf16.msra.mxu0 %v1108_v28  ;;  %v1402_v28 = vshrl.u32 %v112_v27, 7 }
  0x4b   :  { %830 = vmatpush1.bf16.msra.mxu1 %v1111_v29  ;;  %788 = vmatprep.subr.bf16.mxu0 %v1112_v30 }
  0x4c   :  { %831 = vmatprep.subr.bf16.mxu1 %v1115_v31  ;;  %v1405_v29 = vsub.s32 1, %v1402_v28  ;;  %v1408_v30 = vsub.s32 0, %v1402_v28  ;;  %v110_v31 = vld [vmem:[#allocation3] sm:$0x3] }
  0x4e   :  { %789 = vmatpush1.bf16.msra.mxu0 %v1114_v32 }
  0x4f   :  { %832 = vmatpush1.bf16.msra.mxu1 %v1117_v33  ;;  %790 = vmatprep.subr.bf16.mxu0 %v1118_v34  ;;  %v119_v34 = vrot.slane %v110_v31, %v1405_v29 }
  0x50   :  { %833 = vmatprep.subr.bf16.mxu1 %v1121_v35  ;;  %v126_v35 = vld [vmem:[#allocation5] sm:$0x3] }
  0x52   :  { %791 = vmatpush1.bf16.msra.mxu0 %v1120_v36 }
  0x53   :  { %834 = vmatpush1.bf16.msra.mxu1 %v1123_v37  ;;  %792 = vmatprep.subr.bf16.mxu0 %v1124_v38  ;;  %v115_v37 = vrot.slane %v110_v31, %v1408_v30 }
  0x54   :  { %835 = vmatprep.subr.bf16.mxu1 %v1127_v39  ;;  %v135_v39 = vrot.slane %v126_v35, %v1405_v29 }
  0x56   :  { %793 = vmatpush2.bf16.msra.mxu0 %v1126_v40  ;;  %v131_v40 = vrot.slane %v126_v35, %v1408_v30 }
  0x57   :  { %836 = vmatpush2.bf16.msra.mxu1 %v1129_v55  ;;  %794 = vmatprep.subr.bf16.mxu0 %v1130_v56  ;;  %v1177_v56 = vld [vmem:[#allocation7 + $0x134] ss:$24 sps:$4 sm:$0xff]  }
  0x58   :  { %837 = vmatprep.subr.bf16.mxu1 %v1133_v58  ;;  %v1183_v58 = vld [vmem:[#allocation7 + $0xd4] ss:$24 sps:$4 sm:$0xff]  }
  0x5a   :  { %795 = vmatpush2.bf16.msra.mxu0 %v1132_v57  ;;  %v1178_v57 = vld [vmem:[#allocation7 + $0x100] ss:$24 sps:$4 sm:$0xff]  }
  0x5b   :  { %838 = vmatpush2.bf16.msra.mxu1 %v1135_v59  ;;  %796 = vmatprep.subr.bf16.mxu0 %v1136_v60  ;;  %v1181_v59 = vld [vmem:[#allocation7 + $0xd0] ss:$24 sps:$4 sm:$0xff]   ;;  %v1186_v60 = vld [vmem:[#allocation7 + $0xa4] ss:$24 sps:$4 sm:$0xff]  }
  0x5c   :  { %839 = vmatprep.subr.bf16.mxu1 %v1139_v62  ;;  %v1189_v62 = vld [vmem:[#allocation7 + $0x74] ss:$24 sps:$4 sm:$0xff]  }
  0x5e   :  { %797 = vmatpush2.bf16.msra.mxu0 %v1138_v61  ;;  %v1184_v61 = vld [vmem:[#allocation7 + $0xa0] ss:$24 sps:$4 sm:$0xff]  }
  0x5f   :  { %840 = vmatpush2.bf16.msra.mxu1 %v1141_v63  ;;  %v1187_v63 = vld [vmem:[#allocation7 + $0x70] ss:$24 sps:$4 sm:$0xff]  }
  0xbe   :  { %v79_v41 = vpop.xlane.xlu0 %78 }
  0xbf   :  { %v84_v42 = vmul.f32 0.00390625, %v79_v41 }
  0xc1   :  { %v1383_v43 = vsub.f32 %v1361_v0, %v84_v42  ;;  %v1386_v44 = vsub.f32 %v1366_v1, %v84_v42  ;;  %v1142_v0 = vld [vmem:[#allocation7 + $0x244] ss:$24 sps:$4 sm:$0xff]   ;;  %v1144_v1 = vld [vmem:[#allocation7 + $0x240] ss:$24 sps:$4 sm:$0xff]  }
  0xc2   :  { %v82_v45 = vpop.xlane.xlu0 %81  ;;  %798 = vmatprep.subr.bf16.mxu0 %v1142_v0  ;;  %v1192_v0 = vld [vmem:[#allocation7 + $0x44] ss:$24 sps:$4 sm:$0xff]  }
  0xc3   :  { %v85_v46 = vmul.f32 0.00390625, %v82_v45  ;;  %v90_v47 = vmul.f32 %v1383_v43, %v1383_v43  ;;  %v91_v48 = vmul.f32 %v1386_v44, %v1386_v44  ;;  %799 = vmatpush2.bf16.msra.mxu0 %v1144_v1  ;;  %v1190_v1 = vld [vmem:[#allocation7 + $0x40] ss:$24 sps:$4 sm:$0xff]  }
  0xc5   :  { %v1393_v49 = vsub.f32 %v1371_v2, %v85_v46  ;;  %v1396_v50 = vsub.f32 %v1378_v4, %v85_v46  ;;  %v94_v51 = vadd.f32 %v91_v48, %v90_v47  ;;  %v1145_v2 = vld [vmem:[#allocation7 + $0x24c] ss:$24 sps:$4 sm:$0xff]  }
  0xc6   :  { %v1148_v4 = vld [vmem:[#allocation7 + $0x214] ss:$24 sps:$4 sm:$0xff]   ;;  %841 = vmatprep.subr.bf16.mxu1 %v1145_v2 }
  0xc7   :  { %95 = vadd.xlane.f32.xlu1 %v94_v51  ;;  %v92_v52 = vmul.f32 %v1393_v49, %v1393_v49  ;;  %v93_v53 = vmul.f32 %v1396_v50, %v1396_v50  ;;  %842 = vmatpush2.bf16.msra.mxu1 %v1147_v3  ;;  %v1195_v2 = vld [vmem:[#allocation7 + $0x14] ss:$24 sps:$4 sm:$0xff]   ;;  %v1193_v3 = vld [vmem:[#allocation7 + $0x10] ss:$24 sps:$4 sm:$0xff]  }
  0xc8   :  { %800 = vmatprep.subr.bf16.mxu0 %v1148_v4  ;;  %843 = vmatprep.subr.bf16.mxu1 %v1151_v5  ;;  %v1198_v4 = vld [vmem:[#allocation7 + $0x2e4] ss:$24 sps:$4 sm:$0xff]   ;;  %v1196_v5 = vld [vmem:[#allocation7 + $0x2e0] ss:$24 sps:$4 sm:$0xff]  }
  0xc9   :  { %v97_v54 = vadd.f32 %v93_v53, %v92_v52  ;;  %801 = vmatpush2.bf16.msra.mxu0 %v1150_v6  ;;  %v1201_v6 = vld [vmem:[#allocation7 + $0x2b4] ss:$24 sps:$4 sm:$0xff]  }
  0xca   :  { %802 = vmatprep.subr.bf16.mxu0 %v1154_v8  ;;  %v1204_v8 = vld [vmem:[#allocation7 + $0x284] ss:$24 sps:$4 sm:$0xff]  }
  0xcb   :  { %98 = vadd.xlane.f32.xlu1 %v97_v54  ;;  %844 = vmatpush2.bf16.msra.mxu1 %v1153_v7  ;;  %v1172_v54 = vld [vmem:[#allocation7 + $0x160] ss:$24 sps:$4 sm:$0xff]   ;;  %v1199_v7 = vld [vmem:[#allocation7 + $0x2b0] ss:$24 sps:$4 sm:$0xff]  }
  0xcc   :  { %845 = vmatprep.subr.bf16.mxu1 %v1157_v9  ;;  %v1202_v9 = vld [vmem:[#allocation7 + $0x280] ss:$24 sps:$4 sm:$0xff]  }
  0xcd   :  { %803 = vmatpush2.bf16.msra.mxu0 %v1156_v10  ;;  %v1207_v10 = vld [vmem:[#allocation7 + $0x254] ss:$24 sps:$4 sm:$0xff]  }
  0xce   :  { %804 = vmatprep.subr.bf16.mxu0 %v1160_v12  ;;  %v1210_v12 = vld [vmem:[#allocation7 + $0x224] ss:$24 sps:$4 sm:$0xff]  }
  0xcf   :  { %846 = vmatpush2.bf16.msra.mxu1 %v1159_v11  ;;  %v1205_v11 = vld [vmem:[#allocation7 + $0x250] ss:$24 sps:$4 sm:$0xff]  }
  0xd0   :  { %847 = vmatprep.subr.bf16.mxu1 %v1163_v13  ;;  %v1208_v13 = vld [vmem:[#allocation7 + $0x220] ss:$24 sps:$4 sm:$0xff]  }
  0xd1   :  { %805 = vmatpush2.bf16.msra.mxu0 %v1162_v14  ;;  %v1213_v14 = vld [vmem:[#allocation7 + $0x1f4] ss:$24 sps:$4 sm:$0xff]  }
  0xd2   :  { %806 = vmatprep.subr.bf16.mxu0 %v1166_v16  ;;  %v1216_v16 = vld [vmem:[#allocation7 + $0x1c4] ss:$24 sps:$4 sm:$0xff]  }
  0xd3   :  { %848 = vmatpush2.bf16.msra.mxu1 %v1165_v15  ;;  %v1211_v15 = vld [vmem:[#allocation7 + $0x1f0] ss:$24 sps:$4 sm:$0xff]  }
  0xd4   :  { %849 = vmatprep.subr.bf16.mxu1 %v1169_v17  ;;  %v1214_v17 = vld [vmem:[#allocation7 + $0x1c0] ss:$24 sps:$4 sm:$0xff]  }
  0xd5   :  { %807 = vmatpush2.bf16.msra.mxu0 %v1168_v18  ;;  %v1219_v18 = vld [vmem:[#allocation7 + $0x194] ss:$24 sps:$4 sm:$0xff]  }
  0xd6   :  { %862 = vmatprep.subr.bf16.mxu0 %v1174_v20  ;;  %v266_v20 = vsub.s32 2, %v1402_v28 }
  0xd7   :  { %850 = vmatpush2.bf16.msra.mxu1 %v1171_v19  ;;  %v1217_v19 = vld [vmem:[#allocation7 + $0x190] ss:$24 sps:$4 sm:$0xff]  }
 0x150   :  { %v96_v21 = vpop.xlane.xlu1 %95 }
 0x151   :  { %v100_v22 = vmul.f32 0.00390625, %v96_v21  ;;  %v270_v21 = vsub.s32 3, %v1402_v28 }
 0x153   :  { %v102_v23 = vadd.f32 1e-05, %v100_v22  ;;  %v254_v22 = vld [vmem:[#allocation8] sm:$0x3f] }
 0x154   :  { %v99_v24 = vpop.xlane.xlu1 %98 }
 0x155   :  { %1220 = vrsqrt.f32 %v102_v23  ;;  %v101_v25 = vmul.f32 0.00390625, %v99_v24  ;;  %v259_v23 = vrot.slane %v254_v22, %v1408_v30  ;;  %v267_v24 = vrot.slane %v254_v22, %v266_v20 }
 0x157   :  { %v103_v26 = vadd.f32 1e-05, %v101_v25  ;;  %v263_v25 = vrot.slane %v254_v22, %v1405_v29 }
 0x159   :  { %1222 = vrsqrt.f32 %v103_v26  ;;  %v271_v26 = vrot.slane %v254_v22, %v270_v21 }
 0x162   :  { %v1221_v32 = vpop.eup %1220 }
 0x163   :  { %v107_v33 = vmul.f32 %v1221_v32, %v1386_v44  ;;  %v106_v36 = vmul.f32 %v1221_v32, %v1383_v43 }
 0x165   :  { %v123_v42 = vmul.f32 %v119_v34, %v107_v33  ;;  %v122_v46 = vmul.f32 %v115_v37, %v106_v36 }
 0x166   :  { %v1223_v38 = vpop.eup %1222 }
 0x167   :  { %v109_v41 = vmul.f32 %v1223_v38, %v1396_v50  ;;  %v108_v45 = vmul.f32 %v1223_v38, %v1393_v49  ;;  %v139_v48 = vadd.f32 %v135_v39, %v123_v42  ;;  %v138_v52 = vadd.f32 %v131_v40, %v122_v46  ;;  %v1175_v49 = vld [vmem:[#allocation7 + $0x130] ss:$24 sps:$4 sm:$0xff]   ;;  %v1180_v50 = vld [vmem:[#allocation7 + $0x104] ss:$24 sps:$4 sm:$0xff]  }
 0x169   :  { %v125_v47 = vmul.f32 %v119_v34, %v109_v41  ;;  %v124_v44 = vmul.f32 %v115_v37, %v108_v45 }
 0x16b   :  { %v141_v51 = vadd.f32 %v135_v39, %v125_v47  ;;  %v140_v53 = vadd.f32 %v131_v40, %v124_v44 }
 0x16d   :  { %v1069_v43 = vpack.c.bf16 %v141_v51, %v139_v48  ;;  %v1418_v55 = vpack.c.bf16 %v140_v53, %v138_v52  ;;  %v274_v51 = vsub.s32 4, %v1402_v28  ;;  %v278_v52 = vsub.s32 5, %v1402_v28 }
 0x16f   :  { %808 = vmatprep.mubr.bf16.mxu0 %v1069_v43  ;;  %851 = vmatprep.mubr.bf16.mxu1 %v1069_v43  ;;  %v275_v53 = vrot.slane %v254_v22, %v274_v51 }
 0x170   :  { %809 = vmatmul.mubr.bf16.vlgmr.msra.gmra.mxu0 %v1418_v55  ;;  %852 = vmatmul.mubr.bf16.vlgmr.msra.gmra.mxu1 %v1418_v55 }
 0x171   :  { %863 = vmatpush1.bf16.msra.mxu0 %v1172_v54  ;;  %894 = vmatprep.mubr.bf16.mxu0 %v1069_v43  ;;  %v279_v43 = vrot.slane %v254_v22, %v278_v52 }
 0x172   :  { %864 = vmatprep.subr.bf16.mxu0 %v1177_v56 }
 0x175   :  { %865 = vmatpush1.bf16.msra.mxu0 %v1175_v49 }
 0x176   :  { %866 = vmatprep.subr.bf16.mxu0 %v1180_v50 }
 0x179   :  { %867 = vmatpush1.bf16.msra.mxu0 %v1178_v57 }
 0x17a   :  { %868 = vmatprep.subr.bf16.mxu0 %v1183_v58 }
 0x17d   :  { %869 = vmatpush1.bf16.msra.mxu0 %v1181_v59 }
 0x17e   :  { %870 = vmatprep.subr.bf16.mxu0 %v1186_v60 }
 0x181   :  { %871 = vmatpush1.bf16.msra.mxu0 %v1184_v61 }
 0x182   :  { %872 = vmatprep.subr.bf16.mxu0 %v1189_v62 }
 0x185   :  { %873 = vmatpush1.bf16.msra.mxu0 %v1187_v63 }
 0x186   :  { %874 = vmatprep.subr.bf16.mxu0 %v1192_v0 }
 0x189   :  { %875 = vmatpush1.bf16.msra.mxu0 %v1190_v1 }
 0x18a   :  { %876 = vmatprep.subr.bf16.mxu0 %v1195_v2 }
 0x18d   :  { %877 = vmatpush1.bf16.msra.mxu0 %v1193_v3 }
 0x18e   :  { %878 = vmatprep.subr.bf16.mxu0 %v1198_v4 }
 0x191   :  { %879 = vmatpush2.bf16.msra.mxu0 %v1196_v5 }
 0x192   :  { %880 = vmatprep.subr.bf16.mxu0 %v1201_v6 }
 0x195   :  { %881 = vmatpush2.bf16.msra.mxu0 %v1199_v7 }
 0x196   :  { %882 = vmatprep.subr.bf16.mxu0 %v1204_v8 }
 0x199   :  { %883 = vmatpush2.bf16.msra.mxu0 %v1202_v9 }
 0x19a   :  { %884 = vmatprep.subr.bf16.mxu0 %v1207_v10 }
 0x19d   :  { %885 = vmatpush2.bf16.msra.mxu0 %v1205_v11 }
 0x19e   :  { %886 = vmatprep.subr.bf16.mxu0 %v1210_v12 }
 0x1a1   :  { %887 = vmatpush2.bf16.msra.mxu0 %v1208_v13 }
 0x1a2   :  { %888 = vmatprep.subr.bf16.mxu0 %v1213_v14 }
 0x1a5   :  { %889 = vmatpush2.bf16.msra.mxu0 %v1211_v15 }
 0x1a6   :  { %890 = vmatprep.subr.bf16.mxu0 %v1216_v16 }
 0x1a9   :  { %891 = vmatpush2.bf16.msra.mxu0 %v1214_v17 }
 0x1aa   :  { %892 = vmatprep.subr.bf16.mxu0 %v1219_v18 }
 0x1ad   :  { %893 = vmatpush2.bf16.msra.mxu0 %v1217_v19 }
 0x1b0   :  { %895 = vmatmul.mubr.bf16.vlgmr.msra.gmra.mxu0 %v1418_v55 }
 0x230   :  { %v810_v27 = vpop.f32.mrf.mxu0  ;;  %v853_v31 = vpop.f32.mrf.mxu1 }
 0x231   :  { %v811_v34 = vadd.f32 %v810_v27, %v259_v23  ;;  %v854_v35 = vadd.f32 %v853_v31, %v267_v24 }
 0x232   :  { %v812_v32 = vpop.f32.mrf.mxu0  ;;  %v855_v33 = vpop.f32.mrf.mxu1 }
 0x233   :  { %v813_v36 = vadd.f32 %v812_v32, %v263_v25  ;;  %v856_v37 = vadd.f32 %v855_v33, %v271_v26 }
 0x234   :  { %v814_v38 = vpop.f32.mrf.mxu0  ;;  %v857_v39 = vpop.f32.mrf.mxu1 }
 0x235   :  { %v1062_v40 = vpack.c.bf16 %v813_v36, %v811_v34  ;;  %v1063_v41 = vpack.c.bf16 %v856_v37, %v854_v35  ;;  %v815_v29 = vadd.f32 %v814_v38, %v259_v23  ;;  %v858_v30 = vadd.f32 %v857_v39, %v267_v24 }
 0x236   :  { %v816_v42 = vpop.f32.mrf.mxu0  ;;  %v859_v45 = vpop.f32.mrf.mxu1 }
 0x237   :  { %941 = vst [vmem:[%s1452_s5] sm:$0xff] %v1062_v40  ;;  %942 = vst [vmem:[%s1452_s5 + $0x8] sm:$0xff] %v1063_v41  ;;  %v817_v46 = vadd.f32 %v816_v42, %v263_v25  ;;  %v860_v47 = vadd.f32 %v859_v45, %v271_v26 }
 0x239   :  { %v1065_v44 = vpack.c.bf16 %v817_v46, %v815_v29  ;;  %v1066_v48 = vpack.c.bf16 %v860_v47, %v858_v30 }
 0x23b   :  { %944 = vst [vmem:[%s1452_s5 + $0x18] sm:$0xff] %v1065_v44  ;;  %945 = vst [vmem:[%s1452_s5 + $0x20] sm:$0xff] %v1066_v48 }
 0x270   :  { %v896_v54 = vpop.f32.mrf.mxu0 }
 0x271   :  { %v897_v56 = vadd.f32 %v896_v54, %v275_v53 }
 0x272   :  { %v898_v55 = vpop.f32.mrf.mxu0 }
 0x273   :  { %v899_v49 = vadd.f32 %v898_v55, %v279_v43 }
 0x274   :  { %v900_v50 = vpop.f32.mrf.mxu0 }
 0x275   :  { %v1064_v57 = vpack.c.bf16 %v899_v49, %v897_v56  ;;  %v901_v59 = vadd.f32 %v900_v50, %v275_v53 }
 0x276   :  { %v902_v58 = vpop.f32.mrf.mxu0 }
 0x277   :  { %943 = vst [vmem:[%s1452_s5 + $0x10] sm:$0xff] %v1064_v57  ;;  %v903_v60 = vadd.f32 %v902_v58, %v279_v43 }
 0x279   :  { %v1067_v61 = vpack.c.bf16 %v903_v60, %v901_v59 }
 0x27b   :  { %946 = vst [vmem:[%s1452_s5 + $0x28] sm:$0xff] %v1067_v61 }
 0x27c   :  { %951 = vsyncpa [#allocation4], 1 }
 0x27d   :  { %952 = vsyncpa [#allocation6], 1 }
 0x27e   :  { %953 = vsyncpa [#allocation9], 1 }

// kernel: gpt2_forward.14
= control target key start
LH: loop header
LB: loop body
LE: loop exit
PB: predicated region body
PF: predicated region fallthrough
CT: control target
= control target key end

     0   :  { %s1572_s18 = smov 0   ;;  %s1574_s19 = smov 0   ;;  %s1918_s0 = inlined_call_operand.vmem [shape: f32[16,256], index: 0, kind: input, shape index: {}]   ;;  %s1919_s1 = inlined_call_operand.vmem [shape: f32[1,256], index: 1, kind: input, shape index: {}]   ;;  %s1920_s2 = inlined_call_operand.vmem [shape: f32[1,256], index: 2, kind: input, shape index: {}]   ;;  %s1921_s3 = inlined_call_operand.vmem [shape: bf16[256,1024], index: 3, kind: input, shape index: {}]   ;;  %s1922_s4 = inlined_call_operand.vmem [shape: f32[1,1024], index: 4, kind: input, shape index: {}]   ;;  %s1923_s5 = inlined_call_operand.vmem [shape: bf16[16,1024], index: 5, kind: output, shape index: {}]  }
   0x1   :  { %s1576_s20 = smov 0   ;;  %s1578_s21 = smov 0  }
   0x2   :  { %s1580_s22 = smov 0  }
   0x3 LB: > { %s24_s23 = sadd.s32 1, %s1536_s21  ;;  %s1245_s24 = sadd.s32 4294967295, %s1540_s22   ;;  %s1540_s22 = sphi %s1580_s22, %s15_s22   ;;  %s1536_s21 = sphi %s1578_s21, %s1928_s21   ;;  %s1532_s20 = sphi %s1576_s20, %s1927_s20   ;;  %s1528_s19 = sphi %s1574_s19, %s1926_s19   ;;  %s1524_s18 = sphi %s1572_s18, %s1925_s18  }
   0x4   : > { %p25_p0 = scmp.ge.s32.totalorder %s24_s23, 2  ;;  %p109_p1 = scmp.ne.s32.totalorder %s1528_s19, %s1524_s18 }
   0x5   : > { %p110_p2 = scmp.eq.s32.totalorder %s1540_s22, 0  ;;  %p167_p4 = scmp.eq.s32.totalorder %s1245_s24, 1 }
   0x6   : > { %s1930_s23 = smov (%p25_p0, %s24_s23), 0  ;;  %s102_s26 = sadd.s32 1, %s1528_s19 }
   0x7   : > { %p111_p3 = por %p110_p2, %p109_p1  ;;  %s99_s25 = ssub.s32 %s1536_s21, %s1930_s23 }
   0x8   : > { %p100_p5 = scmp.eq.s32.totalorder %s99_s25, 0  ;;  %p1607_p6 = por %p167_p4, %p109_p1 }
   0x9   : > { %p1249_p7 = scmp.ge.s32.totalorder %s1540_s22, 2 }
   0xa   : > { %s1612_s28 = scalar_select %p100_p5, %s1528_s19, %s102_s26  }
   0xb   : > { %205 = sbr.rel (%p1249_p7) target bundleno = 52 (0x34), region = 28 }
  0x10   : > { %208 = sbr.rel (!%p111_p3) target bundleno = 52 (0x34), region = 32  ;;  %s210_s29 = sand.u32 (%p111_p3), 1, %s1528_s19  }
  0x11   : > { %s1335_s30 = sshll.u32 (%p111_p3), %s1536_s21, 4  ;;  %s1250_s6 = sshll.u32 (%p111_p3), %s210_s29, 9 }
  0x12   : > { %s1620_s9 = scalar_lea.vmem (%p111_p3), %s1921_s3, %s1335_s30  ;;  %s1625_s10 = scalar_lea.vmem (%p111_p3), [#allocation3], %s1250_s6 }
  0x13   : > { %v228_v0 = vld [vmem:[%s1620_s9] sm:$0xff] (%p111_p3)  ;;  %v230_v1 = vld [vmem:[%s1620_s9 + $0x8] sm:$0xff] (%p111_p3) }
  0x14   : > { %v232_v2 = vld [vmem:[%s1620_s9 + $0x20] sm:$0xff] (%p111_p3)  ;;  %229 = vst [vmem:[%s1625_s10] sm:$0xff] (%p111_p3), %v228_v0  ;;  %231 = vst [vmem:[%s1625_s10 + $0x8] sm:$0xff] (%p111_p3), %v230_v1  ;;  %v234_v3 = vld [vmem:[%s1620_s9 + $0x28] sm:$0xff] (%p111_p3) }
  0x15   : > { %233 = vst [vmem:[%s1625_s10 + $0x10] sm:$0xff] %v232_v2  ;;  %v236_v4 = vld [vmem:[%s1620_s9 + $0x40] sm:$0xff]  ;;  %v238_v5 = vld [vmem:[%s1620_s9 + $0x48] sm:$0xff]  ;;  %235 = vst [vmem:[%s1625_s10 + $0x18] sm:$0xff] %v234_v3 }
  0x16   : > { %237 = vst [vmem:[%s1625_s10 + $0x20] sm:$0xff] %v236_v4  ;;  %239 = vst [vmem:[%s1625_s10 + $0x28] sm:$0xff] %v238_v5  ;;  %v240_v6 = vld [vmem:[%s1620_s9 + $0x60] sm:$0xff]  ;;  %v242_v7 = vld [vmem:[%s1620_s9 + $0x68] sm:$0xff] }
  0x17   : > { %v244_v8 = vld [vmem:[%s1620_s9 + $0x80] sm:$0xff]  ;;  %241 = vst [vmem:[%s1625_s10 + $0x30] sm:$0xff] %v240_v6  ;;  %243 = vst [vmem:[%s1625_s10 + $0x38] sm:$0xff] %v242_v7  ;;  %v246_v9 = vld [vmem:[%s1620_s9 + $0x88] sm:$0xff] }
  0x18   : > { %245 = vst [vmem:[%s1625_s10 + $0x40] sm:$0xff] %v244_v8  ;;  %v248_v10 = vld [vmem:[%s1620_s9 + $0xa0] sm:$0xff]  ;;  %v250_v11 = vld [vmem:[%s1620_s9 + $0xa8] sm:$0xff]  ;;  %247 = vst [vmem:[%s1625_s10 + $0x48] sm:$0xff] %v246_v9 }
  0x19   : > { %249 = vst [vmem:[%s1625_s10 + $0x50] sm:$0xff] %v248_v10  ;;  %251 = vst [vmem:[%s1625_s10 + $0x58] sm:$0xff] %v250_v11  ;;  %v252_v12 = vld [vmem:[%s1620_s9 + $0xc0] sm:$0xff]  ;;  %v254_v13 = vld [vmem:[%s1620_s9 + $0xc8] sm:$0xff] }
  0x1a   : > { %v256_v14 = vld [vmem:[%s1620_s9 + $0xe0] sm:$0xff]  ;;  %253 = vst [vmem:[%s1625_s10 + $0x60] sm:$0xff] %v252_v12  ;;  %255 = vst [vmem:[%s1625_s10 + $0x68] sm:$0xff] %v254_v13  ;;  %v258_v15 = vld [vmem:[%s1620_s9 + $0xe8] sm:$0xff] }
  0x1b   : > { %257 = vst [vmem:[%s1625_s10 + $0x70] sm:$0xff] %v256_v14  ;;  %v260_v16 = vld [vmem:[%s1620_s9 + $0x100] sm:$0xff]  ;;  %v262_v17 = vld [vmem:[%s1620_s9 + $0x108] sm:$0xff]  ;;  %259 = vst [vmem:[%s1625_s10 + $0x78] sm:$0xff] %v258_v15 }
  0x1c   : > { %261 = vst [vmem:[%s1625_s10 + $0x80] sm:$0xff] %v260_v16  ;;  %263 = vst [vmem:[%s1625_s10 + $0x88] sm:$0xff] %v262_v17  ;;  %v264_v18 = vld [vmem:[%s1620_s9 + $0x120] sm:$0xff]  ;;  %v266_v19 = vld [vmem:[%s1620_s9 + $0x128] sm:$0xff] }
  0x1d   : > { %v268_v20 = vld [vmem:[%s1620_s9 + $0x140] sm:$0xff]  ;;  %265 = vst [vmem:[%s1625_s10 + $0x90] sm:$0xff] %v264_v18  ;;  %267 = vst [vmem:[%s1625_s10 + $0x98] sm:$0xff] %v266_v19  ;;  %v270_v21 = vld [vmem:[%s1620_s9 + $0x148] sm:$0xff] }
  0x1e   : > { %269 = vst [vmem:[%s1625_s10 + $0xa0] sm:$0xff] %v268_v20  ;;  %v272_v22 = vld [vmem:[%s1620_s9 + $0x160] sm:$0xff]  ;;  %v274_v23 = vld [vmem:[%s1620_s9 + $0x168] sm:$0xff]  ;;  %271 = vst [vmem:[%s1625_s10 + $0xa8] sm:$0xff] %v270_v21 }
  0x1f   : > { %273 = vst [vmem:[%s1625_s10 + $0xb0] sm:$0xff] %v272_v22  ;;  %275 = vst [vmem:[%s1625_s10 + $0xb8] sm:$0xff] %v274_v23  ;;  %v276_v24 = vld [vmem:[%s1620_s9 + $0x180] sm:$0xff]  ;;  %v278_v25 = vld [vmem:[%s1620_s9 + $0x188] sm:$0xff] }
  0x20   : > { %v280_v26 = vld [vmem:[%s1620_s9 + $0x1a0] sm:$0xff]  ;;  %277 = vst [vmem:[%s1625_s10 + $0xc0] sm:$0xff] %v276_v24  ;;  %279 = vst [vmem:[%s1625_s10 + $0xc8] sm:$0xff] %v278_v25  ;;  %v282_v27 = vld [vmem:[%s1620_s9 + $0x1a8] sm:$0xff] }
  0x21   : > { %281 = vst [vmem:[%s1625_s10 + $0xd0] sm:$0xff] %v280_v26  ;;  %v284_v28 = vld [vmem:[%s1620_s9 + $0x1c0] sm:$0xff]  ;;  %v286_v29 = vld [vmem:[%s1620_s9 + $0x1c8] sm:$0xff]  ;;  %283 = vst [vmem:[%s1625_s10 + $0xd8] sm:$0xff] %v282_v27 }
  0x22   : > { %285 = vst [vmem:[%s1625_s10 + $0xe0] sm:$0xff] %v284_v28  ;;  %287 = vst [vmem:[%s1625_s10 + $0xe8] sm:$0xff] %v286_v29  ;;  %v288_v30 = vld [vmem:[%s1620_s9 + $0x1e0] sm:$0xff]  ;;  %v290_v31 = vld [vmem:[%s1620_s9 + $0x1e8] sm:$0xff] }
  0x23   : > { %v292_v32 = vld [vmem:[%s1620_s9 + $0x200] sm:$0xff]  ;;  %289 = vst [vmem:[%s1625_s10 + $0xf0] sm:$0xff] %v288_v30  ;;  %291 = vst [vmem:[%s1625_s10 + $0xf8] sm:$0xff] %v290_v31  ;;  %v294_v33 = vld [vmem:[%s1620_s9 + $0x208] sm:$0xff] }
  0x24   : > { %293 = vst [vmem:[%s1625_s10 + $0x100] sm:$0xff] %v292_v32  ;;  %v296_v34 = vld [vmem:[%s1620_s9 + $0x220] sm:$0xff]  ;;  %v298_v35 = vld [vmem:[%s1620_s9 + $0x228] sm:$0xff]  ;;  %295 = vst [vmem:[%s1625_s10 + $0x108] sm:$0xff] %v294_v33 }
  0x25   : > { %297 = vst [vmem:[%s1625_s10 + $0x110] sm:$0xff] %v296_v34  ;;  %299 = vst [vmem:[%s1625_s10 + $0x118] sm:$0xff] %v298_v35  ;;  %v300_v36 = vld [vmem:[%s1620_s9 + $0x240] sm:$0xff]  ;;  %v302_v37 = vld [vmem:[%s1620_s9 + $0x248] sm:$0xff] }
  0x26   : > { %v304_v38 = vld [vmem:[%s1620_s9 + $0x260] sm:$0xff]  ;;  %301 = vst [vmem:[%s1625_s10 + $0x120] sm:$0xff] %v300_v36  ;;  %303 = vst [vmem:[%s1625_s10 + $0x128] sm:$0xff] %v302_v37  ;;  %v306_v39 = vld [vmem:[%s1620_s9 + $0x268] sm:$0xff] }
  0x27   : > { %305 = vst [vmem:[%s1625_s10 + $0x130] sm:$0xff] %v304_v38  ;;  %v308_v40 = vld [vmem:[%s1620_s9 + $0x280] sm:$0xff]  ;;  %v310_v41 = vld [vmem:[%s1620_s9 + $0x288] sm:$0xff]  ;;  %307 = vst [vmem:[%s1625_s10 + $0x138] sm:$0xff] %v306_v39 }
  0x28   : > { %309 = vst [vmem:[%s1625_s10 + $0x140] sm:$0xff] %v308_v40  ;;  %311 = vst [vmem:[%s1625_s10 + $0x148] sm:$0xff] %v310_v41  ;;  %v312_v42 = vld [vmem:[%s1620_s9 + $0x2a0] sm:$0xff]  ;;  %v314_v43 = vld [vmem:[%s1620_s9 + $0x2a8] sm:$0xff] }
  0x29   : > { %v316_v44 = vld [vmem:[%s1620_s9 + $0x2c0] sm:$0xff]  ;;  %313 = vst [vmem:[%s1625_s10 + $0x150] sm:$0xff] %v312_v42  ;;  %315 = vst [vmem:[%s1625_s10 + $0x158] sm:$0xff] %v314_v43  ;;  %v318_v45 = vld [vmem:[%s1620_s9 + $0x2c8] sm:$0xff] }
  0x2a   : > { %317 = vst [vmem:[%s1625_s10 + $0x160] sm:$0xff] %v316_v44  ;;  %v320_v46 = vld [vmem:[%s1620_s9 + $0x2e0] sm:$0xff]  ;;  %v322_v47 = vld [vmem:[%s1620_s9 + $0x2e8] sm:$0xff]  ;;  %319 = vst [vmem:[%s1625_s10 + $0x168] sm:$0xff] %v318_v45 }
  0x2b   : > { %321 = vst [vmem:[%s1625_s10 + $0x170] sm:$0xff] %v320_v46  ;;  %323 = vst [vmem:[%s1625_s10 + $0x178] sm:$0xff] %v322_v47  ;;  %v324_v48 = vld [vmem:[%s1620_s9 + $0x300] sm:$0xff]  ;;  %v326_v49 = vld [vmem:[%s1620_s9 + $0x308] sm:$0xff] }
  0x2c   : > { %v328_v50 = vld [vmem:[%s1620_s9 + $0x320] sm:$0xff]  ;;  %325 = vst [vmem:[%s1625_s10 + $0x180] sm:$0xff] %v324_v48  ;;  %327 = vst [vmem:[%s1625_s10 + $0x188] sm:$0xff] %v326_v49  ;;  %v330_v51 = vld [vmem:[%s1620_s9 + $0x328] sm:$0xff] }
  0x2d   : > { %329 = vst [vmem:[%s1625_s10 + $0x190] sm:$0xff] %v328_v50  ;;  %v332_v52 = vld [vmem:[%s1620_s9 + $0x340] sm:$0xff]  ;;  %v334_v53 = vld [vmem:[%s1620_s9 + $0x348] sm:$0xff]  ;;  %331 = vst [vmem:[%s1625_s10 + $0x198] sm:$0xff] %v330_v51 }
  0x2e   : > { %333 = vst [vmem:[%s1625_s10 + $0x1a0] sm:$0xff] %v332_v52  ;;  %335 = vst [vmem:[%s1625_s10 + $0x1a8] sm:$0xff] %v334_v53  ;;  %v336_v54 = vld [vmem:[%s1620_s9 + $0x360] sm:$0xff]  ;;  %v338_v55 = vld [vmem:[%s1620_s9 + $0x368] sm:$0xff] }
  0x2f   : > { %v340_v56 = vld [vmem:[%s1620_s9 + $0x380] sm:$0xff]  ;;  %337 = vst [vmem:[%s1625_s10 + $0x1b0] sm:$0xff] %v336_v54  ;;  %339 = vst [vmem:[%s1625_s10 + $0x1b8] sm:$0xff] %v338_v55  ;;  %v342_v57 = vld [vmem:[%s1620_s9 + $0x388] sm:$0xff] }
  0x30   : > { %341 = vst [vmem:[%s1625_s10 + $0x1c0] sm:$0xff] %v340_v56  ;;  %v344_v58 = vld [vmem:[%s1620_s9 + $0x3a0] sm:$0xff]  ;;  %v346_v59 = vld [vmem:[%s1620_s9 + $0x3a8] sm:$0xff]  ;;  %343 = vst [vmem:[%s1625_s10 + $0x1c8] sm:$0xff] %v342_v57 }
  0x31   : > { %345 = vst [vmem:[%s1625_s10 + $0x1d0] sm:$0xff] %v344_v58  ;;  %347 = vst [vmem:[%s1625_s10 + $0x1d8] sm:$0xff] %v346_v59  ;;  %v348_v60 = vld [vmem:[%s1620_s9 + $0x3c0] sm:$0xff]  ;;  %v350_v61 = vld [vmem:[%s1620_s9 + $0x3c8] sm:$0xff] }
  0x32   : > { %v352_v62 = vld [vmem:[%s1620_s9 + $0x3e0] sm:$0xff]  ;;  %349 = vst [vmem:[%s1625_s10 + $0x1e0] sm:$0xff] %v348_v60  ;;  %351 = vst [vmem:[%s1625_s10 + $0x1e8] sm:$0xff] %v350_v61  ;;  %v354_v63 = vld [vmem:[%s1620_s9 + $0x3e8] sm:$0xff] }
  0x33   : > { %353 = vst [vmem:[%s1625_s10 + $0x1f0] sm:$0xff] %v352_v62  ;;  %355 = vst [vmem:[%s1625_s10 + $0x1f8] sm:$0xff] %v354_v63 }
  0x34 PF: > { %p1253_p8 = scmp.ge.s32.totalorder %s1540_s22, 1  ;;  %p368_p9 = scmp.lt.s32.totalorder %s1540_s22, 3 }
  0x36   : > { %p369_p10 = pnand %p1253_p8, %p368_p9 }
  0x37   : > { %s375_s11 = sand.u32 (!%p369_p10), 1, %s1524_s18   ;;  %s1256_s12 = sshll.u32 (!%p369_p10), %s1532_s20, 2 }
  0x38   : > { %372 = sbr.rel (%p369_p10) target bundleno = 691 (0x2b3), region = 59  ;;  %s1254_s13 = sshll.u32 (!%p369_p10), %s375_s11, 9 }
  0x39   : > { %s1255_s14 = sshll.u32 (!%p369_p10), %s375_s11, 5  ;;  %p420_p11 = scmp.lt.s32.totalorder (!%p369_p10), %s1256_s12, 7 }
  0x3a   : > { %s1762_s24 = scalar_lea.vmem (!%p369_p10), [#allocation3], %s1254_s13  ;;  %s1764_s25 = scalar_lea.vmem (!%p369_p10), [#allocation4], %s1255_s14 }
  0x3b   : > { %p1257_p12 = scmp.ne.s32.totalorder (!%p369_p10), %s1532_s20, 0 }
  0x3d   : > { %s1932_s12 = smov (!%p420_p11, %s1256_s12), 7  ;;  %429 = sbr.rel (%p1257_p12) target bundleno = 384 (0x180), region = 67 }
  0x3e   : > { %s422_s17 = scalar_lea.vmem %s1922_s4, %s1932_s12 }
  0x42   : > { %v430_v0 = vld [vmem:[%s1918_s0] sm:$0xff]  ;;  %v431_v1 = vld [vmem:[%s1918_s0 + $0x8] sm:$0xff]  ;;  %v432_v2 = vld [vmem:[%s1918_s0 + $0x10] sm:$0xff]  ;;  %v469_v24 = vlaneseq }
  0x43   : > { %v434_v3 = vadd.f32 %v431_v1, %v430_v0  ;;  %v433_v4 = vld [vmem:[%s1918_s0 + $0x18] sm:$0xff]  ;;  %v467_v30 = vld [vmem:[%s1919_s1] sm:$0x3] }
  0x44   : > { %v437_v5 = vadd.f32 %v433_v4, %v432_v2  ;;  %v470_v27 = vshrl.u32 %v469_v24, 7  ;;  %v483_v31 = vld [vmem:[%s1920_s2] sm:$0x3] }
  0x45   : > { %435 = vadd.xlane.f32.xlu0 %v434_v3 }
  0x46   : > { %v471_v28 = vsub.s32 0, %v470_v27  ;;  %v475_v29 = vsub.s32 1, %v470_v27 }
  0x48   : > { %v472_v32 = vrot.slane %v467_v30, %v471_v28  ;;  %v476_v33 = vrot.slane %v467_v30, %v475_v29  ;;  %v488_v35 = vrot.slane %v483_v31, %v471_v28  ;;  %v492_v36 = vrot.slane %v483_v31, %v475_v29 }
  0x49   : > { %438 = vadd.xlane.f32.xlu0 %v437_v5 }
  0xce   : > { %v436_v6 = vpop.xlane.xlu0 %435 }
  0xcf   : > { %v441_v7 = vmul.f32 0.00390625, %v436_v6 }
  0xd1   : > { %v443_v8 = vsub.f32 %v430_v0, %v441_v7  ;;  %v444_v9 = vsub.f32 %v431_v1, %v441_v7 }
  0xd2   : > { %v439_v10 = vpop.xlane.xlu0 %438 }
  0xd3   : > { %v442_v11 = vmul.f32 0.00390625, %v439_v10  ;;  %v447_v12 = vmul.f32 %v443_v8, %v443_v8  ;;  %v448_v13 = vmul.f32 %v444_v9, %v444_v9 }
  0xd5   : > { %v445_v14 = vsub.f32 %v432_v2, %v442_v11  ;;  %v446_v15 = vsub.f32 %v433_v4, %v442_v11  ;;  %v451_v16 = vadd.f32 %v448_v13, %v447_v12 }
  0xd7   : > { %452 = vadd.xlane.f32.xlu1 %v451_v16  ;;  %v449_v17 = vmul.f32 %v445_v14, %v445_v14  ;;  %v450_v18 = vmul.f32 %v446_v15, %v446_v15 }
  0xd9   : > { %v454_v19 = vadd.f32 %v450_v18, %v449_v17 }
  0xdb   : > { %455 = vadd.xlane.f32.xlu1 %v454_v19 }
 0x160   : > { %v453_v20 = vpop.xlane.xlu1 %452 }
 0x161   : > { %v457_v21 = vmul.f32 0.00390625, %v453_v20 }
 0x163   : > { %v459_v22 = vadd.f32 1e-05, %v457_v21 }
 0x164   : > { %v456_v23 = vpop.xlane.xlu1 %455 }
 0x165   : > { %1383 = vrsqrt.f32 %v459_v22  ;;  %v458_v25 = vmul.f32 0.00390625, %v456_v23 }
 0x167   : > { %v460_v26 = vadd.f32 1e-05, %v458_v25 }
 0x169   : > { %1385 = vrsqrt.f32 %v460_v26 }
 0x172   : > { %v1384_v34 = vpop.eup %1383 }
 0x173   : > { %v463_v37 = vmul.f32 %v1384_v34, %v443_v8  ;;  %v464_v38 = vmul.f32 %v1384_v34, %v444_v9 }
 0x175   : > { %v479_v39 = vmul.f32 %v472_v32, %v463_v37  ;;  %v480_v40 = vmul.f32 %v476_v33, %v464_v38 }
 0x176   : > { %v1386_v41 = vpop.eup %1385 }
 0x177   : > { %v495_v42 = vadd.f32 %v488_v35, %v479_v39  ;;  %v496_v43 = vadd.f32 %v492_v36, %v480_v40  ;;  %v465_v44 = vmul.f32 %v1386_v41, %v445_v14  ;;  %v466_v45 = vmul.f32 %v1386_v41, %v446_v15 }
 0x179   : > { %v1336_v46 = vpack.c.bf16 %v496_v43, %v495_v42  ;;  %v481_v47 = vmul.f32 %v472_v32, %v465_v44  ;;  %v482_v48 = vmul.f32 %v476_v33, %v466_v45 }
 0x17b   : > { %511 = vst [vmem:[#allocation2] sm:$0xff] %v1336_v46  ;;  %v497_v49 = vadd.f32 %v488_v35, %v481_v47  ;;  %v498_v50 = vadd.f32 %v492_v36, %v482_v48 }
 0x17d   : > { %v1337_v51 = vpack.c.bf16 %v498_v50, %v497_v49 }
 0x17f   : > { %512 = vst [vmem:[#allocation2 + $0x8] sm:$0xff] %v1337_v51 }
 0x180 PF: > { %v1387_v52 = vld [vmem:[%s1762_s24 + $0xe4] ss:$16 sps:$4 sm:$0xff]   ;;  %v1389_v53 = vld [vmem:[%s1762_s24 + $0xec] ss:$16 sps:$4 sm:$0xff]   ;;  %v1391_v54 = vld [vmem:[%s1762_s24 + $0xe0] ss:$16 sps:$4 sm:$0xff]  }
 0x181   : > { %931 = vmatprep.subr.bf16.mxu0 %v1387_v52  ;;  %v1392_v55 = vld [vmem:[%s1762_s24 + $0xe8] ss:$16 sps:$4 sm:$0xff]   ;;  %974 = vmatprep.subr.bf16.mxu1 %v1389_v53  ;;  %v1393_v56 = vld [vmem:[%s1762_s24 + $0xc4] ss:$16 sps:$4 sm:$0xff]   ;;  %v1395_v57 = vld [vmem:[%s1762_s24 + $0xcc] ss:$16 sps:$4 sm:$0xff]  }
 0x182   : > { %932 = vmatpush1.bf16.msra.mxu0 %v1391_v54  ;;  %975 = vmatpush1.bf16.msra.mxu1 %v1392_v55  ;;  %v1397_v58 = vld [vmem:[%s1762_s24 + $0xc0] ss:$16 sps:$4 sm:$0xff]   ;;  %v1398_v59 = vld [vmem:[%s1762_s24 + $0xc8] ss:$16 sps:$4 sm:$0xff]   ;;  %v1399_v60 = vld [vmem:[%s1762_s24 + $0xa4] ss:$16 sps:$4 sm:$0xff]   ;;  %v581_v54 = vlaneseq }
 0x183   : > { %933 = vmatprep.subr.bf16.mxu0 %v1393_v56  ;;  %976 = vmatprep.subr.bf16.mxu1 %v1395_v57  ;;  %v1401_v61 = vld [vmem:[%s1762_s24 + $0xac] ss:$16 sps:$4 sm:$0xff]   ;;  %v1403_v62 = vld [vmem:[%s1762_s24 + $0xa0] ss:$16 sps:$4 sm:$0xff]   ;;  %v1404_v63 = vld [vmem:[%s1762_s24 + $0xa8] ss:$16 sps:$4 sm:$0xff]  }
 0x184   : > { %v1405_v0 = vld [vmem:[%s1762_s24 + $0x84] ss:$16 sps:$4 sm:$0xff]   ;;  %v1407_v1 = vld [vmem:[%s1762_s24 + $0x8c] ss:$16 sps:$4 sm:$0xff]   ;;  %v1409_v2 = vld [vmem:[%s1762_s24 + $0x80] ss:$16 sps:$4 sm:$0xff]  }
 0x185   : > { %v1410_v3 = vld [vmem:[%s1762_s24 + $0x88] ss:$16 sps:$4 sm:$0xff]   ;;  %v1411_v4 = vld [vmem:[%s1762_s24 + $0x64] ss:$16 sps:$4 sm:$0xff]   ;;  %v1413_v5 = vld [vmem:[%s1762_s24 + $0x6c] ss:$16 sps:$4 sm:$0xff]  }
 0x186   : > { %934 = vmatpush1.bf16.msra.mxu0 %v1397_v58  ;;  %977 = vmatpush1.bf16.msra.mxu1 %v1398_v59  ;;  %v1415_v6 = vld [vmem:[%s1762_s24 + $0x60] ss:$16 sps:$4 sm:$0xff]   ;;  %v1416_v7 = vld [vmem:[%s1762_s24 + $0x68] ss:$16 sps:$4 sm:$0xff]   ;;  %v1417_v8 = vld [vmem:[%s1762_s24 + $0x44] ss:$16 sps:$4 sm:$0xff]  }
 0x187   : > { %935 = vmatprep.subr.bf16.mxu0 %v1399_v60  ;;  %978 = vmatprep.subr.bf16.mxu1 %v1401_v61  ;;  %v1419_v9 = vld [vmem:[%s1762_s24 + $0x4c] ss:$16 sps:$4 sm:$0xff]   ;;  %v1421_v10 = vld [vmem:[%s1762_s24 + $0x40] ss:$16 sps:$4 sm:$0xff]   ;;  %v1422_v11 = vld [vmem:[%s1762_s24 + $0x48] ss:$16 sps:$4 sm:$0xff]  }
 0x188   : > { %v1423_v12 = vld [vmem:[%s1762_s24 + $0x24] ss:$16 sps:$4 sm:$0xff]   ;;  %v1425_v13 = vld [vmem:[%s1762_s24 + $0x2c] ss:$16 sps:$4 sm:$0xff]   ;;  %v1427_v14 = vld [vmem:[%s1762_s24 + $0x20] ss:$16 sps:$4 sm:$0xff]  }
 0x189   : > { %v1428_v15 = vld [vmem:[%s1762_s24 + $0x28] ss:$16 sps:$4 sm:$0xff]   ;;  %v1429_v16 = vld [vmem:[%s1762_s24 + $0x4] ss:$16 sps:$4 sm:$0xff]   ;;  %v1431_v17 = vld [vmem:[%s1762_s24 + $0xc] ss:$16 sps:$4 sm:$0xff]  }
 0x18a   : > { %936 = vmatpush1.bf16.msra.mxu0 %v1403_v62  ;;  %979 = vmatpush1.bf16.msra.mxu1 %v1404_v63  ;;  %v1433_v18 = vld [vmem:[%s1762_s24] ss:$16 sps:$4 sm:$0xff]   ;;  %v1434_v19 = vld [vmem:[%s1762_s24 + $0x8] ss:$16 sps:$4 sm:$0xff]   ;;  %v1435_v20 = vld [vmem:[%s1762_s24 + $0x1e4] ss:$16 sps:$4 sm:$0xff]  }
 0x18b   : > { %937 = vmatprep.subr.bf16.mxu0 %v1405_v0  ;;  %980 = vmatprep.subr.bf16.mxu1 %v1407_v1  ;;  %v1437_v21 = vld [vmem:[%s1762_s24 + $0x1ec] ss:$16 sps:$4 sm:$0xff]   ;;  %v1439_v22 = vld [vmem:[%s1762_s24 + $0x1e0] ss:$16 sps:$4 sm:$0xff]   ;;  %v1440_v23 = vld [vmem:[%s1762_s24 + $0x1e8] ss:$16 sps:$4 sm:$0xff]  }
 0x18c   : > { %v1441_v24 = vld [vmem:[%s1762_s24 + $0x1c4] ss:$16 sps:$4 sm:$0xff]   ;;  %v1443_v25 = vld [vmem:[%s1762_s24 + $0x1cc] ss:$16 sps:$4 sm:$0xff]   ;;  %v1445_v26 = vld [vmem:[%s1762_s24 + $0x1c0] ss:$16 sps:$4 sm:$0xff]  }
 0x18d   : > { %v1446_v27 = vld [vmem:[%s1762_s24 + $0x1c8] ss:$16 sps:$4 sm:$0xff]   ;;  %v1447_v28 = vld [vmem:[%s1762_s24 + $0x1a4] ss:$16 sps:$4 sm:$0xff]   ;;  %v1449_v29 = vld [vmem:[%s1762_s24 + $0x1ac] ss:$16 sps:$4 sm:$0xff]  }
 0x18e   : > { %938 = vmatpush1.bf16.msra.mxu0 %v1409_v2  ;;  %981 = vmatpush1.bf16.msra.mxu1 %v1410_v3  ;;  %v1451_v30 = vld [vmem:[%s1762_s24 + $0x1a0] ss:$16 sps:$4 sm:$0xff]   ;;  %v1452_v31 = vld [vmem:[%s1762_s24 + $0x1a8] ss:$16 sps:$4 sm:$0xff]   ;;  %v1453_v32 = vld [vmem:[%s1762_s24 + $0x184] ss:$16 sps:$4 sm:$0xff]  }
 0x18f   : > { %939 = vmatprep.subr.bf16.mxu0 %v1411_v4  ;;  %982 = vmatprep.subr.bf16.mxu1 %v1413_v5  ;;  %v1455_v33 = vld [vmem:[%s1762_s24 + $0x18c] ss:$16 sps:$4 sm:$0xff]   ;;  %v1457_v35 = vld [vmem:[%s1762_s24 + $0x180] ss:$16 sps:$4 sm:$0xff]   ;;  %v1458_v36 = vld [vmem:[%s1762_s24 + $0x188] ss:$16 sps:$4 sm:$0xff]  }
 0x190   : > { %v1485_v34 = vld [vmem:[#allocation2 + $0x4] ss:$8 sps:$4 sm:$0xff]   ;;  %v1463_v39 = vld [vmem:[%s1762_s24 + $0x160] ss:$16 sps:$4 sm:$0xff]   ;;  %v1464_v40 = vld [vmem:[%s1762_s24 + $0x168] ss:$16 sps:$4 sm:$0xff]  }
 0x191   : > { %v1459_v37 = vld [vmem:[%s1762_s24 + $0x164] ss:$16 sps:$4 sm:$0xff]   ;;  %v1461_v38 = vld [vmem:[%s1762_s24 + $0x16c] ss:$16 sps:$4 sm:$0xff]   ;;  %963 = vmatprep.mubr.bf16.mxu0 %v1485_v34  ;;  %1006 = vmatprep.mubr.bf16.mxu1 %v1485_v34  ;;  %v1469_v43 = vld [vmem:[%s1762_s24 + $0x140] ss:$16 sps:$4 sm:$0xff]  }
 0x192   : > { %940 = vmatpush1.bf16.msra.mxu0 %v1415_v6  ;;  %983 = vmatpush1.bf16.msra.mxu1 %v1416_v7  ;;  %v1465_v41 = vld [vmem:[%s1762_s24 + $0x144] ss:$16 sps:$4 sm:$0xff]   ;;  %v1467_v42 = vld [vmem:[%s1762_s24 + $0x14c] ss:$16 sps:$4 sm:$0xff]   ;;  %v1470_v44 = vld [vmem:[%s1762_s24 + $0x148] ss:$16 sps:$4 sm:$0xff]  }
 0x193   : > { %941 = vmatprep.subr.bf16.mxu0 %v1417_v8  ;;  %984 = vmatprep.subr.bf16.mxu1 %v1419_v9  ;;  %v1471_v45 = vld [vmem:[%s1762_s24 + $0x124] ss:$16 sps:$4 sm:$0xff]   ;;  %v1473_v46 = vld [vmem:[%s1762_s24 + $0x12c] ss:$16 sps:$4 sm:$0xff]   ;;  %v1475_v47 = vld [vmem:[%s1762_s24 + $0x120] ss:$16 sps:$4 sm:$0xff]  }
 0x194   : > { %v1476_v48 = vld [vmem:[%s1762_s24 + $0x128] ss:$16 sps:$4 sm:$0xff]   ;;  %v1477_v49 = vld [vmem:[%s1762_s24 + $0x104] ss:$16 sps:$4 sm:$0xff]   ;;  %v1479_v50 = vld [vmem:[%s1762_s24 + $0x10c] ss:$16 sps:$4 sm:$0xff]  }
 0x195   : > { %v1481_v51 = vld [vmem:[%s1762_s24 + $0x100] ss:$16 sps:$4 sm:$0xff]   ;;  %v1482_v52 = vld [vmem:[%s1762_s24 + $0x108] ss:$16 sps:$4 sm:$0xff]   ;;  %v582_v55 = vshrl.u32 %v581_v54, 7  ;;  %s1342_s12 = sshll.u32 (%p1607_p6), %s1532_s20, 4 }
 0x196   : > { %942 = vmatpush1.bf16.msra.mxu0 %v1421_v10  ;;  %985 = vmatpush1.bf16.msra.mxu1 %v1422_v11  ;;  %v1483_v53 = vld [vmem:[#allocation2] ss:$8 sps:$4 sm:$0xff]   ;;  %s1129_s26 = scalar_lea.vmem (%p1607_p6), %s1923_s5, %s1342_s12 }
 0x197   : > { %943 = vmatprep.subr.bf16.mxu0 %v1423_v12  ;;  %986 = vmatprep.subr.bf16.mxu1 %v1425_v13  ;;  %v583_v56 = vsub.s32 0, %v582_v55  ;;  %v591_v57 = vsub.s32 2, %v582_v55  ;;  %v579_v58 = vld [vmem:[%s422_s17] sm:$0xf]  ;;  %v587_v59 = vsub.s32 1, %v582_v55  ;;  %v595_v60 = vsub.s32 3, %v582_v55 }
 0x199   : > { %v584_v61 = vrot.slane %v579_v58, %v583_v56  ;;  %v592_v62 = vrot.slane %v579_v58, %v591_v57  ;;  %v588_v1 = vrot.slane %v579_v58, %v587_v59  ;;  %v596_v2 = vrot.slane %v579_v58, %v595_v60 }
 0x19a   : > { %944 = vmatpush1.bf16.msra.mxu0 %v1427_v14  ;;  %987 = vmatpush1.bf16.msra.mxu1 %v1428_v15 }
 0x19b   : > { %945 = vmatprep.subr.bf16.mxu0 %v1429_v16  ;;  %988 = vmatprep.subr.bf16.mxu1 %v1431_v17 }
 0x19e   : > { %946 = vmatpush1.bf16.msra.mxu0 %v1433_v18  ;;  %989 = vmatpush1.bf16.msra.mxu1 %v1434_v19 }
 0x19f   : > { %947 = vmatprep.subr.bf16.mxu0 %v1435_v20  ;;  %990 = vmatprep.subr.bf16.mxu1 %v1437_v21 }
 0x1a2   : > { %948 = vmatpush2.bf16.msra.mxu0 %v1439_v22  ;;  %991 = vmatpush2.bf16.msra.mxu1 %v1440_v23 }
 0x1a3   : > { %949 = vmatprep.subr.bf16.mxu0 %v1441_v24  ;;  %992 = vmatprep.subr.bf16.mxu1 %v1443_v25 }
 0x1a6   : > { %950 = vmatpush2.bf16.msra.mxu0 %v1445_v26  ;;  %993 = vmatpush2.bf16.msra.mxu1 %v1446_v27 }
 0x1a7   : > { %951 = vmatprep.subr.bf16.mxu0 %v1447_v28  ;;  %994 = vmatprep.subr.bf16.mxu1 %v1449_v29 }
 0x1aa   : > { %952 = vmatpush2.bf16.msra.mxu0 %v1451_v30  ;;  %995 = vmatpush2.bf16.msra.mxu1 %v1452_v31 }
 0x1ab   : > { %953 = vmatprep.subr.bf16.mxu0 %v1453_v32  ;;  %996 = vmatprep.subr.bf16.mxu1 %v1455_v33 }
 0x1ae   : > { %954 = vmatpush2.bf16.msra.mxu0 %v1457_v35  ;;  %997 = vmatpush2.bf16.msra.mxu1 %v1458_v36 }
 0x1af   : > { %955 = vmatprep.subr.bf16.mxu0 %v1459_v37  ;;  %998 = vmatprep.subr.bf16.mxu1 %v1461_v38 }
 0x1b2   : > { %956 = vmatpush2.bf16.msra.mxu0 %v1463_v39  ;;  %999 = vmatpush2.bf16.msra.mxu1 %v1464_v40 }
 0x1b3   : > { %957 = vmatprep.subr.bf16.mxu0 %v1465_v41  ;;  %1000 = vmatprep.subr.bf16.mxu1 %v1467_v42 }
 0x1b6   : > { %958 = vmatpush2.bf16.msra.mxu0 %v1469_v43  ;;  %1001 = vmatpush2.bf16.msra.mxu1 %v1470_v44 }
 0x1b7   : > { %959 = vmatprep.subr.bf16.mxu0 %v1471_v45  ;;  %1002 = vmatprep.subr.bf16.mxu1 %v1473_v46 }
 0x1ba   : > { %960 = vmatpush2.bf16.msra.mxu0 %v1475_v47  ;;  %1003 = vmatpush2.bf16.msra.mxu1 %v1476_v48 }
 0x1bb   : > { %961 = vmatprep.subr.bf16.mxu0 %v1477_v49  ;;  %1004 = vmatprep.subr.bf16.mxu1 %v1479_v50 }
 0x1be   : > { %962 = vmatpush2.bf16.msra.mxu0 %v1481_v51  ;;  %1005 = vmatpush2.bf16.msra.mxu1 %v1482_v52 }
 0x1c1   : > { %964 = vmatmul.mubr.bf16.vlgmr.msra.gmra.mxu0 %v1483_v53  ;;  %1007 = vmatmul.mubr.bf16.vlgmr.msra.gmra.mxu1 %v1483_v53 }
 0x281   : > { %v965_v63 = vpop.f32.mrf.mxu0  ;;  %v1008_v0 = vpop.f32.mrf.mxu1 }
 0x282   : > { %v1854_v3 = vadd.f32 %v965_v63, %v584_v61  ;;  %v1856_v4 = vadd.f32 %v1008_v0, %v592_v62 }
 0x283   : > { %v967_v5 = vpop.f32.mrf.mxu0  ;;  %v1010_v6 = vpop.f32.mrf.mxu1 }
 0x284   : > { %v1025_v7 = vmul.f32 0.044715, %v1854_v3  ;;  %v1027_v8 = vmul.f32 0.044715, %v1856_v4  ;;  %v968_v9 = vadd.f32 %v967_v5, %v588_v1  ;;  %v1860_v10 = vadd.f32 %v1010_v6, %v596_v2 }
 0x285   : > { %v969_v11 = vpop.f32.mrf.mxu0  ;;  %v1012_v12 = vpop.f32.mrf.mxu1  ;;  %v1017_v63 = vmul.f32 0.5, %v1854_v3 }
 0x286   : > { %v1033_v13 = vmul.f32 %v1025_v7, %v1854_v3  ;;  %v1035_v14 = vmul.f32 %v1027_v8, %v1856_v4  ;;  %v1864_v15 = vadd.f32 %v969_v11, %v584_v61  ;;  %v1866_v16 = vadd.f32 %v1012_v12, %v592_v62 }
 0x287   : > { %v1026_v17 = vmul.f32 0.044715, %v968_v9  ;;  %v1028_v18 = vmul.f32 0.044715, %v1860_v10  ;;  %v971_v19 = vpop.f32.mrf.mxu0  ;;  %v1014_v23 = vpop.f32.mrf.mxu1  ;;  %v1018_v0 = vmul.f32 0.5, %v968_v9  ;;  %v1020_v5 = vmul.f32 0.5, %v1860_v10 }
 0x288   : > { %v1041_v20 = vmul.f32 %v1033_v13, %v1854_v3  ;;  %v1043_v21 = vmul.f32 %v1035_v14, %v1856_v4  ;;  %v1029_v22 = vmul.f32 0.044715, %v1864_v15  ;;  %v1031_v26 = vmul.f32 0.044715, %v1866_v16 }
 0x289   : > { %v1034_v24 = vmul.f32 %v1026_v17, %v968_v9  ;;  %v1036_v25 = vmul.f32 %v1028_v18, %v1860_v10  ;;  %v972_v30 = vadd.f32 %v971_v19, %v588_v1  ;;  %v1015_v34 = vadd.f32 %v1014_v23, %v596_v2 }
 0x28a   : > { %v1049_v27 = vadd.f32 %v1041_v20, %v1854_v3  ;;  %v1051_v28 = vadd.f32 %v1043_v21, %v1856_v4  ;;  %v1037_v29 = vmul.f32 %v1029_v22, %v1864_v15  ;;  %v1039_v33 = vmul.f32 %v1031_v26, %v1866_v16 }
 0x28b   : > { %v1042_v31 = vmul.f32 %v1034_v24, %v968_v9  ;;  %v1044_v32 = vmul.f32 %v1036_v25, %v1860_v10  ;;  %v1030_v41 = vmul.f32 0.044715, %v972_v30  ;;  %v1032_v43 = vmul.f32 0.044715, %v1015_v34 }
 0x28c   : > { %v1057_v35 = vmul.f32 0.7978846, %v1049_v27  ;;  %v1059_v36 = vmul.f32 0.7978846, %v1051_v28  ;;  %v1045_v37 = vmul.f32 %v1037_v29, %v1864_v15  ;;  %v1047_v40 = vmul.f32 %v1039_v33, %v1866_v16 }
 0x28d   : > { %v1050_v38 = vadd.f32 %v1042_v31, %v968_v9  ;;  %v1052_v39 = vadd.f32 %v1044_v32, %v1860_v10  ;;  %v1038_v48 = vmul.f32 %v1030_v41, %v972_v30  ;;  %v1040_v49 = vmul.f32 %v1032_v43, %v1015_v34 }
 0x28e   : > { %1486 = vtanh.f32 %v1057_v35  ;;  %v1053_v42 = vadd.f32 %v1045_v37, %v1864_v15  ;;  %v1055_v46 = vadd.f32 %v1047_v40, %v1866_v16  ;;  %v1019_v2 = vmul.f32 0.5, %v1856_v4 }
 0x28f   : > { %1488 = vtanh.f32 %v1059_v36  ;;  %v1058_v44 = vmul.f32 0.7978846, %v1050_v38  ;;  %v1060_v45 = vmul.f32 0.7978846, %v1052_v39  ;;  %v1046_v51 = vmul.f32 %v1038_v48, %v972_v30 }
 0x290   : > { %v1061_v47 = vmul.f32 0.7978846, %v1053_v42  ;;  %v1063_v50 = vmul.f32 0.7978846, %v1055_v46  ;;  %v1048_v52 = vmul.f32 %v1040_v49, %v1015_v34  ;;  %v1021_v4 = vmul.f32 0.5, %v1864_v15 }
 0x291   : > { %1490 = vtanh.f32 %v1058_v44  ;;  %v1054_v53 = vadd.f32 %v1046_v51, %v972_v30  ;;  %v1022_v10 = vmul.f32 0.5, %v972_v30  ;;  %v1023_v22 = vmul.f32 0.5, %v1866_v16 }
 0x292   : > { %1492 = vtanh.f32 %v1060_v45  ;;  %v1056_v54 = vadd.f32 %v1048_v52, %v1015_v34  ;;  %v1024_v23 = vmul.f32 0.5, %v1015_v34 }
 0x293   : > { %1494 = vtanh.f32 %v1061_v47  ;;  %v1062_v55 = vmul.f32 0.7978846, %v1054_v53 }
 0x294   : > { %1496 = vtanh.f32 %v1063_v50  ;;  %v1064_v56 = vmul.f32 0.7978846, %v1056_v54 }
 0x295   : > { %1498 = vtanh.f32 %v1062_v55 }
 0x296   : > { %1500 = vtanh.f32 %v1064_v56 }
 0x29b   : > { %v1487_v57 = vpop.eup %1486 }
 0x29c   : > { %v1489_v58 = vpop.eup %1488  ;;  %v1073_v59 = vadd.f32 1.0, %v1487_v57 }
 0x29d   : > { %v1075_v61 = vadd.f32 1.0, %v1489_v58 }
 0x29e   : > { %v1491_v60 = vpop.eup %1490  ;;  %v1081_v8 = vmul.f32 %v1073_v59, %v1017_v63 }
 0x29f   : > { %v1493_v62 = vpop.eup %1492  ;;  %v1074_v1 = vadd.f32 1.0, %v1491_v60  ;;  %v1083_v13 = vmul.f32 %v1075_v61, %v1019_v2 }
 0x2a0   : > { %v1076_v6 = vadd.f32 1.0, %v1493_v62  ;;  %v1495_v7 = vpop.eup %1494 }
 0x2a1   : > { %v1082_v11 = vmul.f32 %v1074_v1, %v1018_v0  ;;  %v1497_v12 = vpop.eup %1496  ;;  %v1077_v19 = vadd.f32 1.0, %v1495_v7 }
 0x2a2   : > { %v1084_v14 = vmul.f32 %v1076_v6, %v1020_v5  ;;  %v1499_v20 = vpop.eup %1498  ;;  %v1079_v3 = vadd.f32 1.0, %v1497_v12 }
 0x2a3   : > { %v1338_v17 = vpack.c.bf16 %v1082_v11, %v1081_v8  ;;  %v1501_v9 = vpop.eup %1500  ;;  %v1078_v21 = vadd.f32 1.0, %v1499_v20  ;;  %v1085_v25 = vmul.f32 %v1077_v19, %v1021_v4 }
 0x2a4   : > { %v1339_v18 = vpack.c.bf16 %v1084_v14, %v1083_v13  ;;  %v1080_v24 = vadd.f32 1.0, %v1501_v9  ;;  %v1087_v27 = vmul.f32 %v1079_v3, %v1023_v22 }
 0x2a5   : > { %1113 = vst [vmem:[%s1764_s25] sm:$0xff] %v1338_v17  ;;  %v1086_v26 = vmul.f32 %v1078_v21, %v1022_v10 }
 0x2a6   : > { %1114 = vst [vmem:[%s1764_s25 + $0x8] sm:$0xff] %v1339_v18  ;;  %v1088_v28 = vmul.f32 %v1080_v24, %v1024_v23  ;;  %1123 = sbr.rel (!%p1607_p6) target bundleno = 691 (0x2b3), region = 71 }
 0x2a7   : > { %v1340_v29 = vpack.c.bf16 %v1086_v26, %v1085_v25 }
 0x2a8   : > { %v1341_v31 = vpack.c.bf16 %v1088_v28, %v1087_v27 }
 0x2a9   : > { %1115 = vst [vmem:[%s1764_s25 + $0x10] sm:$0xff] %v1340_v29 }
 0x2aa   : > { %1116 = vst [vmem:[%s1764_s25 + $0x18] sm:$0xff] %v1341_v31 }
 0x2ac   : > { %v1142_v15 = vld [vmem:[%s1764_s25] sm:$0xff] }
 0x2ad   : > { %v1144_v16 = vld [vmem:[%s1764_s25 + $0x8] sm:$0xff]  ;;  %1143 = vst [vmem:[%s1129_s26] sm:$0xff] %v1142_v15 }
 0x2ae   : > { %1145 = vst [vmem:[%s1129_s26 + $0x8] sm:$0xff] %v1144_v16 }
 0x2b0   : > { %v1146_v30 = vld [vmem:[%s1764_s25 + $0x10] sm:$0xff] }
 0x2b1   : > { %v1148_v32 = vld [vmem:[%s1764_s25 + $0x18] sm:$0xff]  ;;  %1147 = vst [vmem:[%s1129_s26 + $0x20] sm:$0xff] %v1146_v30 }
 0x2b2   : > { %1149 = vst [vmem:[%s1129_s26 + $0x28] sm:$0xff] %v1148_v32 }
 0x2b3 PF: > { %s15_s22 = sadd.s32 1, %s1540_s22   ;;  %s1925_s18 = smov %s1528_s19 }
 0x2b4   : > { %p12_p13 = scmp.ge.s32.totalorder %s15_s22, 4   ;;  %s1926_s19 = smov %s1612_s28 }
 0x2b5   : > { %s1927_s20 = smov %s1536_s21  ;;  %s1928_s21 = smov %s1930_s23 }
 0x2b6   :  { %14 = sbr.rel (!%p12_p13) target bundleno = 3 (0x3), region = 131 }

// kernel: gpt2_forward.15
= control target key start
LH: loop header
LB: loop body
LE: loop exit
PB: predicated region body
PF: predicated region fallthrough
CT: control target
= control target key end

     0   :  { %s1338_s15 = smov 0   ;;  %s1340_s16 = smov 0   ;;  %s1527_s0 = inlined_call_operand.vmem [shape: bf16[16,1024], index: 0, kind: input, shape index: {}]   ;;  %s1528_s1 = inlined_call_operand.vmem [shape: bf16[1024,256], index: 1, kind: input, shape index: {}]   ;;  %s1529_s2 = inlined_call_operand.vmem [shape: f32[1,256], index: 2, kind: input, shape index: {}]   ;;  %s1530_s3 = inlined_call_operand.vmem [shape: f32[16,256], index: 3, kind: input, shape index: {}]   ;;  %s1531_s4 = inlined_call_operand.vmem [shape: f32[16,256], index: 4, kind: output, shape index: {}]  }
   0x1   :  { %s1342_s17 = smov 0   ;;  %s1344_s18 = smov 0  }
   0x2   :  { %s1346_s19 = smov 0  }
   0x3 LB: > { %s26_s20 = sadd.s32 1, %s1307_s18  ;;  %p49_p1 = scmp.ne.s32.totalorder %s1299_s16, %s1295_s15  ;;  %s1311_s19 = sphi %s1346_s19, %s14_s19   ;;  %s1307_s18 = sphi %s1344_s18, %s1535_s18   ;;  %s1303_s17 = sphi %s1342_s17, %s1534_s17   ;;  %s1299_s16 = sphi %s1340_s16, %s1533_s16   ;;  %s1295_s15 = sphi %s1338_s15, %s1532_s15  }
   0x4   : > { %p27_p0 = scmp.ge.s32.totalorder %s26_s20, 2  ;;  %p50_p2 = scmp.eq.s32.totalorder %s1311_s19, 0 }
   0x5   : > { %s42_s22 = sadd.s32 1, %s1299_s16  ;;  %p1047_p5 = scmp.ge.s32.totalorder %s1311_s19, 2 }
   0x6   : > { %s1537_s20 = smov (%p27_p0, %s26_s20), 0  ;;  %p51_p3 = por %p50_p2, %p49_p1 }
   0x7   : > { %s38_s21 = ssub.s32 %s1307_s18, %s1537_s20  ;;  %208 = sbr.rel (%p1047_p5) target bundleno = 18 (0x12), region = 24 }
   0x8   : > { %p40_p4 = scmp.eq.s32.totalorder %s38_s21, 0 }
   0xa   : > { %s1373_s23 = scalar_select %p40_p4, %s1299_s16, %s42_s22  }
   0xc   : > { %211 = sbr.rel (!%p51_p3) target bundleno = 18 (0x12), region = 28  ;;  %s213_s24 = sand.u32 (%p51_p3), 1, %s1299_s16  }
   0xd   : > { %s1129_s25 = sshll.u32 (%p51_p3), %s1307_s18, 4  ;;  %s1048_s26 = sshll.u32 (%p51_p3), %s213_s24, 5 }
   0xe   : > { %s221_s29 = scalar_lea.vmem (%p51_p3), %s1527_s0, %s1129_s25  ;;  %s215_s30 = scalar_lea.vmem (%p51_p3), [#allocation2], %s1048_s26 }
   0xf   : > { %v234_v0 = vld [vmem:[%s221_s29] sm:$0xff] (%p51_p3)  ;;  %v236_v1 = vld [vmem:[%s221_s29 + $0x8] sm:$0xff] (%p51_p3) }
  0x10   : > { %v238_v2 = vld [vmem:[%s221_s29 + $0x20] sm:$0xff] (%p51_p3)  ;;  %235 = vst [vmem:[%s215_s30] sm:$0xff] (%p51_p3), %v234_v0  ;;  %237 = vst [vmem:[%s215_s30 + $0x8] sm:$0xff] (%p51_p3), %v236_v1  ;;  %v240_v3 = vld [vmem:[%s221_s29 + $0x28] sm:$0xff] (%p51_p3) }
  0x11   : > { %239 = vst [vmem:[%s215_s30 + $0x10] sm:$0xff] %v238_v2  ;;  %241 = vst [vmem:[%s215_s30 + $0x18] sm:$0xff] %v240_v3 }
  0x12 PF: > { %p1051_p6 = scmp.ge.s32.totalorder %s1311_s19, 1  ;;  %p261_p7 = scmp.lt.s32.totalorder %s1311_s19, 3 }
  0x14   : > { %p262_p8 = pnand %p1051_p6, %p261_p7 }
  0x15   : > { %s268_s5 = sand.u32 (!%p262_p8), 1, %s1295_s15   ;;  %s1053_s6 = sshll.u32 (!%p262_p8), %s1303_s17, 6 }
  0x16   : > { %265 = sbr.rel (%p262_p8) target bundleno = 314 (0x13a), region = 55  ;;  %s1052_s7 = sshll.u32 (!%p262_p8), %s268_s5, 5 }
  0x17   : > { %p326_p9 = scmp.lt.s32.totalorder (!%p262_p8), %s1053_s6, 127  ;;  %s1390_s12 = scalar_lea.vmem (!%p262_p8), [#allocation2], %s1052_s7 }
  0x18   : > { %p1056_p10 = scmp.ne.s32.totalorder (!%p262_p8), %s1303_s17, 0 }
  0x1b   : > { %s1539_s6 = smov (!%p326_p9, %s1053_s6), 127  ;;  %368 = sbr.rel (%p1056_p10) target bundleno = 44 (0x2c), region = 63 }
  0x1c   : > { %s1130_s8 = sshll.u32 %s1539_s6, 3 }
  0x1d   : > { %s1388_s11 = scalar_lea.vmem %s1528_s1, %s1130_s8 }
  0x20   : > { %v375_v4 = vlaneseq  ;;  %v373_v6 = vld [vmem:[%s1529_s2] sm:$0x3]  ;;  %v370_v10 = vld [vmem:[%s1530_s3 + $0x8] sm:$0xff]  ;;  %v371_v11 = vld [vmem:[%s1530_s3 + $0x10] sm:$0xff] }
  0x21   : > { %v369_v7 = vld [vmem:[%s1530_s3] sm:$0xff]  ;;  %v372_v12 = vld [vmem:[%s1530_s3 + $0x18] sm:$0xff] }
  0x22   : > { %v376_v5 = vshrl.u32 %v375_v4, 7 }
  0x24   : > { %v377_v8 = vsub.s32 0, %v376_v5  ;;  %v381_v9 = vsub.s32 1, %v376_v5 }
  0x26   : > { %v378_v13 = vrot.slane %v373_v6, %v377_v8  ;;  %v382_v14 = vrot.slane %v373_v6, %v381_v9 }
  0x28   : > { %v385_v15 = vadd.f32 %v378_v13, %v369_v7  ;;  %v386_v16 = vadd.f32 %v382_v14, %v370_v10  ;;  %v387_v17 = vadd.f32 %v378_v13, %v371_v11  ;;  %v388_v18 = vadd.f32 %v382_v14, %v372_v12 }
  0x2a   : > { %389 = vst [vmem:[%s1531_s4] sm:$0xff] %v385_v15  ;;  %390 = vst [vmem:[%s1531_s4 + $0x8] sm:$0xff] %v386_v16 }
  0x2b   : > { %391 = vst [vmem:[%s1531_s4 + $0x10] sm:$0xff] %v387_v17  ;;  %392 = vst [vmem:[%s1531_s4 + $0x18] sm:$0xff] %v388_v18 }
  0x2c PF: > { %v1171_v19 = vld [vmem:[%s1388_s11 + $0x74] ss:$8 sps:$4 sm:$0xff]   ;;  %v1175_v21 = vld [vmem:[%s1388_s11 + $0x70] ss:$8 sps:$4 sm:$0xff]   ;;  %v1177_v23 = vld [vmem:[%s1388_s11 + $0x64] ss:$8 sps:$4 sm:$0xff]  }
  0x2d   : > { %v1173_v20 = vld [vmem:[%s1388_s11 + $0x174] ss:$8 sps:$4 sm:$0xff]   ;;  %805 = vmatprep.subr.bf16.mxu0 %v1171_v19  ;;  %v1176_v22 = vld [vmem:[%s1388_s11 + $0x170] ss:$8 sps:$4 sm:$0xff]   ;;  %v1179_v24 = vld [vmem:[%s1388_s11 + $0x164] ss:$8 sps:$4 sm:$0xff]  }
  0x2e   : > { %848 = vmatprep.subr.bf16.mxu1 %v1173_v20  ;;  %806 = vmatpush1.bf16.msra.mxu0 %v1175_v21  ;;  %v1181_v25 = vld [vmem:[%s1388_s11 + $0x60] ss:$8 sps:$4 sm:$0xff]   ;;  %v1183_v27 = vld [vmem:[%s1388_s11 + $0x54] ss:$8 sps:$4 sm:$0xff]   ;;  %v1187_v29 = vld [vmem:[%s1388_s11 + $0x50] ss:$8 sps:$4 sm:$0xff]  }
  0x2f   : > { %849 = vmatpush1.bf16.msra.mxu1 %v1176_v22  ;;  %807 = vmatprep.subr.bf16.mxu0 %v1177_v23  ;;  %v1182_v26 = vld [vmem:[%s1388_s11 + $0x160] ss:$8 sps:$4 sm:$0xff]   ;;  %v1185_v28 = vld [vmem:[%s1388_s11 + $0x154] ss:$8 sps:$4 sm:$0xff]   ;;  %v1188_v30 = vld [vmem:[%s1388_s11 + $0x150] ss:$8 sps:$4 sm:$0xff]  }
  0x30   : > { %850 = vmatprep.subr.bf16.mxu1 %v1179_v24  ;;  %v1189_v31 = vld [vmem:[%s1388_s11 + $0x44] ss:$8 sps:$4 sm:$0xff]   ;;  %v1193_v33 = vld [vmem:[%s1388_s11 + $0x40] ss:$8 sps:$4 sm:$0xff]   ;;  %v1195_v35 = vld [vmem:[%s1388_s11 + $0x34] ss:$8 sps:$4 sm:$0xff]  }
  0x31   : > { %v1191_v32 = vld [vmem:[%s1388_s11 + $0x144] ss:$8 sps:$4 sm:$0xff]   ;;  %v1194_v34 = vld [vmem:[%s1388_s11 + $0x140] ss:$8 sps:$4 sm:$0xff]   ;;  %v1197_v36 = vld [vmem:[%s1388_s11 + $0x134] ss:$8 sps:$4 sm:$0xff]  }
  0x32   : > { %808 = vmatpush1.bf16.msra.mxu0 %v1181_v25  ;;  %v1199_v37 = vld [vmem:[%s1388_s11 + $0x30] ss:$8 sps:$4 sm:$0xff]   ;;  %v1201_v39 = vld [vmem:[%s1388_s11 + $0x24] ss:$8 sps:$4 sm:$0xff]   ;;  %v1205_v41 = vld [vmem:[%s1388_s11 + $0x20] ss:$8 sps:$4 sm:$0xff]  }
  0x33   : > { %851 = vmatpush1.bf16.msra.mxu1 %v1182_v26  ;;  %809 = vmatprep.subr.bf16.mxu0 %v1183_v27  ;;  %v1200_v38 = vld [vmem:[%s1388_s11 + $0x130] ss:$8 sps:$4 sm:$0xff]   ;;  %v1203_v40 = vld [vmem:[%s1388_s11 + $0x124] ss:$8 sps:$4 sm:$0xff]   ;;  %v1206_v42 = vld [vmem:[%s1388_s11 + $0x120] ss:$8 sps:$4 sm:$0xff]  }
  0x34   : > { %852 = vmatprep.subr.bf16.mxu1 %v1185_v28  ;;  %v1207_v43 = vld [vmem:[%s1388_s11 + $0x14] ss:$8 sps:$4 sm:$0xff]   ;;  %v1211_v45 = vld [vmem:[%s1388_s11 + $0x10] ss:$8 sps:$4 sm:$0xff]   ;;  %v1213_v47 = vld [vmem:[%s1388_s11 + $0x4] ss:$8 sps:$4 sm:$0xff]  }
  0x35   : > { %v1209_v44 = vld [vmem:[%s1388_s11 + $0x114] ss:$8 sps:$4 sm:$0xff]   ;;  %v1212_v46 = vld [vmem:[%s1388_s11 + $0x110] ss:$8 sps:$4 sm:$0xff]   ;;  %v1215_v48 = vld [vmem:[%s1388_s11 + $0x104] ss:$8 sps:$4 sm:$0xff]  }
  0x36   : > { %810 = vmatpush1.bf16.msra.mxu0 %v1187_v29  ;;  %v1217_v49 = vld [vmem:[%s1388_s11] ss:$8 sps:$4 sm:$0xff]   ;;  %v1219_v51 = vld [vmem:[%s1388_s11 + $0xf4] ss:$8 sps:$4 sm:$0xff]   ;;  %v1223_v53 = vld [vmem:[%s1388_s11 + $0xf0] ss:$8 sps:$4 sm:$0xff]  }
  0x37   : > { %853 = vmatpush1.bf16.msra.mxu1 %v1188_v30  ;;  %811 = vmatprep.subr.bf16.mxu0 %v1189_v31  ;;  %v1218_v50 = vld [vmem:[%s1388_s11 + $0x100] ss:$8 sps:$4 sm:$0xff]   ;;  %v1221_v52 = vld [vmem:[%s1388_s11 + $0x1f4] ss:$8 sps:$4 sm:$0xff]   ;;  %v1224_v54 = vld [vmem:[%s1388_s11 + $0x1f0] ss:$8 sps:$4 sm:$0xff]  }
  0x38   : > { %854 = vmatprep.subr.bf16.mxu1 %v1191_v32  ;;  %v1225_v55 = vld [vmem:[%s1388_s11 + $0xe4] ss:$8 sps:$4 sm:$0xff]   ;;  %v1229_v57 = vld [vmem:[%s1388_s11 + $0xe0] ss:$8 sps:$4 sm:$0xff]   ;;  %v1231_v59 = vld [vmem:[%s1388_s11 + $0xd4] ss:$8 sps:$4 sm:$0xff]  }
  0x39   : > { %v1227_v56 = vld [vmem:[%s1388_s11 + $0x1e4] ss:$8 sps:$4 sm:$0xff]   ;;  %v1230_v58 = vld [vmem:[%s1388_s11 + $0x1e0] ss:$8 sps:$4 sm:$0xff]   ;;  %v1233_v60 = vld [vmem:[%s1388_s11 + $0x1d4] ss:$8 sps:$4 sm:$0xff]  }
  0x3a   : > { %812 = vmatpush1.bf16.msra.mxu0 %v1193_v33  ;;  %v1235_v61 = vld [vmem:[%s1388_s11 + $0xd0] ss:$8 sps:$4 sm:$0xff]   ;;  %v1237_v63 = vld [vmem:[%s1388_s11 + $0xc4] ss:$8 sps:$4 sm:$0xff]   ;;  %v1241_v1 = vld [vmem:[%s1388_s11 + $0xc0] ss:$8 sps:$4 sm:$0xff]  }
  0x3b   : > { %855 = vmatpush1.bf16.msra.mxu1 %v1194_v34  ;;  %813 = vmatprep.subr.bf16.mxu0 %v1195_v35  ;;  %v1236_v62 = vld [vmem:[%s1388_s11 + $0x1d0] ss:$8 sps:$4 sm:$0xff]   ;;  %v1239_v0 = vld [vmem:[%s1388_s11 + $0x1c4] ss:$8 sps:$4 sm:$0xff]   ;;  %v1242_v3 = vld [vmem:[%s1388_s11 + $0x1c0] ss:$8 sps:$4 sm:$0xff]  }
  0x3c   : > { %856 = vmatprep.subr.bf16.mxu1 %v1197_v36  ;;  %v1269_v2 = vld [vmem:[%s1390_s12 + $0x4] ss:$16 sps:$4 sm:$0xff]   ;;  %v1272_v6 = vld [vmem:[%s1390_s12 + $0xc] ss:$16 sps:$4 sm:$0xff]   ;;  %v1247_v7 = vld [vmem:[%s1388_s11 + $0xb0] ss:$8 sps:$4 sm:$0xff]  }
  0x3d   : > { %v1243_v4 = vld [vmem:[%s1388_s11 + $0xb4] ss:$8 sps:$4 sm:$0xff]   ;;  %837 = vmatprep.mubr.bf16.mxu0 %v1269_v2  ;;  %880 = vmatprep.mubr.bf16.mxu1 %v1272_v6  ;;  %v1248_v8 = vld [vmem:[%s1388_s11 + $0x1b0] ss:$8 sps:$4 sm:$0xff]   ;;  %v1249_v9 = vld [vmem:[%s1388_s11 + $0xa4] ss:$8 sps:$4 sm:$0xff]  }
  0x3e   : > { %814 = vmatpush1.bf16.msra.mxu0 %v1199_v37  ;;  %v1245_v5 = vld [vmem:[%s1388_s11 + $0x1b4] ss:$8 sps:$4 sm:$0xff]   ;;  %v1251_v10 = vld [vmem:[%s1388_s11 + $0x1a4] ss:$8 sps:$4 sm:$0xff]   ;;  %v1253_v11 = vld [vmem:[%s1388_s11 + $0xa0] ss:$8 sps:$4 sm:$0xff]  }
  0x3f   : > { %857 = vmatpush1.bf16.msra.mxu1 %v1200_v38  ;;  %815 = vmatprep.subr.bf16.mxu0 %v1201_v39  ;;  %v1254_v12 = vld [vmem:[%s1388_s11 + $0x1a0] ss:$8 sps:$4 sm:$0xff]   ;;  %v1255_v13 = vld [vmem:[%s1388_s11 + $0x94] ss:$8 sps:$4 sm:$0xff]   ;;  %v1259_v15 = vld [vmem:[%s1388_s11 + $0x90] ss:$8 sps:$4 sm:$0xff]  }
  0x40   : > { %858 = vmatprep.subr.bf16.mxu1 %v1203_v40  ;;  %v1257_v14 = vld [vmem:[%s1388_s11 + $0x194] ss:$8 sps:$4 sm:$0xff]   ;;  %v1260_v16 = vld [vmem:[%s1388_s11 + $0x190] ss:$8 sps:$4 sm:$0xff]   ;;  %v1261_v17 = vld [vmem:[%s1388_s11 + $0x84] ss:$8 sps:$4 sm:$0xff]  }
  0x41   : > { %v1263_v18 = vld [vmem:[%s1388_s11 + $0x184] ss:$8 sps:$4 sm:$0xff]   ;;  %v1265_v19 = vld [vmem:[%s1388_s11 + $0x80] ss:$8 sps:$4 sm:$0xff]   ;;  %v395_v33 = vld [vmem:[%s1531_s4 + $0x10] sm:$0xff] }
  0x42   : > { %816 = vmatpush1.bf16.msra.mxu0 %v1205_v41  ;;  %v1266_v20 = vld [vmem:[%s1388_s11 + $0x180] ss:$8 sps:$4 sm:$0xff]   ;;  %v396_v38 = vld [vmem:[%s1531_s4 + $0x18] sm:$0xff] }
  0x43   : > { %859 = vmatpush1.bf16.msra.mxu1 %v1206_v42  ;;  %817 = vmatprep.subr.bf16.mxu0 %v1207_v43  ;;  %v1267_v21 = vld [vmem:[%s1390_s12] ss:$16 sps:$4 sm:$0xff]   ;;  %v1270_v22 = vld [vmem:[%s1390_s12 + $0x8] ss:$16 sps:$4 sm:$0xff]  }
  0x44   : > { %860 = vmatprep.subr.bf16.mxu1 %v1209_v44  ;;  %v393_v24 = vld [vmem:[%s1531_s4] sm:$0xff]  ;;  %v394_v28 = vld [vmem:[%s1531_s4 + $0x8] sm:$0xff] }
  0x46   : > { %818 = vmatpush1.bf16.msra.mxu0 %v1211_v45 }
  0x47   : > { %861 = vmatpush1.bf16.msra.mxu1 %v1212_v46  ;;  %819 = vmatprep.subr.bf16.mxu0 %v1213_v47 }
  0x48   : > { %862 = vmatprep.subr.bf16.mxu1 %v1215_v48 }
  0x4a   : > { %820 = vmatpush1.bf16.msra.mxu0 %v1217_v49 }
  0x4b   : > { %863 = vmatpush1.bf16.msra.mxu1 %v1218_v50  ;;  %821 = vmatprep.subr.bf16.mxu0 %v1219_v51 }
  0x4c   : > { %864 = vmatprep.subr.bf16.mxu1 %v1221_v52 }
  0x4e   : > { %822 = vmatpush2.bf16.msra.mxu0 %v1223_v53 }
  0x4f   : > { %865 = vmatpush2.bf16.msra.mxu1 %v1224_v54  ;;  %823 = vmatprep.subr.bf16.mxu0 %v1225_v55 }
  0x50   : > { %866 = vmatprep.subr.bf16.mxu1 %v1227_v56 }
  0x52   : > { %824 = vmatpush2.bf16.msra.mxu0 %v1229_v57 }
  0x53   : > { %867 = vmatpush2.bf16.msra.mxu1 %v1230_v58  ;;  %825 = vmatprep.subr.bf16.mxu0 %v1231_v59 }
  0x54   : > { %868 = vmatprep.subr.bf16.mxu1 %v1233_v60 }
  0x56   : > { %826 = vmatpush2.bf16.msra.mxu0 %v1235_v61 }
  0x57   : > { %869 = vmatpush2.bf16.msra.mxu1 %v1236_v62  ;;  %827 = vmatprep.subr.bf16.mxu0 %v1237_v63 }
  0x58   : > { %870 = vmatprep.subr.bf16.mxu1 %v1239_v0 }
  0x5a   : > { %828 = vmatpush2.bf16.msra.mxu0 %v1241_v1 }
  0x5b   : > { %871 = vmatpush2.bf16.msra.mxu1 %v1242_v3  ;;  %829 = vmatprep.subr.bf16.mxu0 %v1243_v4 }
  0x5c   : > { %872 = vmatprep.subr.bf16.mxu1 %v1245_v5 }
  0x5e   : > { %830 = vmatpush2.bf16.msra.mxu0 %v1247_v7 }
  0x5f   : > { %873 = vmatpush2.bf16.msra.mxu1 %v1248_v8  ;;  %831 = vmatprep.subr.bf16.mxu0 %v1249_v9 }
  0x60   : > { %874 = vmatprep.subr.bf16.mxu1 %v1251_v10 }
  0x62   : > { %832 = vmatpush2.bf16.msra.mxu0 %v1253_v11 }
  0x63   : > { %875 = vmatpush2.bf16.msra.mxu1 %v1254_v12  ;;  %833 = vmatprep.subr.bf16.mxu0 %v1255_v13 }
  0x64   : > { %876 = vmatprep.subr.bf16.mxu1 %v1257_v14 }
  0x66   : > { %834 = vmatpush2.bf16.msra.mxu0 %v1259_v15 }
  0x67   : > { %877 = vmatpush2.bf16.msra.mxu1 %v1260_v16  ;;  %835 = vmatprep.subr.bf16.mxu0 %v1261_v17 }
  0x68   : > { %878 = vmatprep.subr.bf16.mxu1 %v1263_v18 }
  0x6a   : > { %836 = vmatpush2.bf16.msra.mxu0 %v1265_v19 }
  0x6b   : > { %879 = vmatpush2.bf16.msra.mxu1 %v1266_v20 }
  0x6d   : > { %838 = vmatmul.mubr.bf16.vlgmr.msra.gmra.mxu0 %v1267_v21 }
  0x6e   : > { %881 = vmatmul.mubr.bf16.vlgmr.msra.gmra.mxu1 %v1270_v22 }
 0x12d   : > { %v839_v23 = vpop.f32.mrf.mxu0 }
 0x12e   : > { %v882_v25 = vpop.f32.mrf.mxu1 }
 0x12f   : > { %v883_v26 = vadd.f32 %v882_v25, %v839_v23  ;;  %v841_v27 = vpop.f32.mrf.mxu0 }
 0x130   : > { %v884_v29 = vpop.f32.mrf.mxu1 }
 0x131   : > { %v891_v30 = vadd.f32 %v883_v26, %v393_v24  ;;  %v885_v31 = vadd.f32 %v884_v29, %v841_v27  ;;  %v843_v32 = vpop.f32.mrf.mxu0 }
 0x132   : > { %v886_v34 = vpop.f32.mrf.mxu1 }
 0x133   : > { %895 = vst [vmem:[%s1531_s4] sm:$0xff] %v891_v30  ;;  %v892_v35 = vadd.f32 %v885_v31, %v394_v28  ;;  %v887_v36 = vadd.f32 %v886_v34, %v843_v32  ;;  %v845_v37 = vpop.f32.mrf.mxu0 }
 0x134   : > { %v888_v39 = vpop.f32.mrf.mxu1 }
 0x135   : > { %896 = vst [vmem:[%s1531_s4 + $0x8] sm:$0xff] %v892_v35  ;;  %v893_v40 = vadd.f32 %v887_v36, %v395_v33  ;;  %v889_v41 = vadd.f32 %v888_v39, %v845_v37 }
 0x137   : > { %897 = vst [vmem:[%s1531_s4 + $0x10] sm:$0xff] %v893_v40  ;;  %v894_v42 = vadd.f32 %v889_v41, %v396_v38 }
 0x139   : > { %898 = vst [vmem:[%s1531_s4 + $0x18] sm:$0xff] %v894_v42 }
 0x13a PF: > { %s14_s19 = sadd.s32 1, %s1311_s19   ;;  %s1532_s15 = smov %s1299_s16 }
 0x13b   : > { %p11_p11 = scmp.ge.s32.totalorder %s14_s19, 4   ;;  %s1533_s16 = smov %s1373_s23 }
 0x13c   : > { %s1534_s17 = smov %s1307_s18  ;;  %s1535_s18 = smov %s1537_s20 }
 0x13d   :  { %13 = sbr.rel (!%p11_p11) target bundleno = 3 (0x3), region = 107 }

// kernel: gpt2_forward.16
= control target key start
LH: loop header
LB: loop body
LE: loop exit
PB: predicated region body
PF: predicated region fallthrough
CT: control target
= control target key end

     0   :  { %s1582_s0 = inlined_call_operand.vmem [shape: f32[16,256], index: 0, kind: input, shape index: {}]   ;;  %s1583_s3 = inlined_call_operand.vmem [shape: bf16[256,768], index: 3, kind: input, shape index: {}]   ;;  %s1584_s1 = inlined_call_operand.vmem [shape: f32[1,256], index: 1, kind: input, shape index: {}]   ;;  %s1585_s2 = inlined_call_operand.vmem [shape: f32[1,256], index: 2, kind: input, shape index: {}]   ;;  %s1586_s4 = inlined_call_operand.vmem [shape: f32[1,768], index: 4, kind: input, shape index: {}]   ;;  %s1587_s5 = inlined_call_operand.vmem [shape: bf16[16,768], index: 5, kind: output, shape index: {}]  }
   0x1   :  { %v1199_v0 = vld [vmem:[%s1582_s0] sm:$0xff]  ;;  %v1204_v1 = vld [vmem:[%s1582_s0 + $0x8] sm:$0xff]  ;;  %v1209_v2 = vld [vmem:[%s1582_s0 + $0x10] sm:$0xff] }
   0x2   :  { %v28_v3 = vadd.f32 %v1204_v1, %v1199_v0  ;;  %v1216_v4 = vld [vmem:[%s1582_s0 + $0x18] sm:$0xff]  ;;  %v1018_v6 = vld [vmem:[%s1583_s3 + $0x154] ss:$24 sps:$4 sm:$0xff]   ;;  %v1020_v7 = vld [vmem:[%s1583_s3 + $0x150] ss:$24 sps:$4 sm:$0xff]  }
   0x3   :  { %v31_v5 = vadd.f32 %v1216_v4, %v1209_v2  ;;  %727 = vmatprep.subr.bf16.mxu0 %v1018_v6  ;;  %v1021_v8 = vld [vmem:[%s1583_s3 + $0x15c] ss:$24 sps:$4 sm:$0xff]   ;;  %v1023_v9 = vld [vmem:[%s1583_s3 + $0x158] ss:$24 sps:$4 sm:$0xff]   ;;  %v1027_v12 = vld [vmem:[%s1583_s3 + $0x12c] ss:$24 sps:$4 sm:$0xff]  }
   0x4   :  { %29 = vadd.xlane.f32.xlu0 %v28_v3  ;;  %728 = vmatpush1.bf16.msra.mxu0 %v1020_v7  ;;  %v1024_v10 = vld [vmem:[%s1583_s3 + $0x124] ss:$24 sps:$4 sm:$0xff]   ;;  %v1026_v11 = vld [vmem:[%s1583_s3 + $0x120] ss:$24 sps:$4 sm:$0xff]   ;;  %v1030_v14 = vld [vmem:[%s1583_s3 + $0xf4] ss:$24 sps:$4 sm:$0xff]  }
   0x5   :  { %770 = vmatprep.subr.bf16.mxu1 %v1021_v8  ;;  %729 = vmatprep.subr.bf16.mxu0 %v1024_v10  ;;  %v1029_v13 = vld [vmem:[%s1583_s3 + $0x128] ss:$24 sps:$4 sm:$0xff]   ;;  %v1033_v16 = vld [vmem:[%s1583_s3 + $0xfc] ss:$24 sps:$4 sm:$0xff]   ;;  %v1035_v18 = vld [vmem:[%s1583_s3 + $0xf8] ss:$24 sps:$4 sm:$0xff]  }
   0x6   :  { %771 = vmatpush1.bf16.msra.mxu1 %v1023_v9  ;;  %v1032_v15 = vld [vmem:[%s1583_s3 + $0xf0] ss:$24 sps:$4 sm:$0xff]   ;;  %v1036_v17 = vld [vmem:[%s1583_s3 + $0xc4] ss:$24 sps:$4 sm:$0xff]   ;;  %v1038_v20 = vld [vmem:[%s1583_s3 + $0xc0] ss:$24 sps:$4 sm:$0xff]  }
   0x7   :  { %772 = vmatprep.subr.bf16.mxu1 %v1027_v12  ;;  %v1039_v19 = vld [vmem:[%s1583_s3 + $0xcc] ss:$24 sps:$4 sm:$0xff]   ;;  %v1041_v22 = vld [vmem:[%s1583_s3 + $0xc8] ss:$24 sps:$4 sm:$0xff]   ;;  %v1045_v23 = vld [vmem:[%s1583_s3 + $0x9c] ss:$24 sps:$4 sm:$0xff]  }
   0x8   :  { %32 = vadd.xlane.f32.xlu0 %v31_v5  ;;  %730 = vmatpush1.bf16.msra.mxu0 %v1026_v11  ;;  %v1042_v21 = vld [vmem:[%s1583_s3 + $0x94] ss:$24 sps:$4 sm:$0xff]   ;;  %v1044_v24 = vld [vmem:[%s1583_s3 + $0x90] ss:$24 sps:$4 sm:$0xff]   ;;  %v1048_v25 = vld [vmem:[%s1583_s3 + $0x64] ss:$24 sps:$4 sm:$0xff]  }
   0x9   :  { %731 = vmatprep.subr.bf16.mxu0 %v1030_v14  ;;  %v1047_v26 = vld [vmem:[%s1583_s3 + $0x98] ss:$24 sps:$4 sm:$0xff]   ;;  %v1051_v27 = vld [vmem:[%s1583_s3 + $0x6c] ss:$24 sps:$4 sm:$0xff]   ;;  %v1053_v30 = vld [vmem:[%s1583_s3 + $0x68] ss:$24 sps:$4 sm:$0xff]  }
   0xa   :  { %773 = vmatpush1.bf16.msra.mxu1 %v1029_v13  ;;  %v1050_v28 = vld [vmem:[%s1583_s3 + $0x60] ss:$24 sps:$4 sm:$0xff]   ;;  %v1054_v29 = vld [vmem:[%s1583_s3 + $0x34] ss:$24 sps:$4 sm:$0xff]   ;;  %v1056_v31 = vld [vmem:[%s1583_s3 + $0x30] ss:$24 sps:$4 sm:$0xff]  }
   0xb   :  { %774 = vmatprep.subr.bf16.mxu1 %v1033_v16  ;;  %v1057_v32 = vld [vmem:[%s1583_s3 + $0x3c] ss:$24 sps:$4 sm:$0xff]   ;;  %v1059_v33 = vld [vmem:[%s1583_s3 + $0x38] ss:$24 sps:$4 sm:$0xff]   ;;  %v1063_v35 = vld [vmem:[%s1583_s3 + $0xc] ss:$24 sps:$4 sm:$0xff]  }
   0xc   :  { %732 = vmatpush1.bf16.msra.mxu0 %v1032_v15  ;;  %v1060_v34 = vld [vmem:[%s1583_s3 + $0x4] ss:$24 sps:$4 sm:$0xff]   ;;  %v1062_v36 = vld [vmem:[%s1583_s3] ss:$24 sps:$4 sm:$0xff]   ;;  %v1066_v37 = vld [vmem:[%s1583_s3 + $0x2d4] ss:$24 sps:$4 sm:$0xff]  }
   0xd   :  { %733 = vmatprep.subr.bf16.mxu0 %v1036_v17  ;;  %v1065_v38 = vld [vmem:[%s1583_s3 + $0x8] ss:$24 sps:$4 sm:$0xff]   ;;  %v1069_v39 = vld [vmem:[%s1583_s3 + $0x2dc] ss:$24 sps:$4 sm:$0xff]   ;;  %v1071_v55 = vld [vmem:[%s1583_s3 + $0x2d8] ss:$24 sps:$4 sm:$0xff]  }
   0xe   :  { %775 = vmatpush1.bf16.msra.mxu1 %v1035_v18  ;;  %v1068_v40 = vld [vmem:[%s1583_s3 + $0x2d0] ss:$24 sps:$4 sm:$0xff]   ;;  %v1072_v56 = vld [vmem:[%s1583_s3 + $0x2a4] ss:$24 sps:$4 sm:$0xff]   ;;  %v1074_v57 = vld [vmem:[%s1583_s3 + $0x2a0] ss:$24 sps:$4 sm:$0xff]  }
   0xf   :  { %776 = vmatprep.subr.bf16.mxu1 %v1039_v19  ;;  %v1075_v58 = vld [vmem:[%s1583_s3 + $0x2ac] ss:$24 sps:$4 sm:$0xff]   ;;  %v1077_v59 = vld [vmem:[%s1583_s3 + $0x2a8] ss:$24 sps:$4 sm:$0xff]   ;;  %v1081_v62 = vld [vmem:[%s1583_s3 + $0x27c] ss:$24 sps:$4 sm:$0xff]  }
  0x10   :  { %734 = vmatpush1.bf16.msra.mxu0 %v1038_v20  ;;  %v1078_v60 = vld [vmem:[%s1583_s3 + $0x274] ss:$24 sps:$4 sm:$0xff]   ;;  %v1080_v61 = vld [vmem:[%s1583_s3 + $0x270] ss:$24 sps:$4 sm:$0xff]   ;;  %v1096_v8 = vld [vmem:[%s1583_s3 + $0x1e4] ss:$24 sps:$4 sm:$0xff]  }
  0x11   :  { %735 = vmatprep.subr.bf16.mxu0 %v1042_v21  ;;  %v1083_v63 = vld [vmem:[%s1583_s3 + $0x278] ss:$24 sps:$4 sm:$0xff]   ;;  %v1089_v3 = vld [vmem:[%s1583_s3 + $0x248] ss:$24 sps:$4 sm:$0xff]   ;;  %v1093_v5 = vld [vmem:[%s1583_s3 + $0x21c] ss:$24 sps:$4 sm:$0xff]  }
  0x12   :  { %777 = vmatpush1.bf16.msra.mxu1 %v1041_v22  ;;  %v1092_v6 = vld [vmem:[%s1583_s3 + $0x210] ss:$24 sps:$4 sm:$0xff]   ;;  %v1099_v9 = vld [vmem:[%s1583_s3 + $0x1ec] ss:$24 sps:$4 sm:$0xff]   ;;  %v1098_v10 = vld [vmem:[%s1583_s3 + $0x1e0] ss:$24 sps:$4 sm:$0xff]  }
  0x13   :  { %778 = vmatprep.subr.bf16.mxu1 %v1045_v23  ;;  %v1095_v7 = vld [vmem:[%s1583_s3 + $0x218] ss:$24 sps:$4 sm:$0xff]   ;;  %v1101_v11 = vld [vmem:[%s1583_s3 + $0x1e8] ss:$24 sps:$4 sm:$0xff]   ;;  %v1102_v12 = vld [vmem:[%s1583_s3 + $0x1b4] ss:$24 sps:$4 sm:$0xff]  }
  0x14   :  { %736 = vmatpush1.bf16.msra.mxu0 %v1044_v24  ;;  %v1105_v13 = vld [vmem:[%s1583_s3 + $0x1bc] ss:$24 sps:$4 sm:$0xff]   ;;  %v1104_v14 = vld [vmem:[%s1583_s3 + $0x1b0] ss:$24 sps:$4 sm:$0xff]   ;;  %v1111_v17 = vld [vmem:[%s1583_s3 + $0x18c] ss:$24 sps:$4 sm:$0xff]  }
  0x15   :  { %737 = vmatprep.subr.bf16.mxu0 %v1048_v25  ;;  %v1107_v15 = vld [vmem:[%s1583_s3 + $0x1b8] ss:$24 sps:$4 sm:$0xff]   ;;  %v1108_v16 = vld [vmem:[%s1583_s3 + $0x184] ss:$24 sps:$4 sm:$0xff]   ;;  %v1113_v19 = vld [vmem:[%s1583_s3 + $0x188] ss:$24 sps:$4 sm:$0xff]  }
  0x16   :  { %779 = vmatpush1.bf16.msra.mxu1 %v1047_v26  ;;  %v1110_v18 = vld [vmem:[%s1583_s3 + $0x180] ss:$24 sps:$4 sm:$0xff]   ;;  %v1116_v20 = vld [vmem:[%s1583_s3 + $0x164] ss:$24 sps:$4 sm:$0xff]  }
  0x17   :  { %780 = vmatprep.subr.bf16.mxu1 %v1051_v27  ;;  %v63_v27 = vlaneseq }
  0x18   :  { %738 = vmatpush1.bf16.msra.mxu0 %v1050_v28 }
  0x19   :  { %739 = vmatprep.subr.bf16.mxu0 %v1054_v29  ;;  %v1435_v28 = vshrl.u32 %v63_v27, 7 }
  0x1a   :  { %781 = vmatpush1.bf16.msra.mxu1 %v1053_v30 }
  0x1b   :  { %782 = vmatprep.subr.bf16.mxu1 %v1057_v32  ;;  %v1438_v29 = vsub.s32 1, %v1435_v28  ;;  %v1441_v30 = vsub.s32 0, %v1435_v28 }
  0x1c   :  { %740 = vmatpush1.bf16.msra.mxu0 %v1056_v31  ;;  %v61_v31 = vld [vmem:[%s1584_s1] sm:$0x3] }
  0x1d   :  { %741 = vmatprep.subr.bf16.mxu0 %v1060_v34  ;;  %v70_v34 = vrot.slane %v61_v31, %v1438_v29 }
  0x1e   :  { %783 = vmatpush1.bf16.msra.mxu1 %v1059_v33 }
  0x1f   :  { %784 = vmatprep.subr.bf16.mxu1 %v1063_v35  ;;  %v77_v35 = vld [vmem:[%s1585_s2] sm:$0x3] }
  0x20   :  { %742 = vmatpush1.bf16.msra.mxu0 %v1062_v36 }
  0x21   :  { %743 = vmatprep.subr.bf16.mxu0 %v1066_v37  ;;  %v66_v37 = vrot.slane %v61_v31, %v1441_v30 }
  0x22   :  { %785 = vmatpush1.bf16.msra.mxu1 %v1065_v38 }
  0x23   :  { %786 = vmatprep.subr.bf16.mxu1 %v1069_v39  ;;  %v86_v39 = vrot.slane %v77_v35, %v1438_v29 }
  0x24   :  { %744 = vmatpush2.bf16.msra.mxu0 %v1068_v40  ;;  %v82_v40 = vrot.slane %v77_v35, %v1441_v30 }
  0x25   :  { %745 = vmatprep.subr.bf16.mxu0 %v1072_v56  ;;  %v1122_v56 = vld [vmem:[%s1583_s3 + $0x104] ss:$24 sps:$4 sm:$0xff]  }
  0x26   :  { %787 = vmatpush2.bf16.msra.mxu1 %v1071_v55 }
  0x27   :  { %788 = vmatprep.subr.bf16.mxu1 %v1075_v58  ;;  %v1125_v58 = vld [vmem:[%s1583_s3 + $0xd4] ss:$24 sps:$4 sm:$0xff]  }
  0x28   :  { %746 = vmatpush2.bf16.msra.mxu0 %v1074_v57  ;;  %v1120_v57 = vld [vmem:[%s1583_s3 + $0x100] ss:$24 sps:$4 sm:$0xff]  }
  0x29   :  { %747 = vmatprep.subr.bf16.mxu0 %v1078_v60  ;;  %v1128_v60 = vld [vmem:[%s1583_s3 + $0xa4] ss:$24 sps:$4 sm:$0xff]  }
  0x2a   :  { %789 = vmatpush2.bf16.msra.mxu1 %v1077_v59  ;;  %v1123_v59 = vld [vmem:[%s1583_s3 + $0xd0] ss:$24 sps:$4 sm:$0xff]  }
  0x2b   :  { %790 = vmatprep.subr.bf16.mxu1 %v1081_v62  ;;  %v1131_v62 = vld [vmem:[%s1583_s3 + $0x74] ss:$24 sps:$4 sm:$0xff]  }
  0x2c   :  { %748 = vmatpush2.bf16.msra.mxu0 %v1080_v61  ;;  %v1126_v61 = vld [vmem:[%s1583_s3 + $0xa0] ss:$24 sps:$4 sm:$0xff]  }
  0x2e   :  { %791 = vmatpush2.bf16.msra.mxu1 %v1083_v63  ;;  %v1129_v63 = vld [vmem:[%s1583_s3 + $0x70] ss:$24 sps:$4 sm:$0xff]  }
  0x8d   :  { %v30_v41 = vpop.xlane.xlu0 %29 }
  0x8e   :  { %v35_v42 = vmul.f32 0.00390625, %v30_v41 }
  0x90   :  { %v1326_v43 = vsub.f32 %v1199_v0, %v35_v42  ;;  %v1329_v44 = vsub.f32 %v1204_v1, %v35_v42  ;;  %v1084_v0 = vld [vmem:[%s1583_s3 + $0x244] ss:$24 sps:$4 sm:$0xff]   ;;  %v1086_v1 = vld [vmem:[%s1583_s3 + $0x240] ss:$24 sps:$4 sm:$0xff]  }
  0x91   :  { %v33_v45 = vpop.xlane.xlu0 %32  ;;  %749 = vmatprep.subr.bf16.mxu0 %v1084_v0  ;;  %v1134_v0 = vld [vmem:[%s1583_s3 + $0x44] ss:$24 sps:$4 sm:$0xff]  }
  0x92   :  { %v36_v46 = vmul.f32 0.00390625, %v33_v45  ;;  %v41_v47 = vmul.f32 %v1326_v43, %v1326_v43  ;;  %v42_v48 = vmul.f32 %v1329_v44, %v1329_v44  ;;  %750 = vmatpush2.bf16.msra.mxu0 %v1086_v1  ;;  %v1132_v1 = vld [vmem:[%s1583_s3 + $0x40] ss:$24 sps:$4 sm:$0xff]  }
  0x94   :  { %v1336_v49 = vsub.f32 %v1209_v2, %v36_v46  ;;  %v1339_v50 = vsub.f32 %v1216_v4, %v36_v46  ;;  %v45_v51 = vadd.f32 %v42_v48, %v41_v47  ;;  %v1087_v2 = vld [vmem:[%s1583_s3 + $0x24c] ss:$24 sps:$4 sm:$0xff]  }
  0x95   :  { %v1090_v4 = vld [vmem:[%s1583_s3 + $0x214] ss:$24 sps:$4 sm:$0xff]   ;;  %792 = vmatprep.subr.bf16.mxu1 %v1087_v2 }
  0x96   :  { %46 = vadd.xlane.f32.xlu1 %v45_v51  ;;  %v43_v52 = vmul.f32 %v1336_v49, %v1336_v49  ;;  %v44_v53 = vmul.f32 %v1339_v50, %v1339_v50  ;;  %793 = vmatpush2.bf16.msra.mxu1 %v1089_v3  ;;  %v1137_v2 = vld [vmem:[%s1583_s3 + $0x14] ss:$24 sps:$4 sm:$0xff]   ;;  %v1135_v3 = vld [vmem:[%s1583_s3 + $0x10] ss:$24 sps:$4 sm:$0xff]  }
  0x97   :  { %751 = vmatprep.subr.bf16.mxu0 %v1090_v4  ;;  %794 = vmatprep.subr.bf16.mxu1 %v1093_v5  ;;  %v1140_v4 = vld [vmem:[%s1583_s3 + $0x2e4] ss:$24 sps:$4 sm:$0xff]   ;;  %v1138_v5 = vld [vmem:[%s1583_s3 + $0x2e0] ss:$24 sps:$4 sm:$0xff]  }
  0x98   :  { %v48_v54 = vadd.f32 %v44_v53, %v43_v52  ;;  %752 = vmatpush2.bf16.msra.mxu0 %v1092_v6  ;;  %v1143_v6 = vld [vmem:[%s1583_s3 + $0x2b4] ss:$24 sps:$4 sm:$0xff]  }
  0x99   :  { %753 = vmatprep.subr.bf16.mxu0 %v1096_v8  ;;  %v1146_v8 = vld [vmem:[%s1583_s3 + $0x284] ss:$24 sps:$4 sm:$0xff]  }
  0x9a   :  { %49 = vadd.xlane.f32.xlu1 %v48_v54  ;;  %795 = vmatpush2.bf16.msra.mxu1 %v1095_v7  ;;  %v1114_v54 = vld [vmem:[%s1583_s3 + $0x160] ss:$24 sps:$4 sm:$0xff]   ;;  %v1141_v7 = vld [vmem:[%s1583_s3 + $0x2b0] ss:$24 sps:$4 sm:$0xff]  }
  0x9b   :  { %796 = vmatprep.subr.bf16.mxu1 %v1099_v9  ;;  %v1144_v9 = vld [vmem:[%s1583_s3 + $0x280] ss:$24 sps:$4 sm:$0xff]  }
  0x9c   :  { %754 = vmatpush2.bf16.msra.mxu0 %v1098_v10  ;;  %v1149_v10 = vld [vmem:[%s1583_s3 + $0x254] ss:$24 sps:$4 sm:$0xff]  }
  0x9d   :  { %755 = vmatprep.subr.bf16.mxu0 %v1102_v12  ;;  %v1152_v12 = vld [vmem:[%s1583_s3 + $0x224] ss:$24 sps:$4 sm:$0xff]  }
  0x9e   :  { %797 = vmatpush2.bf16.msra.mxu1 %v1101_v11  ;;  %v1147_v11 = vld [vmem:[%s1583_s3 + $0x250] ss:$24 sps:$4 sm:$0xff]  }
  0x9f   :  { %798 = vmatprep.subr.bf16.mxu1 %v1105_v13  ;;  %v1150_v13 = vld [vmem:[%s1583_s3 + $0x220] ss:$24 sps:$4 sm:$0xff]  }
  0xa0   :  { %756 = vmatpush2.bf16.msra.mxu0 %v1104_v14  ;;  %v1155_v14 = vld [vmem:[%s1583_s3 + $0x1f4] ss:$24 sps:$4 sm:$0xff]  }
  0xa1   :  { %757 = vmatprep.subr.bf16.mxu0 %v1108_v16  ;;  %v1158_v16 = vld [vmem:[%s1583_s3 + $0x1c4] ss:$24 sps:$4 sm:$0xff]  }
  0xa2   :  { %799 = vmatpush2.bf16.msra.mxu1 %v1107_v15  ;;  %v1153_v15 = vld [vmem:[%s1583_s3 + $0x1f0] ss:$24 sps:$4 sm:$0xff]  }
  0xa3   :  { %800 = vmatprep.subr.bf16.mxu1 %v1111_v17  ;;  %v1156_v17 = vld [vmem:[%s1583_s3 + $0x1c0] ss:$24 sps:$4 sm:$0xff]  }
  0xa4   :  { %758 = vmatpush2.bf16.msra.mxu0 %v1110_v18  ;;  %v1161_v18 = vld [vmem:[%s1583_s3 + $0x194] ss:$24 sps:$4 sm:$0xff]  }
  0xa5   :  { %813 = vmatprep.subr.bf16.mxu0 %v1116_v20  ;;  %v217_v20 = vsub.s32 2, %v1435_v28 }
  0xa6   :  { %801 = vmatpush2.bf16.msra.mxu1 %v1113_v19  ;;  %v1159_v19 = vld [vmem:[%s1583_s3 + $0x190] ss:$24 sps:$4 sm:$0xff]  }
 0x11f   :  { %v47_v21 = vpop.xlane.xlu1 %46 }
 0x120   :  { %v51_v22 = vmul.f32 0.00390625, %v47_v21  ;;  %v221_v21 = vsub.s32 3, %v1435_v28 }
 0x122   :  { %v53_v23 = vadd.f32 1e-05, %v51_v22  ;;  %v205_v22 = vld [vmem:[%s1586_s4] sm:$0x3f] }
 0x123   :  { %v50_v24 = vpop.xlane.xlu1 %49 }
 0x124   :  { %1162 = vrsqrt.f32 %v53_v23  ;;  %v52_v25 = vmul.f32 0.00390625, %v50_v24  ;;  %v210_v23 = vrot.slane %v205_v22, %v1441_v30  ;;  %v218_v24 = vrot.slane %v205_v22, %v217_v20 }
 0x126   :  { %v54_v26 = vadd.f32 1e-05, %v52_v25  ;;  %v214_v25 = vrot.slane %v205_v22, %v1438_v29 }
 0x128   :  { %1164 = vrsqrt.f32 %v54_v26  ;;  %v222_v26 = vrot.slane %v205_v22, %v221_v21 }
 0x131   :  { %v1163_v32 = vpop.eup %1162 }
 0x132   :  { %v58_v33 = vmul.f32 %v1163_v32, %v1329_v44  ;;  %v57_v36 = vmul.f32 %v1163_v32, %v1326_v43 }
 0x134   :  { %v74_v42 = vmul.f32 %v70_v34, %v58_v33  ;;  %v73_v45 = vmul.f32 %v66_v37, %v57_v36 }
 0x135   :  { %v1165_v38 = vpop.eup %1164 }
 0x136   :  { %v60_v41 = vmul.f32 %v1165_v38, %v1339_v50  ;;  %v59_v44 = vmul.f32 %v1165_v38, %v1336_v49  ;;  %v90_v48 = vadd.f32 %v86_v39, %v74_v42  ;;  %v89_v52 = vadd.f32 %v82_v40, %v73_v45  ;;  %v1119_v50 = vld [vmem:[%s1583_s3 + $0x134] ss:$24 sps:$4 sm:$0xff]   ;;  %v1117_v49 = vld [vmem:[%s1583_s3 + $0x130] ss:$24 sps:$4 sm:$0xff]  }
 0x138   :  { %v76_v46 = vmul.f32 %v70_v34, %v60_v41  ;;  %v75_v47 = vmul.f32 %v66_v37, %v59_v44 }
 0x13a   :  { %v92_v51 = vadd.f32 %v86_v39, %v76_v46  ;;  %v91_v53 = vadd.f32 %v82_v40, %v75_v47 }
 0x13c   :  { %v1017_v43 = vpack.c.bf16 %v92_v51, %v90_v48  ;;  %v1460_v55 = vpack.c.bf16 %v91_v53, %v89_v52  ;;  %v225_v51 = vsub.s32 4, %v1435_v28  ;;  %v229_v52 = vsub.s32 5, %v1435_v28 }
 0x13e   :  { %759 = vmatprep.mubr.bf16.mxu0 %v1017_v43  ;;  %802 = vmatprep.mubr.bf16.mxu1 %v1017_v43  ;;  %v226_v53 = vrot.slane %v205_v22, %v225_v51 }
 0x13f   :  { %760 = vmatmul.mubr.bf16.vlgmr.msra.gmra.mxu0 %v1460_v55  ;;  %803 = vmatmul.mubr.bf16.vlgmr.msra.gmra.mxu1 %v1460_v55 }
 0x140   :  { %814 = vmatpush1.bf16.msra.mxu0 %v1114_v54  ;;  %845 = vmatprep.mubr.bf16.mxu0 %v1017_v43  ;;  %v230_v43 = vrot.slane %v205_v22, %v229_v52 }
 0x141   :  { %815 = vmatprep.subr.bf16.mxu0 %v1119_v50 }
 0x144   :  { %816 = vmatpush1.bf16.msra.mxu0 %v1117_v49 }
 0x145   :  { %817 = vmatprep.subr.bf16.mxu0 %v1122_v56 }
 0x148   :  { %818 = vmatpush1.bf16.msra.mxu0 %v1120_v57 }
 0x149   :  { %819 = vmatprep.subr.bf16.mxu0 %v1125_v58 }
 0x14c   :  { %820 = vmatpush1.bf16.msra.mxu0 %v1123_v59 }
 0x14d   :  { %821 = vmatprep.subr.bf16.mxu0 %v1128_v60 }
 0x150   :  { %822 = vmatpush1.bf16.msra.mxu0 %v1126_v61 }
 0x151   :  { %823 = vmatprep.subr.bf16.mxu0 %v1131_v62 }
 0x154   :  { %824 = vmatpush1.bf16.msra.mxu0 %v1129_v63 }
 0x155   :  { %825 = vmatprep.subr.bf16.mxu0 %v1134_v0 }
 0x158   :  { %826 = vmatpush1.bf16.msra.mxu0 %v1132_v1 }
 0x159   :  { %827 = vmatprep.subr.bf16.mxu0 %v1137_v2 }
 0x15c   :  { %828 = vmatpush1.bf16.msra.mxu0 %v1135_v3 }
 0x15d   :  { %829 = vmatprep.subr.bf16.mxu0 %v1140_v4 }
 0x160   :  { %830 = vmatpush2.bf16.msra.mxu0 %v1138_v5 }
 0x161   :  { %831 = vmatprep.subr.bf16.mxu0 %v1143_v6 }
 0x164   :  { %832 = vmatpush2.bf16.msra.mxu0 %v1141_v7 }
 0x165   :  { %833 = vmatprep.subr.bf16.mxu0 %v1146_v8 }
 0x168   :  { %834 = vmatpush2.bf16.msra.mxu0 %v1144_v9 }
 0x169   :  { %835 = vmatprep.subr.bf16.mxu0 %v1149_v10 }
 0x16c   :  { %836 = vmatpush2.bf16.msra.mxu0 %v1147_v11 }
 0x16d   :  { %837 = vmatprep.subr.bf16.mxu0 %v1152_v12 }
 0x170   :  { %838 = vmatpush2.bf16.msra.mxu0 %v1150_v13 }
 0x171   :  { %839 = vmatprep.subr.bf16.mxu0 %v1155_v14 }
 0x174   :  { %840 = vmatpush2.bf16.msra.mxu0 %v1153_v15 }
 0x175   :  { %841 = vmatprep.subr.bf16.mxu0 %v1158_v16 }
 0x178   :  { %842 = vmatpush2.bf16.msra.mxu0 %v1156_v17 }
 0x179   :  { %843 = vmatprep.subr.bf16.mxu0 %v1161_v18 }
 0x17c   :  { %844 = vmatpush2.bf16.msra.mxu0 %v1159_v19 }
 0x17f   :  { %846 = vmatmul.mubr.bf16.vlgmr.msra.gmra.mxu0 %v1460_v55 }
 0x1ff   :  { %v761_v27 = vpop.f32.mrf.mxu0  ;;  %v804_v31 = vpop.f32.mrf.mxu1 }
 0x200   :  { %v762_v34 = vadd.f32 %v761_v27, %v210_v23  ;;  %v805_v35 = vadd.f32 %v804_v31, %v218_v24 }
 0x201   :  { %v763_v32 = vpop.f32.mrf.mxu0  ;;  %v806_v33 = vpop.f32.mrf.mxu1 }
 0x202   :  { %v764_v36 = vadd.f32 %v763_v32, %v214_v25  ;;  %v807_v37 = vadd.f32 %v806_v33, %v222_v26 }
 0x203   :  { %v765_v38 = vpop.f32.mrf.mxu0  ;;  %v808_v39 = vpop.f32.mrf.mxu1 }
 0x204   :  { %v1010_v40 = vpack.c.bf16 %v764_v36, %v762_v34  ;;  %v1011_v41 = vpack.c.bf16 %v807_v37, %v805_v35  ;;  %v766_v29 = vadd.f32 %v765_v38, %v210_v23  ;;  %v809_v30 = vadd.f32 %v808_v39, %v218_v24 }
 0x205   :  { %v767_v42 = vpop.f32.mrf.mxu0  ;;  %v810_v44 = vpop.f32.mrf.mxu1 }
 0x206   :  { %892 = vst [vmem:[%s1587_s5] sm:$0xff] %v1010_v40  ;;  %893 = vst [vmem:[%s1587_s5 + $0x8] sm:$0xff] %v1011_v41  ;;  %v768_v45 = vadd.f32 %v767_v42, %v214_v25  ;;  %v811_v46 = vadd.f32 %v810_v44, %v222_v26 }
 0x208   :  { %v1013_v47 = vpack.c.bf16 %v768_v45, %v766_v29  ;;  %v1014_v48 = vpack.c.bf16 %v811_v46, %v809_v30 }
 0x20a   :  { %895 = vst [vmem:[%s1587_s5 + $0x18] sm:$0xff] %v1013_v47  ;;  %896 = vst [vmem:[%s1587_s5 + $0x20] sm:$0xff] %v1014_v48 }
 0x23f   :  { %v847_v54 = vpop.f32.mrf.mxu0 }
 0x240   :  { %v848_v50 = vadd.f32 %v847_v54, %v226_v53 }
 0x241   :  { %v849_v55 = vpop.f32.mrf.mxu0 }
 0x242   :  { %v850_v49 = vadd.f32 %v849_v55, %v230_v43 }
 0x243   :  { %v851_v56 = vpop.f32.mrf.mxu0 }
 0x244   :  { %v1012_v57 = vpack.c.bf16 %v850_v49, %v848_v50  ;;  %v852_v59 = vadd.f32 %v851_v56, %v226_v53 }
 0x245   :  { %v853_v58 = vpop.f32.mrf.mxu0 }
 0x246   :  { %894 = vst [vmem:[%s1587_s5 + $0x10] sm:$0xff] %v1012_v57  ;;  %v854_v60 = vadd.f32 %v853_v58, %v230_v43 }
 0x248   :  { %v1015_v61 = vpack.c.bf16 %v854_v60, %v852_v59 }
 0x24a   :  { %897 = vst [vmem:[%s1587_s5 + $0x28] sm:$0xff] %v1015_v61 }

// kernel: gpt2_forward.18
= control target key start
LH: loop header
LB: loop body
LE: loop exit
PB: predicated region body
PF: predicated region fallthrough
CT: control target
= control target key end

     0   :  { %v27_v34 = vlaneseq  ;;  %s547_s1 = inlined_call_operand.vmem [shape: bf16[256,256], index: 1, kind: input, shape index: {}]   ;;  %s548_s0 = inlined_call_operand.vmem [shape: bf16[16,256], index: 0, kind: input, shape index: {}]   ;;  %s549_s2 = inlined_call_operand.vmem [shape: f32[1,256], index: 2, kind: input, shape index: {}]   ;;  %s550_s3 = inlined_call_operand.vmem [shape: f32[16,256], index: 3, kind: input, shape index: {}]   ;;  %s551_s4 = inlined_call_operand.vmem [shape: f32[16,256], index: 4, kind: output, shape index: {}]  }
   0x1   :  { %v342_v0 = vld [vmem:[%s547_s1 + $0x74] ss:$8 sps:$4 sm:$0xff]   ;;  %v344_v1 = vld [vmem:[%s547_s1 + $0x70] ss:$8 sps:$4 sm:$0xff]   ;;  %v345_v2 = vld [vmem:[%s547_s1 + $0x64] ss:$8 sps:$4 sm:$0xff]  }
   0x2   :  { %253 = vmatprep.subr.bf16.mxu0 %v342_v0  ;;  %v347_v3 = vld [vmem:[%s547_s1 + $0x60] ss:$8 sps:$4 sm:$0xff]   ;;  %v348_v4 = vld [vmem:[%s547_s1 + $0x54] ss:$8 sps:$4 sm:$0xff]   ;;  %v350_v5 = vld [vmem:[%s547_s1 + $0x50] ss:$8 sps:$4 sm:$0xff]  }
   0x3   :  { %254 = vmatpush1.bf16.msra.mxu0 %v344_v1  ;;  %v351_v6 = vld [vmem:[%s547_s1 + $0x44] ss:$8 sps:$4 sm:$0xff]   ;;  %v353_v7 = vld [vmem:[%s547_s1 + $0x40] ss:$8 sps:$4 sm:$0xff]   ;;  %v354_v8 = vld [vmem:[%s547_s1 + $0x34] ss:$8 sps:$4 sm:$0xff]  }
   0x4   :  { %255 = vmatprep.subr.bf16.mxu0 %v345_v2  ;;  %v356_v9 = vld [vmem:[%s547_s1 + $0x30] ss:$8 sps:$4 sm:$0xff]   ;;  %v357_v10 = vld [vmem:[%s547_s1 + $0x24] ss:$8 sps:$4 sm:$0xff]   ;;  %v359_v11 = vld [vmem:[%s547_s1 + $0x20] ss:$8 sps:$4 sm:$0xff]  }
   0x5   :  { %v360_v12 = vld [vmem:[%s547_s1 + $0x14] ss:$8 sps:$4 sm:$0xff]   ;;  %v392_v13 = vld [vmem:[%s548_s0 + $0x4] ss:$8 sps:$4 sm:$0xff]   ;;  %v362_v14 = vld [vmem:[%s547_s1 + $0x10] ss:$8 sps:$4 sm:$0xff]  }
   0x6   :  { %v363_v15 = vld [vmem:[%s547_s1 + $0x4] ss:$8 sps:$4 sm:$0xff]   ;;  %285 = vmatprep.mubr.bf16.mxu0 %v392_v13  ;;  %v365_v16 = vld [vmem:[%s547_s1] ss:$8 sps:$4 sm:$0xff]   ;;  %v366_v17 = vld [vmem:[%s547_s1 + $0xf4] ss:$8 sps:$4 sm:$0xff]  }
   0x7   :  { %256 = vmatpush1.bf16.msra.mxu0 %v347_v3  ;;  %v368_v18 = vld [vmem:[%s547_s1 + $0xf0] ss:$8 sps:$4 sm:$0xff]   ;;  %v369_v19 = vld [vmem:[%s547_s1 + $0xe4] ss:$8 sps:$4 sm:$0xff]   ;;  %v371_v20 = vld [vmem:[%s547_s1 + $0xe0] ss:$8 sps:$4 sm:$0xff]  }
   0x8   :  { %257 = vmatprep.subr.bf16.mxu0 %v348_v4  ;;  %v372_v21 = vld [vmem:[%s547_s1 + $0xd4] ss:$8 sps:$4 sm:$0xff]   ;;  %v374_v22 = vld [vmem:[%s547_s1 + $0xd0] ss:$8 sps:$4 sm:$0xff]   ;;  %v375_v23 = vld [vmem:[%s547_s1 + $0xc4] ss:$8 sps:$4 sm:$0xff]  }
   0x9   :  { %v377_v24 = vld [vmem:[%s547_s1 + $0xc0] ss:$8 sps:$4 sm:$0xff]   ;;  %v378_v25 = vld [vmem:[%s547_s1 + $0xb4] ss:$8 sps:$4 sm:$0xff]   ;;  %v380_v26 = vld [vmem:[%s547_s1 + $0xb0] ss:$8 sps:$4 sm:$0xff]  }
   0xa   :  { %v381_v27 = vld [vmem:[%s547_s1 + $0xa4] ss:$8 sps:$4 sm:$0xff]   ;;  %v383_v28 = vld [vmem:[%s547_s1 + $0xa0] ss:$8 sps:$4 sm:$0xff]   ;;  %v384_v29 = vld [vmem:[%s547_s1 + $0x94] ss:$8 sps:$4 sm:$0xff]  }
   0xb   :  { %258 = vmatpush1.bf16.msra.mxu0 %v350_v5  ;;  %v386_v30 = vld [vmem:[%s547_s1 + $0x90] ss:$8 sps:$4 sm:$0xff]   ;;  %v387_v31 = vld [vmem:[%s547_s1 + $0x84] ss:$8 sps:$4 sm:$0xff]   ;;  %v389_v32 = vld [vmem:[%s547_s1 + $0x80] ss:$8 sps:$4 sm:$0xff]  }
   0xc   :  { %259 = vmatprep.subr.bf16.mxu0 %v351_v6  ;;  %v390_v33 = vld [vmem:[%s548_s0] ss:$8 sps:$4 sm:$0xff]   ;;  %v28_v35 = vshrl.u32 %v27_v34, 7  ;;  %v23_v44 = vld [vmem:[%s550_s3 + $0x10] sm:$0xff]  ;;  %v24_v47 = vld [vmem:[%s550_s3 + $0x18] sm:$0xff] }
   0xd   :  { %v25_v37 = vld [vmem:[%s549_s2] sm:$0x3]  ;;  %v22_v42 = vld [vmem:[%s550_s3 + $0x8] sm:$0xff] }
   0xe   :  { %v29_v36 = vsub.s32 0, %v28_v35  ;;  %v33_v38 = vsub.s32 1, %v28_v35  ;;  %v21_v40 = vld [vmem:[%s550_s3] sm:$0xff] }
   0xf   :  { %260 = vmatpush1.bf16.msra.mxu0 %v353_v7 }
  0x10   :  { %261 = vmatprep.subr.bf16.mxu0 %v354_v8  ;;  %v30_v39 = vrot.slane %v25_v37, %v29_v36  ;;  %v34_v41 = vrot.slane %v25_v37, %v33_v38 }
  0x12   :  { %v37_v43 = vadd.f32 %v30_v39, %v21_v40  ;;  %v38_v45 = vadd.f32 %v34_v41, %v22_v42  ;;  %v39_v49 = vadd.f32 %v30_v39, %v23_v44  ;;  %v40_v52 = vadd.f32 %v34_v41, %v24_v47 }
  0x13   :  { %262 = vmatpush1.bf16.msra.mxu0 %v356_v9 }
  0x14   :  { %263 = vmatprep.subr.bf16.mxu0 %v357_v10 }
  0x17   :  { %264 = vmatpush1.bf16.msra.mxu0 %v359_v11 }
  0x18   :  { %265 = vmatprep.subr.bf16.mxu0 %v360_v12 }
  0x1b   :  { %266 = vmatpush1.bf16.msra.mxu0 %v362_v14 }
  0x1c   :  { %267 = vmatprep.subr.bf16.mxu0 %v363_v15 }
  0x1f   :  { %268 = vmatpush1.bf16.msra.mxu0 %v365_v16 }
  0x20   :  { %269 = vmatprep.subr.bf16.mxu0 %v366_v17 }
  0x23   :  { %270 = vmatpush2.bf16.msra.mxu0 %v368_v18 }
  0x24   :  { %271 = vmatprep.subr.bf16.mxu0 %v369_v19 }
  0x27   :  { %272 = vmatpush2.bf16.msra.mxu0 %v371_v20 }
  0x28   :  { %273 = vmatprep.subr.bf16.mxu0 %v372_v21 }
  0x2b   :  { %274 = vmatpush2.bf16.msra.mxu0 %v374_v22 }
  0x2c   :  { %275 = vmatprep.subr.bf16.mxu0 %v375_v23 }
  0x2f   :  { %276 = vmatpush2.bf16.msra.mxu0 %v377_v24 }
  0x30   :  { %277 = vmatprep.subr.bf16.mxu0 %v378_v25 }
  0x33   :  { %278 = vmatpush2.bf16.msra.mxu0 %v380_v26 }
  0x34   :  { %279 = vmatprep.subr.bf16.mxu0 %v381_v27 }
  0x37   :  { %280 = vmatpush2.bf16.msra.mxu0 %v383_v28 }
  0x38   :  { %281 = vmatprep.subr.bf16.mxu0 %v384_v29 }
  0x3b   :  { %282 = vmatpush2.bf16.msra.mxu0 %v386_v30 }
  0x3c   :  { %283 = vmatprep.subr.bf16.mxu0 %v387_v31 }
  0x3f   :  { %284 = vmatpush2.bf16.msra.mxu0 %v389_v32 }
  0x42   :  { %286 = vmatmul.mubr.bf16.vlgmr.msra.gmra.mxu0 %v390_v33 }
 0x102   :  { %v287_v46 = vpop.f32.mrf.mxu0 }
 0x103   :  { %v296_v48 = vadd.f32 %v287_v46, %v37_v43 }
 0x104   :  { %v289_v50 = vpop.f32.mrf.mxu0 }
 0x105   :  { %300 = vst [vmem:[%s551_s4] sm:$0xff] %v296_v48  ;;  %v297_v51 = vadd.f32 %v289_v50, %v38_v45 }
 0x106   :  { %v291_v53 = vpop.f32.mrf.mxu0 }
 0x107   :  { %301 = vst [vmem:[%s551_s4 + $0x8] sm:$0xff] %v297_v51  ;;  %v298_v54 = vadd.f32 %v291_v53, %v39_v49 }
 0x108   :  { %v293_v55 = vpop.f32.mrf.mxu0 }
 0x109   :  { %302 = vst [vmem:[%s551_s4 + $0x10] sm:$0xff] %v298_v54  ;;  %v299_v56 = vadd.f32 %v293_v55, %v40_v52 }
 0x10b   :  { %303 = vst [vmem:[%s551_s4 + $0x18] sm:$0xff] %v299_v56 }

// kernel: gpt2_forward.21
= control target key start
LH: loop header
LB: loop body
LE: loop exit
PB: predicated region body
PF: predicated region fallthrough
CT: control target
= control target key end

     0   :  { %vm664_vm0 = vcmask 7168   ;;  %s1133_s0 = inlined_call_operand.vmem [shape: f32[16,256], index: 0, kind: input, shape index: {}]   ;;  %s1134_s3 = inlined_call_operand.vmem [shape: bf16[512,256], index: 3, kind: input, shape index: {}]   ;;  %s1135_s1 = inlined_call_operand.vmem [shape: f32[1,256], index: 1, kind: input, shape index: {}]   ;;  %s1136_s2 = inlined_call_operand.vmem [shape: f32[1,256], index: 2, kind: input, shape index: {}]   ;;  %s1137_s4 = inlined_call_operand.vmem [shape: s32[16,1], index: 4, kind: output, shape index: {}]  }
   0x1   :  { %v900_v0 = vld [vmem:[%s1133_s0] sm:$0xff]  ;;  %v905_v1 = vld [vmem:[%s1133_s0 + $0x8] sm:$0xff]  ;;  %v910_v2 = vld [vmem:[%s1133_s0 + $0x10] sm:$0xff] }
   0x2   :  { %v25_v3 = vadd.f32 %v905_v1, %v900_v0  ;;  %v917_v4 = vld [vmem:[%s1133_s0 + $0x18] sm:$0xff]  ;;  %v778_v10 = vld [vmem:[%s1134_s3 + $0x64] ss:$8 sps:$4 sm:$0xff]   ;;  %v782_v12 = vld [vmem:[%s1134_s3 + $0x60] ss:$8 sps:$4 sm:$0xff]  }
   0x3   :  { %v28_v5 = vadd.f32 %v917_v4, %v910_v2  ;;  %v772_v6 = vld [vmem:[%s1134_s3 + $0x74] ss:$8 sps:$4 sm:$0xff]   ;;  %v776_v8 = vld [vmem:[%s1134_s3 + $0x70] ss:$8 sps:$4 sm:$0xff]   ;;  %v780_v11 = vld [vmem:[%s1134_s3 + $0x164] ss:$8 sps:$4 sm:$0xff]  }
   0x4   :  { %26 = vadd.xlane.f32.xlu0 %v25_v3  ;;  %v774_v7 = vld [vmem:[%s1134_s3 + $0x174] ss:$8 sps:$4 sm:$0xff]   ;;  %500 = vmatprep.subr.bf16.mxu0 %v772_v6  ;;  %v777_v9 = vld [vmem:[%s1134_s3 + $0x170] ss:$8 sps:$4 sm:$0xff]   ;;  %v783_v13 = vld [vmem:[%s1134_s3 + $0x160] ss:$8 sps:$4 sm:$0xff]  }
   0x5   :  { %543 = vmatprep.subr.bf16.mxu1 %v774_v7  ;;  %501 = vmatpush1.bf16.xpose.msra.mxu0 %v776_v8  ;;  %v784_v14 = vld [vmem:[%s1134_s3 + $0x54] ss:$8 sps:$4 sm:$0xff]   ;;  %v788_v16 = vld [vmem:[%s1134_s3 + $0x50] ss:$8 sps:$4 sm:$0xff]   ;;  %v790_v18 = vld [vmem:[%s1134_s3 + $0x44] ss:$8 sps:$4 sm:$0xff]  }
   0x6   :  { %544 = vmatpush1.bf16.xpose.msra.mxu1 %v777_v9  ;;  %502 = vmatprep.subr.bf16.mxu0 %v778_v10  ;;  %v786_v15 = vld [vmem:[%s1134_s3 + $0x154] ss:$8 sps:$4 sm:$0xff]   ;;  %v789_v17 = vld [vmem:[%s1134_s3 + $0x150] ss:$8 sps:$4 sm:$0xff]   ;;  %v792_v19 = vld [vmem:[%s1134_s3 + $0x144] ss:$8 sps:$4 sm:$0xff]  }
   0x7   :  { %545 = vmatprep.subr.bf16.mxu1 %v780_v11  ;;  %v794_v20 = vld [vmem:[%s1134_s3 + $0x40] ss:$8 sps:$4 sm:$0xff]   ;;  %v796_v22 = vld [vmem:[%s1134_s3 + $0x34] ss:$8 sps:$4 sm:$0xff]   ;;  %v800_v24 = vld [vmem:[%s1134_s3 + $0x30] ss:$8 sps:$4 sm:$0xff]  }
   0x8   :  { %29 = vadd.xlane.f32.xlu0 %v28_v5  ;;  %v795_v21 = vld [vmem:[%s1134_s3 + $0x140] ss:$8 sps:$4 sm:$0xff]   ;;  %v798_v23 = vld [vmem:[%s1134_s3 + $0x134] ss:$8 sps:$4 sm:$0xff]   ;;  %v801_v25 = vld [vmem:[%s1134_s3 + $0x130] ss:$8 sps:$4 sm:$0xff]  }
   0x9   :  { %v802_v26 = vld [vmem:[%s1134_s3 + $0x24] ss:$8 sps:$4 sm:$0xff]   ;;  %v806_v28 = vld [vmem:[%s1134_s3 + $0x20] ss:$8 sps:$4 sm:$0xff]   ;;  %v808_v30 = vld [vmem:[%s1134_s3 + $0x14] ss:$8 sps:$4 sm:$0xff]  }
   0xa   :  { %v804_v27 = vld [vmem:[%s1134_s3 + $0x124] ss:$8 sps:$4 sm:$0xff]   ;;  %v807_v29 = vld [vmem:[%s1134_s3 + $0x120] ss:$8 sps:$4 sm:$0xff]   ;;  %v810_v31 = vld [vmem:[%s1134_s3 + $0x114] ss:$8 sps:$4 sm:$0xff]  }
   0xb   :  { %v812_v32 = vld [vmem:[%s1134_s3 + $0x10] ss:$8 sps:$4 sm:$0xff]   ;;  %v814_v34 = vld [vmem:[%s1134_s3 + $0x4] ss:$8 sps:$4 sm:$0xff]   ;;  %v818_v36 = vld [vmem:[%s1134_s3] ss:$8 sps:$4 sm:$0xff]  }
   0xc   :  { %v813_v33 = vld [vmem:[%s1134_s3 + $0x110] ss:$8 sps:$4 sm:$0xff]   ;;  %v816_v35 = vld [vmem:[%s1134_s3 + $0x104] ss:$8 sps:$4 sm:$0xff]   ;;  %v819_v37 = vld [vmem:[%s1134_s3 + $0x100] ss:$8 sps:$4 sm:$0xff]  }
   0xd   :  { %503 = vmatpush1.bf16.xpose.msra.mxu0 %v782_v12  ;;  %v820_v38 = vld [vmem:[%s1134_s3 + $0xf4] ss:$8 sps:$4 sm:$0xff]   ;;  %v824_v40 = vld [vmem:[%s1134_s3 + $0xf0] ss:$8 sps:$4 sm:$0xff]   ;;  %v826_v42 = vld [vmem:[%s1134_s3 + $0xe4] ss:$8 sps:$4 sm:$0xff]  }
   0xe   :  { %546 = vmatpush1.bf16.xpose.msra.mxu1 %v783_v13  ;;  %504 = vmatprep.subr.bf16.mxu0 %v784_v14  ;;  %v822_v39 = vld [vmem:[%s1134_s3 + $0x1f4] ss:$8 sps:$4 sm:$0xff]   ;;  %v825_v41 = vld [vmem:[%s1134_s3 + $0x1f0] ss:$8 sps:$4 sm:$0xff]   ;;  %v828_v43 = vld [vmem:[%s1134_s3 + $0x1e4] ss:$8 sps:$4 sm:$0xff]  }
   0xf   :  { %547 = vmatprep.subr.bf16.mxu1 %v786_v15  ;;  %v830_v44 = vld [vmem:[%s1134_s3 + $0xe0] ss:$8 sps:$4 sm:$0xff]   ;;  %v832_v46 = vld [vmem:[%s1134_s3 + $0xd4] ss:$8 sps:$4 sm:$0xff]   ;;  %v836_v48 = vld [vmem:[%s1134_s3 + $0xd0] ss:$8 sps:$4 sm:$0xff]  }
  0x10   :  { %v831_v45 = vld [vmem:[%s1134_s3 + $0x1e0] ss:$8 sps:$4 sm:$0xff]   ;;  %v834_v47 = vld [vmem:[%s1134_s3 + $0x1d4] ss:$8 sps:$4 sm:$0xff]   ;;  %v837_v49 = vld [vmem:[%s1134_s3 + $0x1d0] ss:$8 sps:$4 sm:$0xff]  }
  0x11   :  { %v838_v50 = vld [vmem:[%s1134_s3 + $0xc4] ss:$8 sps:$4 sm:$0xff]   ;;  %v842_v52 = vld [vmem:[%s1134_s3 + $0xc0] ss:$8 sps:$4 sm:$0xff]   ;;  %v844_v54 = vld [vmem:[%s1134_s3 + $0xb4] ss:$8 sps:$4 sm:$0xff]  }
  0x12   :  { %v840_v51 = vld [vmem:[%s1134_s3 + $0x1c4] ss:$8 sps:$4 sm:$0xff]   ;;  %v843_v53 = vld [vmem:[%s1134_s3 + $0x1c0] ss:$8 sps:$4 sm:$0xff]   ;;  %v846_v55 = vld [vmem:[%s1134_s3 + $0x1b4] ss:$8 sps:$4 sm:$0xff]  }
  0x13   :  { %v854_v10 = vld [vmem:[%s1134_s3 + $0xa0] ss:$8 sps:$4 sm:$0xff]   ;;  %v856_v12 = vld [vmem:[%s1134_s3 + $0x94] ss:$8 sps:$4 sm:$0xff]   ;;  %v860_v14 = vld [vmem:[%s1134_s3 + $0x90] ss:$8 sps:$4 sm:$0xff]  }
  0x14   :  { %v855_v11 = vld [vmem:[%s1134_s3 + $0x1a0] ss:$8 sps:$4 sm:$0xff]   ;;  %v858_v13 = vld [vmem:[%s1134_s3 + $0x194] ss:$8 sps:$4 sm:$0xff]   ;;  %v861_v15 = vld [vmem:[%s1134_s3 + $0x190] ss:$8 sps:$4 sm:$0xff]  }
  0x15   :  { %505 = vmatpush1.bf16.xpose.msra.mxu0 %v788_v16  ;;  %v862_v16 = vld [vmem:[%s1134_s3 + $0x84] ss:$8 sps:$4 sm:$0xff]  }
  0x16   :  { %548 = vmatpush1.bf16.xpose.msra.mxu1 %v789_v17  ;;  %506 = vmatprep.subr.bf16.mxu0 %v790_v18  ;;  %v864_v17 = vld [vmem:[%s1134_s3 + $0x184] ss:$8 sps:$4 sm:$0xff]   ;;  %v866_v18 = vld [vmem:[%s1134_s3 + $0x80] ss:$8 sps:$4 sm:$0xff]  }
  0x17   :  { %549 = vmatprep.subr.bf16.mxu1 %v792_v19  ;;  %v867_v19 = vld [vmem:[%s1134_s3 + $0x180] ss:$8 sps:$4 sm:$0xff]  }
  0x1d   :  { %507 = vmatpush1.bf16.xpose.msra.mxu0 %v794_v20 }
  0x1e   :  { %550 = vmatpush1.bf16.xpose.msra.mxu1 %v795_v21  ;;  %508 = vmatprep.subr.bf16.mxu0 %v796_v22 }
  0x1f   :  { %551 = vmatprep.subr.bf16.mxu1 %v798_v23 }
  0x25   :  { %509 = vmatpush1.bf16.xpose.msra.mxu0 %v800_v24 }
  0x26   :  { %552 = vmatpush1.bf16.xpose.msra.mxu1 %v801_v25  ;;  %510 = vmatprep.subr.bf16.mxu0 %v802_v26  ;;  %v60_v26 = vlaneseq }
  0x27   :  { %553 = vmatprep.subr.bf16.mxu1 %v804_v27 }
  0x28   :  { %v61_v27 = vshrl.u32 %v60_v26, 7 }
  0x2d   :  { %511 = vmatpush1.bf16.xpose.msra.mxu0 %v806_v28  ;;  %v62_v28 = vsub.s32 0, %v61_v27 }
  0x2e   :  { %554 = vmatpush1.bf16.xpose.msra.mxu1 %v807_v29  ;;  %512 = vmatprep.subr.bf16.mxu0 %v808_v30  ;;  %v66_v29 = vsub.s32 1, %v61_v27  ;;  %v58_v30 = vld [vmem:[%s1135_s1] sm:$0x3] }
  0x2f   :  { %555 = vmatprep.subr.bf16.mxu1 %v810_v31 }
  0x35   :  { %513 = vmatpush1.bf16.xpose.msra.mxu0 %v812_v32 }
  0x36   :  { %556 = vmatpush1.bf16.xpose.msra.mxu1 %v813_v33  ;;  %514 = vmatprep.subr.bf16.mxu0 %v814_v34  ;;  %v63_v33 = vrot.slane %v58_v30, %v62_v28  ;;  %v67_v34 = vrot.slane %v58_v30, %v66_v29 }
  0x37   :  { %557 = vmatprep.subr.bf16.mxu1 %v816_v35  ;;  %v74_v35 = vld [vmem:[%s1136_s2] sm:$0x3] }
  0x3d   :  { %515 = vmatpush1.bf16.xpose.msra.mxu0 %v818_v36 }
  0x3e   :  { %558 = vmatpush1.bf16.xpose.msra.mxu1 %v819_v37  ;;  %516 = vmatprep.subr.bf16.mxu0 %v820_v38  ;;  %v79_v38 = vrot.slane %v74_v35, %v62_v28 }
  0x3f   :  { %559 = vmatprep.subr.bf16.mxu1 %v822_v39  ;;  %v83_v39 = vrot.slane %v74_v35, %v66_v29 }
  0x45   :  { %517 = vmatpush2.bf16.xpose.msra.mxu0 %v824_v40 }
  0x46   :  { %560 = vmatpush2.bf16.xpose.msra.mxu1 %v825_v41  ;;  %518 = vmatprep.subr.bf16.mxu0 %v826_v42 }
  0x47   :  { %561 = vmatprep.subr.bf16.mxu1 %v828_v43 }
  0x4d   :  { %519 = vmatpush2.bf16.xpose.msra.mxu0 %v830_v44 }
  0x4e   :  { %562 = vmatpush2.bf16.xpose.msra.mxu1 %v831_v45  ;;  %520 = vmatprep.subr.bf16.mxu0 %v832_v46 }
  0x4f   :  { %563 = vmatprep.subr.bf16.mxu1 %v834_v47 }
  0x55   :  { %521 = vmatpush2.bf16.xpose.msra.mxu0 %v836_v48 }
  0x56   :  { %564 = vmatpush2.bf16.xpose.msra.mxu1 %v837_v49  ;;  %522 = vmatprep.subr.bf16.mxu0 %v838_v50 }
  0x57   :  { %565 = vmatprep.subr.bf16.mxu1 %v840_v51 }
  0x5d   :  { %523 = vmatpush2.bf16.xpose.msra.mxu0 %v842_v52 }
  0x5e   :  { %566 = vmatpush2.bf16.xpose.msra.mxu1 %v843_v53  ;;  %524 = vmatprep.subr.bf16.mxu0 %v844_v54 }
  0x5f   :  { %567 = vmatprep.subr.bf16.mxu1 %v846_v55 }
  0x8d   :  { %v27_v56 = vpop.xlane.xlu0 %26 }
  0x8e   :  { %v32_v57 = vmul.f32 0.00390625, %v27_v56 }
  0x90   :  { %v34_v58 = vsub.f32 %v900_v0, %v32_v57  ;;  %v35_v59 = vsub.f32 %v905_v1, %v32_v57  ;;  %v848_v0 = vld [vmem:[%s1134_s3 + $0xb0] ss:$8 sps:$4 sm:$0xff]  }
  0x91   :  { %v30_v60 = vpop.xlane.xlu0 %29  ;;  %v849_v1 = vld [vmem:[%s1134_s3 + $0x1b0] ss:$8 sps:$4 sm:$0xff]   ;;  %525 = vmatpush2.bf16.xpose.msra.mxu0 %v848_v0 }
  0x92   :  { %v33_v61 = vmul.f32 0.00390625, %v30_v60  ;;  %v38_v62 = vmul.f32 %v34_v58, %v34_v58  ;;  %v39_v63 = vmul.f32 %v35_v59, %v35_v59  ;;  %568 = vmatpush2.bf16.xpose.msra.mxu1 %v849_v1 }
  0x94   :  { %v36_v3 = vsub.f32 %v910_v2, %v33_v61  ;;  %v37_v5 = vsub.f32 %v917_v4, %v33_v61  ;;  %v42_v6 = vadd.f32 %v39_v63, %v38_v62  ;;  %v850_v2 = vld [vmem:[%s1134_s3 + $0xa4] ss:$8 sps:$4 sm:$0xff]  }
  0x95   :  { %v852_v4 = vld [vmem:[%s1134_s3 + $0x1a4] ss:$8 sps:$4 sm:$0xff]   ;;  %526 = vmatprep.subr.bf16.mxu0 %v850_v2 }
  0x96   :  { %43 = vadd.xlane.f32.xlu1 %v42_v6  ;;  %v40_v7 = vmul.f32 %v36_v3, %v36_v3  ;;  %v41_v8 = vmul.f32 %v37_v5, %v37_v5  ;;  %569 = vmatprep.subr.bf16.mxu1 %v852_v4  ;;  %v597_v6 = vand.u32 127, %v60_v26 }
  0x98   :  { %v45_v9 = vadd.f32 %v41_v8, %v40_v7  ;;  %v598_v7 = vadd.s32 128, %v597_v6  ;;  %v599_v8 = vadd.s32 256, %v597_v6 }
  0x99   :  { %527 = vmatpush2.bf16.xpose.msra.mxu0 %v854_v10 }
  0x9a   :  { %46 = vadd.xlane.f32.xlu1 %v45_v9  ;;  %570 = vmatpush2.bf16.xpose.msra.mxu1 %v855_v11  ;;  %v600_v9 = vadd.s32 384, %v597_v6 }
  0x9b   :  { %528 = vmatprep.subr.bf16.mxu0 %v856_v12  ;;  %571 = vmatprep.subr.bf16.mxu1 %v858_v13 }
  0xa1   :  { %529 = vmatpush2.bf16.xpose.msra.mxu0 %v860_v14 }
  0xa2   :  { %572 = vmatpush2.bf16.xpose.msra.mxu1 %v861_v15  ;;  %530 = vmatprep.subr.bf16.mxu0 %v862_v16 }
  0xa3   :  { %573 = vmatprep.subr.bf16.mxu1 %v864_v17 }
  0xa9   :  { %531 = vmatpush2.bf16.xpose.msra.mxu0 %v866_v18 }
  0xaa   :  { %574 = vmatpush2.bf16.xpose.msra.mxu1 %v867_v19 }
 0x11f   :  { %v44_v20 = vpop.xlane.xlu1 %43 }
 0x120   :  { %v48_v21 = vmul.f32 0.00390625, %v44_v20 }
 0x122   :  { %v50_v22 = vadd.f32 1e-05, %v48_v21 }
 0x123   :  { %v47_v23 = vpop.xlane.xlu1 %46 }
 0x124   :  { %868 = vrsqrt.f32 %v50_v22  ;;  %v49_v24 = vmul.f32 0.00390625, %v47_v23 }
 0x126   :  { %v51_v25 = vadd.f32 1e-05, %v49_v24 }
 0x128   :  { %870 = vrsqrt.f32 %v51_v25 }
 0x131   :  { %v869_v31 = vpop.eup %868 }
 0x132   :  { %v55_v32 = vmul.f32 %v869_v31, %v35_v59  ;;  %v54_v36 = vmul.f32 %v869_v31, %v34_v58 }
 0x134   :  { %v71_v41 = vmul.f32 %v67_v34, %v55_v32  ;;  %v70_v43 = vmul.f32 %v63_v33, %v54_v36 }
 0x135   :  { %v871_v37 = vpop.eup %870 }
 0x136   :  { %v57_v40 = vmul.f32 %v871_v37, %v37_v5  ;;  %v56_v42 = vmul.f32 %v871_v37, %v36_v3  ;;  %v87_v46 = vadd.f32 %v83_v39, %v71_v41  ;;  %v86_v48 = vadd.f32 %v79_v38, %v70_v43 }
 0x138   :  { %v73_v44 = vmul.f32 %v67_v34, %v57_v40  ;;  %v72_v45 = vmul.f32 %v63_v33, %v56_v42 }
 0x13a   :  { %v89_v47 = vadd.f32 %v83_v39, %v73_v44  ;;  %v88_v49 = vadd.f32 %v79_v38, %v72_v45 }
 0x13c   :  { %v771_v50 = vpack.c.bf16 %v89_v47, %v87_v46  ;;  %v770_v51 = vpack.c.bf16 %v88_v49, %v86_v48 }
 0x13e   :  { %532 = vmatprep.mubr.bf16.mxu0 %v771_v50  ;;  %575 = vmatprep.mubr.bf16.mxu1 %v771_v50 }
 0x13f   :  { %533 = vmatmul.mubr.bf16.vlgmr.msra.gmra.mxu0 %v770_v51  ;;  %576 = vmatmul.mubr.bf16.vlgmr.msra.gmra.mxu1 %v770_v51 }
 0x1ff   :  { %v534_v52 = vpop.f32.mrf.mxu0  ;;  %v577_v53 = vpop.f32.mrf.mxu1 }
 0x200   :  { %v586_v56 = vmax.f32 %v534_v52, %v577_v53 }
 0x201   :  { %v536_v54 = vpop.f32.mrf.mxu0  ;;  %v579_v55 = vpop.f32.mrf.mxu1 }
 0x202   :  { %v587_v57 = vmax.f32 %v536_v54, %v579_v55 }
 0x203   :  { %v538_v58 = vpop.f32.mrf.mxu0  ;;  %v581_v59 = vpop.f32.mrf.mxu1 }
 0x204   :  { %v588_v60 = vmax.f32 %v586_v56, %v587_v57  ;;  %v591_v63 = vmax.f32 %v538_v58, %v581_v59 }
 0x205   :  { %v540_v61 = vpop.f32.mrf.mxu0  ;;  %v583_v62 = vpop.f32.mrf.mxu1 }
 0x206   :  { %v592_v3 = vmax.f32 %v540_v61, %v583_v62  ;;  %589 = vmax.xlane.f32.xlu0 %v588_v60 }
 0x208   :  { %v593_v5 = vmax.f32 %v591_v63, %v592_v3 }
 0x20a   :  { %594 = vmax.xlane.f32.xlu1 %v593_v5 }
 0x28f   :  { %v590_v0 = vpop.xlane.xlu0 %589 }
 0x290   :  { %vm601_vm1 = vcmp.eq.f32.partialorder %v534_v52, %v590_v0  ;;  %vm602_vm2 = vcmp.eq.f32.partialorder %v536_v54, %v590_v0  ;;  %vm603_vm3 = vcmp.eq.f32.partialorder %v577_v53, %v590_v0  ;;  %vm604_vm4 = vcmp.eq.f32.partialorder %v579_v55, %v590_v0 }
 0x291   :  { %v609_v1 = vsel %vm601_vm1, %v597_v6, 512  ;;  %v610_v2 = vsel %vm602_vm2, %v598_v7, 512  ;;  %v611_v4 = vsel %vm603_vm3, %v599_v8, 512  ;;  %v612_v10 = vsel %vm604_vm4, %v600_v9, 512 }
 0x292   :  { %vm617_vm5 = vcmp.lt.s32.totalorder %v609_v1, %v611_v4  ;;  %vm619_vm6 = vcmp.lt.s32.totalorder %v610_v2, %v612_v10 }
 0x293   :  { %v595_v11 = vpop.xlane.xlu1 %594  ;;  %v618_v12 = vsel %vm617_vm5, %v609_v1, %v611_v4  ;;  %v620_v13 = vsel %vm619_vm6, %v610_v2, %v612_v10 }
 0x294   :  { %vm621_vm7 = vcmp.lt.s32.totalorder %v618_v12, %v620_v13  ;;  %vm605_vm8 = vcmp.eq.f32.partialorder %v538_v58, %v595_v11  ;;  %vm606_vm9 = vcmp.eq.f32.partialorder %v540_v61, %v595_v11  ;;  %vm607_vm10 = vcmp.eq.f32.partialorder %v581_v59, %v595_v11 }
 0x295   :  { %v622_v14 = vsel %vm621_vm7, %v618_v12, %v620_v13  ;;  %vm608_vm11 = vcmp.eq.f32.partialorder %v583_v62, %v595_v11  ;;  %v613_v15 = vsel %vm605_vm8, %v597_v6, 512  ;;  %v614_v16 = vsel %vm606_vm9, %v598_v7, 512 }
 0x296   :  { %v624_v17 = vshra.s32 %v622_v14, 16  ;;  %v615_v18 = vsel %vm607_vm10, %v599_v8, 512  ;;  %v616_v19 = vsel %vm608_vm11, %v600_v9, 512  ;;  %v623_v26 = vand.u32 65535, %v622_v14 }
 0x297   :  { %vm637_vm12 = vcmp.lt.s32.totalorder %v613_v15, %v615_v18  ;;  %vm639_vm13 = vcmp.lt.s32.totalorder %v614_v16, %v616_v19 }
 0x298   :  { %v626_v20 = vcvt.s32.f32 %v624_v17  ;;  %v638_v21 = vsel %vm637_vm12, %v613_v15, %v615_v18  ;;  %v640_v22 = vsel %vm639_vm13, %v614_v16, %v616_v19  ;;  %v625_v28 = vcvt.s32.f32 %v623_v26 }
 0x299   :  { %vm641_vm14 = vcmp.lt.s32.totalorder %v638_v21, %v640_v22 }
 0x29a   :  { %627 = vmin.xlane.f32.xlu0 %v626_v20  ;;  %v642_v23 = vsel %vm641_vm14, %v638_v21, %v640_v22 }
 0x29b   :  { %v644_v24 = vshra.s32 %v642_v23, 16  ;;  %v643_v29 = vand.u32 65535, %v642_v23 }
 0x29d   :  { %v646_v25 = vcvt.s32.f32 %v644_v24  ;;  %v645_v32 = vcvt.s32.f32 %v643_v29 }
 0x29f   :  { %647 = vmin.xlane.f32.xlu1 %v646_v25 }
 0x323   :  { %v628_v27 = vpop.xlane.xlu0 %627 }
 0x324   :  { %vm629_vm15 = vcmp.eq.f32.partialorder %v626_v20, %v628_v27  ;;  %v634_v34 = vcvt.f32.s32 %v628_v27 }
 0x325   :  { %v630_v30 = vsel %vm629_vm15, %v625_v28, inf }
 0x326   :  { %631 = vmin.xlane.f32.xlu0 %v630_v30  ;;  %v635_v36 = vshll.u32 %v634_v34, 16 }
 0x328   :  { %v648_v31 = vpop.xlane.xlu1 %647 }
 0x329   :  { %vm649_vm1 = vcmp.eq.f32.partialorder %v646_v25, %v648_v31  ;;  %v654_v38 = vcvt.f32.s32 %v648_v31 }
 0x32a   :  { %v650_v33 = vsel %vm649_vm1, %v645_v32, inf }
 0x32b   :  { %651 = vmin.xlane.f32.xlu1 %v650_v33  ;;  %v655_v41 = vshll.u32 %v654_v38, 16 }
 0x3af   :  { %v632_v35 = vpop.xlane.xlu0 %631 }
 0x3b0   :  { %v633_v37 = vcvt.f32.s32 %v632_v35 }
 0x3b2   :  { %v636_v39 = vadd.s32 %v635_v36, %v633_v37 }
 0x3b4   :  { %667 = vst.msk [vmem:[#allocation4] sm:$0xff] %vm664_vm0, %v636_v39  ;;  %v652_v40 = vpop.xlane.xlu1 %651 }
 0x3b5   :  { %v653_v42 = vcvt.f32.s32 %v652_v40 }
 0x3b7   :  { %v656_v43 = vadd.s32 %v655_v41, %v653_v42 }
 0x3b9   :  { %668 = vst.msk [vmem:[#allocation4 + $0x8] sm:$0xff] %vm664_vm0, %v656_v43 }
 0x3bb   :  { %v691_v44 = vld [vmem:[#allocation4] sm:$0xff] }
 0x3bc   :  { %694 = vst.msk [vmem:[%s1137_s4] sm:$0xff] %vm664_vm0, %v691_v44 }
 0x3c0   :  { %v692_v45 = vld [vmem:[#allocation4 + $0x8] sm:$0xff] }
 0x3c1   :  { %695 = vst.msk [vmem:[%s1137_s4 + $0x8] sm:$0xff] %vm664_vm0, %v692_v45 }

</bundles_post_ra>
